<compile_context>
chip_gen: v7x
topology: tpu7x:2x2x1
jax: 0.10.0
libtpu: 0.0.40
codegen_flags: <defaults>
</compile_context>

<pallas_src>
import functools

import numpy as np
import jax
import jax.numpy as jnp
from jax import lax
from jax.experimental import pallas as pl
from jax.experimental.pallas import tpu as pltpu


def _grid_sample_kernel(g_ref, vol_ref, dens_out_ref, mask_out_ref, *, D, H, W):
    P = g_ref.shape[1]
    g = g_ref[...]                              # (3, P) normalized coords
    gx, gy, gz = g[0:1, :], g[1:2, :], g[2:3, :]

    # un-normalize (align_corners=False): u = ((g + 1) * size - 1) / 2
    ux = ((gx + 1.0) * D - 1.0) * 0.5           # -> size-D (last) volume axis
    uy = ((gy + 1.0) * H - 1.0) * 0.5           # -> size-H (middle) axis
    uz = ((gz + 1.0) * W - 1.0) * 0.5           # -> size-W (first) axis

    dens2d = vol_ref[0]                         # (W*H, D) f32
    mask2d = vol_ref[1]                         # (W*H, D) f32

    d_iota = lax.broadcasted_iota(jnp.int32, (D, P), 0)        # per-axis index
    wh_iota = lax.broadcasted_iota(jnp.int32, (W * H, P), 0)   # flat row = w*H + h

    # ----------------- density: trilinear, padding_mode='border' -----------------
    cx = jnp.clip(ux, 0.0, D - 1.0); x0f = jnp.floor(cx); fx = cx - x0f
    cy = jnp.clip(uy, 0.0, H - 1.0); y0f = jnp.floor(cy); fy = cy - y0f
    cz = jnp.clip(uz, 0.0, W - 1.0); z0f = jnp.floor(cz); fz = cz - z0f
    x0 = x0f.astype(jnp.int32); x1 = jnp.minimum(x0 + 1, D - 1)
    y0 = y0f.astype(jnp.int32); y1 = jnp.minimum(y0 + 1, H - 1)
    z0 = z0f.astype(jnp.int32); z1 = jnp.minimum(z0 + 1, W - 1)

    # separable X weights (D, P): (1-fx) at x0, fx at x1 (duplicate corners add up
    # correctly at the clamped border).
    wxt = (jnp.where(d_iota == x0, 1.0 - fx, 0.0)
           + jnp.where(d_iota == x1, fx, 0.0))

    # MXU: contract the size-D axis once, wide (P-lane) output. HIGHEST precision keeps
    # the f32 data / weights exact enough for the 1e-4 check (and exact for the mask).
    t1 = jnp.dot(dens2d, wxt,
                 precision=jax.lax.Precision.HIGHEST,
                 preferred_element_type=jnp.float32)           # (W*H, P)

    # combined (z, y) trilinear weights over the flat w*H + h rows (4 corners).
    i00 = z0 * H + y0; w00 = (1.0 - fz) * (1.0 - fy)
    i01 = z0 * H + y1; w01 = (1.0 - fz) * fy
    i10 = z1 * H + y0; w10 = fz * (1.0 - fy)
    i11 = z1 * H + y1; w11 = fz * fy
    u_zy = (jnp.where(wh_iota == i00, w00, 0.0)
            + jnp.where(wh_iota == i01, w01, 0.0)
            + jnp.where(wh_iota == i10, w10, 0.0)
            + jnp.where(wh_iota == i11, w11, 0.0))             # (W*H, P)

    dens_out_ref[...] = jnp.sum(t1 * u_zy, axis=0, keepdims=True)   # (1, P)

    # ----------------- mask: nearest neighbour, padding_mode='zeros' -----------------
    nx = jnp.round(ux).astype(jnp.int32)   # round-half-to-even == std::nearbyint
    ny = jnp.round(uy).astype(jnp.int32)
    nz = jnp.round(uz).astype(jnp.int32)

    # out-of-range nx never matches any d in [0, D) -> contributes 0 (zeros padding)
    oxt = jnp.where(d_iota == nx, 1.0, 0.0)                    # (D, P) exact 0/1
    m1 = jnp.dot(mask2d, oxt,
                 precision=jax.lax.Precision.HIGHEST,
                 preferred_element_type=jnp.float32)           # (W*H, P), exact values

    valid_zy = (ny >= 0) & (ny < H) & (nz >= 0) & (nz < W)
    flat_zy = jnp.where(valid_zy, nz * H + ny, -1)             # -1 => no row matches
    mask_out_ref[...] = jnp.sum(
        jnp.where(wh_iota == flat_zy, m1, 0.0), axis=0, keepdims=True)   # (1, P)


def pallas_grid_sample(density_vol, mask_vol, grid, *, points_per_tile=512):
    """grid_sample of density (trilinear/border) and mask (nearest/zeros).

    density_vol, mask_vol: (W, H, D) volumes; grid: (D, H, W, 3) normalized coords.
    Returns (D, H, W) float32 density samples and (D, H, W) float32 mask samples.
    """
    W, H, D = density_vol.shape
    N = D * H * W
    P = points_per_tile
    assert P % 128 == 0 and N % P == 0, "need lane-dense tiles that divide N"

    # lane-dense coordinate rows: (3, N) with rows = (gx, gy, gz)
    g_cols = jnp.stack([grid[..., 0].reshape(-1),
                        grid[..., 1].reshape(-1),
                        grid[..., 2].reshape(-1)], axis=0).astype(jnp.float32)
    # packed constant volumes: (2, W*H, D)  (row = w*H + h, column = d)
    vols = jnp.stack([density_vol.reshape(W * H, D).astype(jnp.float32),
                      mask_vol.reshape(W * H, D).astype(jnp.float32)], axis=0)

    kernel = functools.partial(_grid_sample_kernel, D=D, H=H, W=W)

    pt_in_spec = pl.BlockSpec((3, P), lambda i: (0, i))          # tile of output points
    vol_spec = pl.BlockSpec((2, W * H, D), lambda i: (0, 0, 0))  # constant packed volume
    out_spec = pl.BlockSpec((1, P), lambda i: (0, i))            # lane-dense outputs

    dens_out, mask_out = pl.pallas_call(
        kernel,
        out_shape=(jax.ShapeDtypeStruct((1, N), jnp.float32),
                   jax.ShapeDtypeStruct((1, N), jnp.float32)),
        grid_spec=pltpu.PrefetchScalarGridSpec(
            num_scalar_prefetch=0,
            grid=(N // P,),
            in_specs=[pt_in_spec, vol_spec],
            out_specs=(out_spec, out_spec),
        ),
        compiler_params=pltpu.CompilerParams(
            dimension_semantics=("parallel",),
        ),
    )(g_cols, vols)

    return dens_out.reshape(D, H, W), mask_out.reshape(D, H, W)


class WarpPallas:
    """JAX/Pallas port of polypose `Warp` with a synthetic displacement warp()."""

    def __init__(self, density, mask, disp):
        # density, mask: (W, H, D) volumes (already permuted like the torch module).
        # disp: (1, D, H, W, 3) deterministic displacement field (the "warp" params).
        self.density = density
        self.mask = mask
        self.W, self.H, self.D = density.shape
        X, Y, Z = jnp.meshgrid(jnp.arange(self.D), jnp.arange(self.H),
                               jnp.arange(self.W), indexing="ij")
        self.pts = jnp.stack([X, Y, Z], axis=-1).astype(jnp.float32)   # (D, H, W, 3)
        self.shape = jnp.array([self.D, self.H, self.W], jnp.float32)
        self.disp = disp

    def normalize(self, x):
        return 2.0 * x / self.shape - 1.0

    def warp(self):
        # TODO(synk): warp() is abstract in the torch base class; this synthetic
        # subclass uses identity + a fixed deterministic displacement field.
        return self.pts[None] + self.disp          # (1, D, H, W, 3)

    def forward(self):
        pts = self.normalize(self.warp())          # (1, D, H, W, 3), batch == 1
        dens_f32, mask_f32 = pallas_grid_sample(self.density, self.mask, pts[0])
        warped_density = dens_f32.astype(self.density.dtype)        # (D, H, W)
        warped_mask = jnp.round(mask_f32).astype(self.mask.dtype)   # (D, H, W)
        return warped_density, warped_mask


def reference_forward(density, mask, grid):
    """Plain-JAX grid_sample reference (same semantics) for correctness check."""
    W, H, D = density.shape
    gx, gy, gz = grid[..., 0], grid[..., 1], grid[..., 2]
    ux = ((gx + 1.0) * D - 1.0) * 0.5
    uy = ((gy + 1.0) * H - 1.0) * 0.5
    uz = ((gz + 1.0) * W - 1.0) * 0.5
    cx = jnp.clip(ux, 0.0, D - 1.0); cy = jnp.clip(uy, 0.0, H - 1.0); cz = jnp.clip(uz, 0.0, W - 1.0)
    x0 = jnp.floor(cx).astype(jnp.int32); fx = cx - jnp.floor(cx); x1 = jnp.minimum(x0 + 1, D - 1)
    y0 = jnp.floor(cy).astype(jnp.int32); fy = cy - jnp.floor(cy); y1 = jnp.minimum(y0 + 1, H - 1)
    z0 = jnp.floor(cz).astype(jnp.int32); fz = cz - jnp.floor(cz); z1 = jnp.minimum(z0 + 1, W - 1)
    dens = jnp.zeros(gx.shape, jnp.float32)
    for zi, wz in ((z0, 1.0 - fz), (z1, fz)):
        for yi, wy in ((y0, 1.0 - fy), (y1, fy)):
            for xi, wx in ((x0, 1.0 - fx), (x1, fx)):
                dens = dens + wz * wy * wx * density[zi, yi, xi]
    nx = jnp.round(ux).astype(jnp.int32); ny = jnp.round(uy).astype(jnp.int32); nz = jnp.round(uz).astype(jnp.int32)
    valid = (nx >= 0) & (nx < D) & (ny >= 0) & (ny < H) & (nz >= 0) & (nz < W)
    m = jnp.where(
        valid,
        mask[jnp.clip(nz, 0, W - 1), jnp.clip(ny, 0, H - 1), jnp.clip(nx, 0, D - 1)].astype(jnp.float32),
        0.0,
    )
    return dens, m.astype(mask.dtype)


if __name__ == "__main__":
    D, H, W = 16, 16, 8   # names follow the torch module: density is (1, 1, W, H, D)
    key = jax.random.PRNGKey(0)
    k1, k2, k3 = jax.random.split(key, 3)
    density = jax.random.normal(k1, (W, H, D), dtype=jnp.float32)          # drr.density.permute(2,1,0)
    mask = jax.random.randint(k2, (W, H, D), 0, 4, dtype=jnp.int32)        # drr.mask.permute(2,1,0)
    disp = 0.75 * jax.random.normal(k3, (1, D, H, W, 3), dtype=jnp.float32)

    warp = WarpPallas(density, mask, disp)
    warped_density, warped_mask = warp.forward()
    jax.block_until_ready((warped_density, warped_mask))

    # validate against a plain-JAX reference of the same grid_sample semantics
    grid = warp.normalize(warp.warp())[0]
    ref_dens, ref_mask = reference_forward(density, mask, grid)
    np.testing.assert_allclose(np.asarray(warped_density), np.asarray(ref_dens),
                               rtol=1e-4, atol=1e-4)
    assert np.array_equal(np.asarray(warped_mask), np.asarray(ref_mask))
    assert warped_density.shape == (D, H, W) and warped_density.dtype == jnp.float32
    assert warped_mask.shape == (D, H, W) and warped_mask.dtype == jnp.int32
    print("KERNEL_OK")
</pallas_src>

<mosaic_0001>
module attributes {stable_mosaic.version = 11 : i64} {
  func.func @_grid_sample_kernel(%arg0: i32, %arg1: memref<3x512xf32, #tpu.memory_space<vmem>>, %arg2: memref<2x128x16xf32, #tpu.memory_space<vmem>>, %arg3: memref<1x512xf32, #tpu.memory_space<vmem>>, %arg4: memref<1x512xf32, #tpu.memory_space<vmem>>) attributes {dimension_semantics = [#tpu.dimension_semantics<parallel>], iteration_bounds = array<i64: 4>, scalar_prefetch = 0 : i64, scratch_operands = 0 : i64, tpu.core_type = #tpu.core_type<tc>, window_params = [{transform_indices = @transform_0, window_bounds = array<i64: 3, 512>}, {pipeline_mode = #tpu.pipeline_mode<synchronous>, transform_indices = @transform_1, window_bounds = array<i64: 2, 128, 16>}, {transform_indices = @transform_2, window_bounds = array<i64: 1, 512>}, {transform_indices = @transform_3, window_bounds = array<i64: 1, 512>}]} {
    %c0 = arith.constant 0 : index
    %c0_0 = arith.constant 0 : index
    %0 = vector.load %arg1[%c0, %c0_0] : memref<3x512xf32, #tpu.memory_space<vmem>>, vector<3x512xf32>
    %1 = vector.extract_strided_slice %0 {offsets = [0, 0], sizes = [1, 512], strides = [1, 1]} : vector<3x512xf32> to vector<1x512xf32>
    %2 = vector.extract_strided_slice %0 {offsets = [1, 0], sizes = [1, 512], strides = [1, 1]} : vector<3x512xf32> to vector<1x512xf32>
    %3 = vector.extract_strided_slice %0 {offsets = [2, 0], sizes = [1, 512], strides = [1, 1]} : vector<3x512xf32> to vector<1x512xf32>
    %cst = arith.constant 1.000000e+00 : f32
    %4 = vector.broadcast %cst : f32 to vector<1x512xf32>
    %5 = arith.addf %1, %4 : vector<1x512xf32>
    %cst_1 = arith.constant 1.600000e+01 : f32
    %6 = vector.broadcast %cst_1 : f32 to vector<1x512xf32>
    %7 = arith.mulf %5, %6 : vector<1x512xf32>
    %cst_2 = arith.constant 1.000000e+00 : f32
    %8 = vector.broadcast %cst_2 : f32 to vector<1x512xf32>
    %9 = arith.subf %7, %8 : vector<1x512xf32>
    %cst_3 = arith.constant 5.000000e-01 : f32
    %10 = vector.broadcast %cst_3 : f32 to vector<1x512xf32>
    %11 = arith.mulf %9, %10 : vector<1x512xf32>
    %cst_4 = arith.constant 1.000000e+00 : f32
    %12 = vector.broadcast %cst_4 : f32 to vector<1x512xf32>
    %13 = arith.addf %2, %12 : vector<1x512xf32>
    %cst_5 = arith.constant 1.600000e+01 : f32
    %14 = vector.broadcast %cst_5 : f32 to vector<1x512xf32>
    %15 = arith.mulf %13, %14 : vector<1x512xf32>
    %cst_6 = arith.constant 1.000000e+00 : f32
    %16 = vector.broadcast %cst_6 : f32 to vector<1x512xf32>
    %17 = arith.subf %15, %16 : vector<1x512xf32>
    %cst_7 = arith.constant 5.000000e-01 : f32
    %18 = vector.broadcast %cst_7 : f32 to vector<1x512xf32>
    %19 = arith.mulf %17, %18 : vector<1x512xf32>
    %cst_8 = arith.constant 1.000000e+00 : f32
    %20 = vector.broadcast %cst_8 : f32 to vector<1x512xf32>
    %21 = arith.addf %3, %20 : vector<1x512xf32>
    %cst_9 = arith.constant 8.000000e+00 : f32
    %22 = vector.broadcast %cst_9 : f32 to vector<1x512xf32>
    %23 = arith.mulf %21, %22 : vector<1x512xf32>
    %cst_10 = arith.constant 1.000000e+00 : f32
    %24 = vector.broadcast %cst_10 : f32 to vector<1x512xf32>
    %25 = arith.subf %23, %24 : vector<1x512xf32>
    %cst_11 = arith.constant 5.000000e-01 : f32
    %26 = vector.broadcast %cst_11 : f32 to vector<1x512xf32>
    %27 = arith.mulf %25, %26 : vector<1x512xf32>
    %c0_12 = arith.constant 0 : index
    %c0_13 = arith.constant 0 : index
    %c0_14 = arith.constant 0 : index
    %28 = vector.load %arg2[%c0_12, %c0_13, %c0_14] : memref<2x128x16xf32, #tpu.memory_space<vmem>>, vector<1x128x16xf32>
    %29 = vector.shape_cast %28 : vector<1x128x16xf32> to vector<128x16xf32>
    %c1 = arith.constant 1 : index
    %c0_15 = arith.constant 0 : index
    %c0_16 = arith.constant 0 : index
    %30 = vector.load %arg2[%c1, %c0_15, %c0_16] : memref<2x128x16xf32, #tpu.memory_space<vmem>>, vector<1x128x16xf32>
    %31 = vector.shape_cast %30 : vector<1x128x16xf32> to vector<128x16xf32>
    %32 = tpu.iota {dimensions = array<i32: 0>} : vector<16x512xi32>
    %33 = tpu.iota {dimensions = array<i32: 0>} : vector<128x512xi32>
    %cst_17 = arith.constant 0.000000e+00 : f32
    %cst_18 = arith.constant 1.500000e+01 : f32
    %34 = vector.broadcast %cst_17 : f32 to vector<1x512xf32>
    %35 = arith.maximumf %34, %11 : vector<1x512xf32>
    %36 = vector.broadcast %cst_18 : f32 to vector<1x512xf32>
    %37 = arith.minimumf %36, %35 : vector<1x512xf32>
    %38 = math.floor %37 : vector<1x512xf32>
    %39 = arith.subf %37, %38 : vector<1x512xf32>
    %cst_19 = arith.constant 0.000000e+00 : f32
    %cst_20 = arith.constant 1.500000e+01 : f32
    %40 = vector.broadcast %cst_19 : f32 to vector<1x512xf32>
    %41 = arith.maximumf %40, %19 : vector<1x512xf32>
    %42 = vector.broadcast %cst_20 : f32 to vector<1x512xf32>
    %43 = arith.minimumf %42, %41 : vector<1x512xf32>
    %44 = math.floor %43 : vector<1x512xf32>
    %45 = arith.subf %43, %44 : vector<1x512xf32>
    %cst_21 = arith.constant 0.000000e+00 : f32
    %cst_22 = arith.constant 7.000000e+00 : f32
    %46 = vector.broadcast %cst_21 : f32 to vector<1x512xf32>
    %47 = arith.maximumf %46, %27 : vector<1x512xf32>
    %48 = vector.broadcast %cst_22 : f32 to vector<1x512xf32>
    %49 = arith.minimumf %48, %47 : vector<1x512xf32>
    %50 = math.floor %49 : vector<1x512xf32>
    %51 = arith.subf %49, %50 : vector<1x512xf32>
    %52 = arith.fptosi %38 : vector<1x512xf32> to vector<1x512xi32>
    %c1_i32 = arith.constant 1 : i32
    %53 = vector.broadcast %c1_i32 : i32 to vector<1x512xi32>
    %54 = arith.addi %52, %53 : vector<1x512xi32>
    %c15_i32 = arith.constant 15 : i32
    %55 = vector.broadcast %c15_i32 : i32 to vector<1x512xi32>
    %56 = arith.minsi %54, %55 : vector<1x512xi32>
    %57 = arith.fptosi %44 : vector<1x512xf32> to vector<1x512xi32>
    %c1_i32_23 = arith.constant 1 : i32
    %58 = vector.broadcast %c1_i32_23 : i32 to vector<1x512xi32>
    %59 = arith.addi %57, %58 : vector<1x512xi32>
    %c15_i32_24 = arith.constant 15 : i32
    %60 = vector.broadcast %c15_i32_24 : i32 to vector<1x512xi32>
    %61 = arith.minsi %59, %60 : vector<1x512xi32>
    %62 = arith.fptosi %50 : vector<1x512xf32> to vector<1x512xi32>
    %c1_i32_25 = arith.constant 1 : i32
    %63 = vector.broadcast %c1_i32_25 : i32 to vector<1x512xi32>
    %64 = arith.addi %62, %63 : vector<1x512xi32>
    %c7_i32 = arith.constant 7 : i32
    %65 = vector.broadcast %c7_i32 : i32 to vector<1x512xi32>
    %66 = arith.minsi %64, %65 : vector<1x512xi32>
    %67 = vector.broadcast %52 : vector<1x512xi32> to vector<16x512xi32>
    %68 = arith.cmpi eq, %32, %67 : vector<16x512xi32>
    %cst_26 = arith.constant 1.000000e+00 : f32
    %69 = vector.broadcast %cst_26 : f32 to vector<1x512xf32>
    %70 = arith.subf %69, %39 : vector<1x512xf32>
    %cst_27 = arith.constant 0.000000e+00 : f32
    %71 = vector.shape_cast %70 : vector<1x512xf32> to vector<1x512xf32>
    %72 = vector.broadcast %71 : vector<1x512xf32> to vector<16x512xf32>
    %73 = vector.broadcast %cst_27 : f32 to vector<16x512xf32>
    %74 = arith.select %68, %72, %73 : vector<16x512xi1>, vector<16x512xf32>
    %75 = vector.broadcast %56 : vector<1x512xi32> to vector<16x512xi32>
    %76 = arith.cmpi eq, %32, %75 : vector<16x512xi32>
    %cst_28 = arith.constant 0.000000e+00 : f32
    %77 = vector.shape_cast %39 : vector<1x512xf32> to vector<1x512xf32>
    %78 = vector.broadcast %77 : vector<1x512xf32> to vector<16x512xf32>
    %79 = vector.broadcast %cst_28 : f32 to vector<16x512xf32>
    %80 = arith.select %76, %78, %79 : vector<16x512xi1>, vector<16x512xf32>
    %81 = arith.addf %74, %80 : vector<16x512xf32>
    %cst_29 = arith.constant dense<0.000000e+00> : vector<128x512xf32>
    %82 = tpu.matmul %29, %81, %cst_29 {dimension_numbers = #tpu.dot_dimension_numbers<[1], [0], [0], [1], [0, 0, 1, 1], [], []>, precision = #tpu.contract_precision<fp32>} : vector<128x16xf32>, vector<16x512xf32>, vector<128x512xf32> -> vector<128x512xf32>
    %c16_i32 = arith.constant 16 : i32
    %83 = vector.broadcast %c16_i32 : i32 to vector<1x512xi32>
    %84 = arith.muli %62, %83 : vector<1x512xi32>
    %85 = arith.addi %84, %57 : vector<1x512xi32>
    %cst_30 = arith.constant 1.000000e+00 : f32
    %86 = vector.broadcast %cst_30 : f32 to vector<1x512xf32>
    %87 = arith.subf %86, %51 : vector<1x512xf32>
    %cst_31 = arith.constant 1.000000e+00 : f32
    %88 = vector.broadcast %cst_31 : f32 to vector<1x512xf32>
    %89 = arith.subf %88, %45 : vector<1x512xf32>
    %90 = arith.mulf %87, %89 : vector<1x512xf32>
    %c16_i32_32 = arith.constant 16 : i32
    %91 = vector.broadcast %c16_i32_32 : i32 to vector<1x512xi32>
    %92 = arith.muli %62, %91 : vector<1x512xi32>
    %93 = arith.addi %92, %61 : vector<1x512xi32>
    %cst_33 = arith.constant 1.000000e+00 : f32
    %94 = vector.broadcast %cst_33 : f32 to vector<1x512xf32>
    %95 = arith.subf %94, %51 : vector<1x512xf32>
    %96 = arith.mulf %95, %45 : vector<1x512xf32>
    %c16_i32_34 = arith.constant 16 : i32
    %97 = vector.broadcast %c16_i32_34 : i32 to vector<1x512xi32>
    %98 = arith.muli %66, %97 : vector<1x512xi32>
    %99 = arith.addi %98, %57 : vector<1x512xi32>
    %cst_35 = arith.constant 1.000000e+00 : f32
    %100 = vector.broadcast %cst_35 : f32 to vector<1x512xf32>
    %101 = arith.subf %100, %45 : vector<1x512xf32>
    %102 = arith.mulf %51, %101 : vector<1x512xf32>
    %c16_i32_36 = arith.constant 16 : i32
    %103 = vector.broadcast %c16_i32_36 : i32 to vector<1x512xi32>
    %104 = arith.muli %66, %103 : vector<1x512xi32>
    %105 = arith.addi %104, %61 : vector<1x512xi32>
    %106 = arith.mulf %51, %45 : vector<1x512xf32>
    %107 = vector.broadcast %85 : vector<1x512xi32> to vector<128x512xi32>
    %108 = arith.cmpi eq, %33, %107 : vector<128x512xi32>
    %cst_37 = arith.constant 0.000000e+00 : f32
    %109 = vector.shape_cast %90 : vector<1x512xf32> to vector<1x512xf32>
    %110 = vector.broadcast %109 : vector<1x512xf32> to vector<128x512xf32>
    %111 = vector.broadcast %cst_37 : f32 to vector<128x512xf32>
    %112 = arith.select %108, %110, %111 : vector<128x512xi1>, vector<128x512xf32>
    %113 = vector.broadcast %93 : vector<1x512xi32> to vector<128x512xi32>
    %114 = arith.cmpi eq, %33, %113 : vector<128x512xi32>
    %cst_38 = arith.constant 0.000000e+00 : f32
    %115 = vector.shape_cast %96 : vector<1x512xf32> to vector<1x512xf32>
    %116 = vector.broadcast %115 : vector<1x512xf32> to vector<128x512xf32>
    %117 = vector.broadcast %cst_38 : f32 to vector<128x512xf32>
    %118 = arith.select %114, %116, %117 : vector<128x512xi1>, vector<128x512xf32>
    %119 = arith.addf %112, %118 : vector<128x512xf32>
    %120 = vector.broadcast %99 : vector<1x512xi32> to vector<128x512xi32>
    %121 = arith.cmpi eq, %33, %120 : vector<128x512xi32>
    %cst_39 = arith.constant 0.000000e+00 : f32
    %122 = vector.shape_cast %102 : vector<1x512xf32> to vector<1x512xf32>
    %123 = vector.broadcast %122 : vector<1x512xf32> to vector<128x512xf32>
    %124 = vector.broadcast %cst_39 : f32 to vector<128x512xf32>
    %125 = arith.select %121, %123, %124 : vector<128x512xi1>, vector<128x512xf32>
    %126 = arith.addf %119, %125 : vector<128x512xf32>
    %127 = vector.broadcast %105 : vector<1x512xi32> to vector<128x512xi32>
    %128 = arith.cmpi eq, %33, %127 : vector<128x512xi32>
    %cst_40 = arith.constant 0.000000e+00 : f32
    %129 = vector.shape_cast %106 : vector<1x512xf32> to vector<1x512xf32>
    %130 = vector.broadcast %129 : vector<1x512xf32> to vector<128x512xf32>
    %131 = vector.broadcast %cst_40 : f32 to vector<128x512xf32>
    %132 = arith.select %128, %130, %131 : vector<128x512xi1>, vector<128x512xf32>
    %133 = arith.addf %126, %132 : vector<128x512xf32>
    %134 = arith.mulf %82, %133 : vector<128x512xf32>
    %cst_41 = arith.constant dense<0.000000e+00> : vector<512xf32>
    %135 = vector.multi_reduction <add>, %134, %cst_41 [0] : vector<128x512xf32> to vector<512xf32>
    %136 = vector.shape_cast %135 : vector<512xf32> to vector<1x512xf32>
    %c0_42 = arith.constant 0 : index
    %c0_43 = arith.constant 0 : index
    %137 = vector.load %arg3[%c0_42, %c0_43] : memref<1x512xf32, #tpu.memory_space<vmem>>, vector<1x512xf32>
    tpu.vector_store %arg3[%c0_42, %c0_43], %136 {strides = array<i32>} : memref<1x512xf32, #tpu.memory_space<vmem>>, vector<1x512xf32>,
    %138 = math.roundeven %11 : vector<1x512xf32>
    %139 = arith.fptosi %138 : vector<1x512xf32> to vector<1x512xi32>
    %140 = math.roundeven %19 : vector<1x512xf32>
    %141 = arith.fptosi %140 : vector<1x512xf32> to vector<1x512xi32>
    %142 = math.roundeven %27 : vector<1x512xf32>
    %143 = arith.fptosi %142 : vector<1x512xf32> to vector<1x512xi32>
    %144 = vector.broadcast %139 : vector<1x512xi32> to vector<16x512xi32>
    %145 = arith.cmpi eq, %32, %144 : vector<16x512xi32>
    %cst_44 = arith.constant 1.000000e+00 : f32
    %cst_45 = arith.constant 0.000000e+00 : f32
    %146 = vector.broadcast %cst_44 : f32 to vector<16x512xf32>
    %147 = vector.broadcast %cst_45 : f32 to vector<16x512xf32>
    %148 = arith.select %145, %146, %147 : vector<16x512xi1>, vector<16x512xf32>
    %cst_46 = arith.constant dense<0.000000e+00> : vector<128x512xf32>
    %149 = tpu.matmul %31, %148, %cst_46 {dimension_numbers = #tpu.dot_dimension_numbers<[1], [0], [0], [1], [0, 0, 1, 1], [], []>, precision = #tpu.contract_precision<fp32>} : vector<128x16xf32>, vector<16x512xf32>, vector<128x512xf32> -> vector<128x512xf32>
    %c0_i32 = arith.constant 0 : i32
    %150 = vector.broadcast %c0_i32 : i32 to vector<1x512xi32>
    %151 = arith.cmpi sge, %141, %150 : vector<1x512xi32>
    %c16_i32_47 = arith.constant 16 : i32
    %152 = vector.broadcast %c16_i32_47 : i32 to vector<1x512xi32>
    %153 = arith.cmpi slt, %141, %152 : vector<1x512xi32>
    %154 = arith.andi %151, %153 : vector<1x512xi1>
    %c0_i32_48 = arith.constant 0 : i32
    %155 = vector.broadcast %c0_i32_48 : i32 to vector<1x512xi32>
    %156 = arith.cmpi sge, %143, %155 : vector<1x512xi32>
    %157 = arith.andi %154, %156 : vector<1x512xi1>
    %c8_i32 = arith.constant 8 : i32
    %158 = vector.broadcast %c8_i32 : i32 to vector<1x512xi32>
    %159 = arith.cmpi slt, %143, %158 : vector<1x512xi32>
    %160 = arith.andi %157, %159 : vector<1x512xi1>
    %c16_i32_49 = arith.constant 16 : i32
    %161 = vector.broadcast %c16_i32_49 : i32 to vector<1x512xi32>
    %162 = arith.muli %143, %161 : vector<1x512xi32>
    %163 = arith.addi %162, %141 : vector<1x512xi32>
    %c-1_i32 = arith.constant -1 : i32
    %164 = vector.broadcast %c-1_i32 : i32 to vector<1x512xi32>
    %165 = arith.select %160, %163, %164 : vector<1x512xi1>, vector<1x512xi32>
    %166 = vector.broadcast %165 : vector<1x512xi32> to vector<128x512xi32>
    %167 = arith.cmpi eq, %33, %166 : vector<128x512xi32>
    %cst_50 = arith.constant 0.000000e+00 : f32
    %168 = vector.broadcast %cst_50 : f32 to vector<128x512xf32>
    %169 = arith.select %167, %149, %168 : vector<128x512xi1>, vector<128x512xf32>
    %cst_51 = arith.constant dense<0.000000e+00> : vector<512xf32>
    %170 = vector.multi_reduction <add>, %169, %cst_51 [0] : vector<128x512xf32> to vector<512xf32>
    %171 = vector.shape_cast %170 : vector<512xf32> to vector<1x512xf32>
    %c0_52 = arith.constant 0 : index
    %c0_53 = arith.constant 0 : index
    %172 = vector.load %arg4[%c0_52, %c0_53] : memref<1x512xf32, #tpu.memory_space<vmem>>, vector<1x512xf32>
    tpu.vector_store %arg4[%c0_52, %c0_53], %171 {strides = array<i32>} : memref<1x512xf32, #tpu.memory_space<vmem>>, vector<1x512xf32>,
    return
  }
  func.func @transform_0(%arg0: i32) -> (i32, i32) {
    %c0_i32 = arith.constant 0 : i32
    %c0_i32_0 = arith.constant 0 : i32
    return %c0_i32, %arg0 : i32, i32
  }
  func.func @transform_1(%arg0: i32) -> (i32, i32, i32) {
    %c0_i32 = arith.constant 0 : i32
    %c0_i32_0 = arith.constant 0 : i32
    %c0_i32_1 = arith.constant 0 : i32
    %c0_i32_2 = arith.constant 0 : i32
    return %c0_i32, %c0_i32_0, %c0_i32_1 : i32, i32, i32
  }
  func.func @transform_2(%arg0: i32) -> (i32, i32) {
    %c0_i32 = arith.constant 0 : i32
    %c0_i32_0 = arith.constant 0 : i32
    return %c0_i32, %arg0 : i32, i32
  }
  func.func @transform_3(%arg0: i32) -> (i32, i32) {
    %c0_i32 = arith.constant 0 : i32
    %c0_i32_0 = arith.constant 0 : i32
    return %c0_i32, %arg0 : i32, i32
  }
}

</mosaic_0001>

<bundles_post_ra>
// kernel: tpu_custom_call.1
= control target key start
LH: loop header
LB: loop body
LE: loop exit
PB: predicated region body
PF: predicated region fallthrough
CT: control target
= control target key end

     0   :  { %9 = vsyncpa [#allocation3], 0  ;;  %s11338_s0 = inlined_call_operand.vmem [shape: f32[3,2048], index: 0, kind: input, shape index: {}]   ;;  %s11339_s1 = inlined_call_operand.vmem [shape: f32[2,128,16], index: 1, kind: input, shape index: {}]   ;;  %s11340_s2 = inlined_call_operand.hbm [shape: f32[1,2048], index: 2, kind: output, shape index: {0}]   ;;  %s11341_s3 = inlined_call_operand.hbm [shape: f32[1,2048], index: 3, kind: output, shape index: {1}]  }
   0x1   :  { %11 = vsyncpa [#allocation3 + $0x1], 0 }
   0x2   :  { %12 = vsyncpa [#allocation5], 0 }
   0x3   :  { %14 = vsyncpa [#allocation5 + $0x1], 0  ;;  %s8104_s12 = smov 0   ;;  %s8106_s13 = smov 0  }
   0x4   :  { %s8108_s14 = smov 0   ;;  %s8110_s15 = smov 0  }
   0x5 LB: > { %s8125_s16 = sadd.s32 4294967295, %s8076_s15   ;;  %s7110_s17 = sadd.s32 4294967294, %s8076_s15   ;;  %s8076_s15 = sphi %s8110_s15, %s11891_s15   ;;  %s8072_s14 = sphi %s8108_s14, %s11890_s14   ;;  %s8068_s13 = sphi %s8106_s13, %s11889_s13   ;;  %s8064_s12 = sphi %s8104_s12, %s11888_s12  }
   0x6   : > { %s8129_s18 = sadd.s32 1, %s8076_s15   ;;  %s74_s19 = sadd.s32 1, %s8072_s14 }
   0x7   : > { %s71_s20 = ssub.s32 %s8076_s15, %s8129_s18  ;;  %p84_p0 = scmp.ne.s32.totalorder %s8072_s14, %s8068_s13 }
   0x8   : > { %p72_p1 = scmp.eq.s32.totalorder %s71_s20, 0  ;;  %p85_p2 = scmp.eq.s32.totalorder %s8125_s16, 3 }
   0x9   : > { %p90_p3 = scmp.ne.s32.totalorder %s8068_s13, %s8064_s12  ;;  %p91_p4 = scmp.eq.s32.totalorder %s7110_s17, 3 }
   0xa   : > { %s8140_s21 = scalar_select %p72_p1, %s8072_s14, %s74_s19  }
   0xb   : > { %p8142_p5 = por %p85_p2, %p84_p0  ;;  %p8146_p6 = por %p91_p4, %p90_p3 }
   0xc   : > { %p7113_p7 = scmp.ge.s32.totalorder %s8076_s15, 1  ;;  %p147_p8 = scmp.lt.s32.totalorder %s8076_s15, 5 }
   0xe   : > { %p148_p9 = pnand %p7113_p7, %p147_p8 }
  0x10   : > { %151 = sbr.rel (%p148_p9) target bundleno = 1101 (0x44d), region = 28 }
  0x17   : > { %s7116_s24 = sshll.u32 %s8125_s16, 2  ;;  %v11415_v0 = vmov 0.0   ;;  %v200_v7 = vld [vmem:[%s11339_s1] sm:$0xff]  ;;  %vm464_vm0 = vcmask 130048   ;;  %v201_v8 = vld [vmem:[%s11339_s1 + $0x8] sm:$0xff]  ;;  %v202_v11 = vld [vmem:[%s11339_s1 + $0x10] sm:$0xff]  ;;  %v11342_v14 = vlaneseq }
  0x18   : > { %p177_p10 = scmp.lt.s32.totalorder %s7116_s24, 15  ;;  %581 = vmatprep.mubr.f32.mxu0 %v11415_v0  ;;  %1807 = vmatprep.mubr.f32.mxu1 %v11415_v0  ;;  %v466_v12 = vsel %vm464_vm0, %v200_v7, 0  ;;  %v469_v16 = vsel %vm464_vm0, %v201_v8, 0  ;;  %v472_v17 = vsel %vm464_vm0, %v202_v11, 0  ;;  %v203_v21 = vld [vmem:[%s11339_s1 + $0x18] sm:$0xff]  ;;  %v204_v23 = vld [vmem:[%s11339_s1 + $0x20] sm:$0xff] }
  0x19   : > { %v8182_v20 = vand.u32 4294901760, %v466_v12  ;;  %v8187_v22 = vand.u32 4294901760, %v469_v16  ;;  %v8193_v24 = vshrl.u32 %v11342_v14, 7  ;;  %v8195_v27 = vand.u32 4294901760, %v472_v17  ;;  %v205_v28 = vld [vmem:[%s11339_s1 + $0x28] sm:$0xff]  ;;  %v206_v29 = vld [vmem:[%s11339_s1 + $0x30] sm:$0xff] }
  0x1a   : > { %s11893_s24 = smov (!%p177_p10, %s7116_s24), 15  ;;  %v475_v30 = vsel %vm464_vm0, %v203_v21, 0  ;;  %v478_v34 = vsel %vm464_vm0, %v204_v23, 0  ;;  %v8215_v37 = vsel %vm464_vm0, %v205_v28, 0  ;;  %v8218_v38 = vsel %vm464_vm0, %v206_v29, 0  ;;  %s10968_s17 = sand.u32 1, %s8068_s13  }
  0x1b   : > { %s7117_s25 = sshll.u32 %s11893_s24, 2  ;;  %11562 = vst [vmem:[#allocation12_spill] sm:$0xff] %v8193_v24  ;;  %v8205_v33 = vsub.f32 %v466_v12, %v8182_v20  ;;  %v8209_v35 = vadd.s32 8, %v8193_v24  ;;  %v8212_v36 = vsub.f32 %v469_v16, %v8187_v22  ;;  %v8223_v41 = vsub.s32 4, %v8193_v24  ;;  %s7114_s19 = sshll.u32 %s10968_s17, 2 }
  0x1c   : > { %s180_s28 = scalar_lea.vmem %s11338_s0, %s7117_s25  ;;  %v8226_v42 = vsub.f32 %v472_v17, %v8195_v27  ;;  %v8229_v43 = vsub.s32 0, %v8193_v24  ;;  %v8233_v46 = vand.u32 4294901760, %v475_v30  ;;  %v8243_v50 = vand.u32 4294901760, %v478_v34  ;;  %s10993_s20 = scalar_lea.vmem [#allocation2], %s7114_s19 }
  0x1d   : > { %v184_v1 = vld [vmem:[%s180_s28] sm:$0x77]  ;;  %v185_v2 = vld [vmem:[%s180_s28 + $0x8] sm:$0x77]  ;;  %11563 = vst [vmem:[#allocation13_spill] sm:$0xff] %v8209_v35  ;;  %11565 = vst [vmem:[#allocation15_spill] sm:$0xff] %v8223_v41 }
  0x1e   : > { %v8158_v3 = vadd.f32 1.0, %v184_v1  ;;  %v8160_v4 = vadd.f32 1.0, %v185_v2  ;;  %11566 = vst [vmem:[#allocation16_spill] sm:$0xff] %v8229_v43  ;;  %v8241_v49 = vand.u32 4294901760, %v8205_v33  ;;  %v8251_v53 = vand.u32 4294901760, %v8212_v36  ;;  %s7176_s24 = sshll.u32 %s8125_s16, 6 }
  0x1f   : > { %v8254_v54 = vand.u32 4294901760, %v8215_v37  ;;  %v8262_v58 = vand.u32 4294901760, %v8226_v42  ;;  %v8270_v62 = vsub.f32 %v475_v30, %v8233_v46  ;;  %v8292_v12 = vsub.f32 %v478_v34, %v8243_v50  ;;  %s11116_s27 = scalar_lea.hbm %s11340_s2, %s7176_s24  ;;  %s7005_s28 = sshll.u32 %s10993_s20, 4  ;;  %s7006_s28 = int_to_ptr.vmem [resolvable:$true] %s7005_s28 }
  0x20   : > { %11558 = vst [vmem:[#allocation8_spill] sm:$0xff] %v8158_v3  ;;  %11559 = vst [vmem:[#allocation9_spill] sm:$0xff] %v8160_v4  ;;  %v188_v5 = vmul.f32 16.0, %v8158_v3  ;;  %v189_v6 = vmul.f32 16.0, %v8160_v4  ;;  %v585_v2 = vsub.f32 %v8205_v33, %v8241_v49  ;;  %s6986_s29 = scalar_lea.sflag [#allocation3], %s10968_s17  ;;  %s7982_s30 = scalar_lea.vmem %s7006_s28, 64 }
  0x21   : > { %p7983_p11 = scmp.ne.s32.totalorder %s7006_s28, %s7982_s30  ;;  %s8081_s4 = smov [#allocation2]  }
  0x22   : > { %v7118_v9 = vadd.f32 -1.0, %v188_v5  ;;  %v7119_v10 = vadd.f32 -1.0, %v189_v6  ;;  %v8299_v23 = vand.u32 4294901760, %v585_v2  ;;  %s7986_s5 = sshll.u32 %s8081_s4, 4  ;;  %s7987_s5 = int_to_ptr.vmem [resolvable:$false] %s7986_s5 }
  0x23   : > { %p7984_p12 = pnand %p7983_p11, %p8142_p5  ;;  %s7988_s6 = scalar_lea.vmem %s7987_s5, 128 }
  0x24   : > { %v8174_v13 = vmul.f32 0.5, %v7118_v9  ;;  %v8176_v15 = vmul.f32 0.5, %v7119_v10  ;;  %p7989_p0 = scmp.lt.s32.totalorder %s7006_s28, %s7987_s5  ;;  %p7990_p1 = scmp.lt.s32.totalorder %s7988_s6, %s7982_s30 }
  0x25   : > { %p7985_p13 = pneg %p7984_p12 }
  0x26   : > { %11560 = vst [vmem:[#allocation10_spill] sm:$0xff] %v8174_v13  ;;  %11561 = vst [vmem:[#allocation11_spill] sm:$0xff] %v8176_v15  ;;  %v250_v18 = vmax.f32 %v8174_v13, 0.0  ;;  %v251_v19 = vmax.f32 %v8176_v15, 0.0  ;;  %p7991_p2 = por %p7990_p1, %p7989_p0 }
  0x28   : > { %v252_v25 = vmin.f32 %v250_v18, 15.0  ;;  %v253_v26 = vmin.f32 %v251_v19, 15.0  ;;  %p7992_p3 = pnand %p7991_p2, %p7985_p13 }
  0x2a   : > { %v254_v31 = vfloor.f32 %v252_v25  ;;  %v255_v32 = vfloor.f32 %v253_v26 }
  0x2c   : > { %v8220_v39 = vsub.f32 %v252_v25, %v254_v31  ;;  %v7914_v40 = vtrunc.f32 %v254_v31  ;;  %v8231_v44 = vsub.f32 %v253_v26, %v255_v32  ;;  %v7916_v45 = vtrunc.f32 %v255_v32 }
  0x2d   : > { %v596_v25 = vsub.f32 %v8212_v36, %v8251_v53 }
  0x2e   : > { %11564 = vst [vmem:[#allocation14_spill] sm:$0xff] %v8220_v39  ;;  %11567 = vst [vmem:[#allocation17_spill] sm:$0xff] %v8231_v44  ;;  %v8235_v47 = vcvt.f32.s32 %v7914_v40  ;;  %v8238_v48 = vsub.f32 1.0, %v8220_v39  ;;  %v8245_v51 = vcvt.f32.s32 %v7916_v45  ;;  %v8248_v52 = vsub.f32 1.0, %v8231_v44 }
  0x2f   : > { %v419_v59 = vrot.slane %v8220_v39, %v8223_v41  ;;  %v427_v9 = vrot.slane %v8231_v44, %v8223_v41 }
  0x30   : > { %11568 = vst [vmem:[#allocation18_spill] sm:$0xff] %v8235_v47  ;;  %11569 = vst [vmem:[#allocation19_spill] sm:$0xff] %v8238_v48  ;;  %v268_v55 = vadd.s32 1, %v8235_v47  ;;  %v289_v56 = vrot.slane %v8235_v47, %v8223_v41  ;;  %v333_v57 = vrot.slane %v8238_v48, %v8223_v41  ;;  %v269_v60 = vadd.s32 1, %v8245_v51 }
  0x31   : > { %11570 = vst [vmem:[#allocation20_spill] sm:$0xff] %v8245_v51  ;;  %11571 = vst [vmem:[#allocation21_spill] sm:$0xff] %v8248_v52  ;;  %v297_v61 = vrot.slane %v8245_v51, %v8223_v41  ;;  %v341_v1 = vrot.slane %v8248_v52, %v8223_v41  ;;  %v439_v10 = vrot.slane %v419_v59, %v8229_v43 }
  0x32   : > { %vm270_vm1 = vcmp.lt.s32.totalorder %v268_v55, 15  ;;  %v305_v63 = vrot.slane %v289_v56, %v8229_v43  ;;  %v353_v6 = vrot.slane %v333_v57, %v8229_v43  ;;  %vm272_vm2 = vcmp.lt.s32.totalorder %v269_v60, 15 }
  0x33   : > { %v8277_v5 = vsel %vm270_vm1, %v268_v55, 15  ;;  %v313_v7 = vrot.slane %v297_v61, %v8229_v43  ;;  %v8288_v11 = vsel %vm272_vm2, %v269_v60, 15  ;;  %v361_v17 = vrot.slane %v341_v1, %v8229_v43 }
  0x34   : > { %11572 = vst [vmem:[#allocation22_spill] sm:$0xff] %v8277_v5  ;;  %vm315_vm3 = vcmp.eq.s32.totalorder %v8193_v24, %v305_v63  ;;  %vm319_vm4 = vcmp.eq.s32.totalorder %v8209_v35, %v305_v63  ;;  %v377_v8 = vrot.slane %v8277_v5, %v8223_v41  ;;  %11573 = vst [vmem:[#allocation23_spill] sm:$0xff] %v8288_v11 }
  0x35   : > { %vm317_vm5 = vcmp.eq.s32.totalorder %v8193_v24, %v313_v7  ;;  %vm321_vm6 = vcmp.eq.s32.totalorder %v8209_v35, %v313_v7  ;;  %v385_v18 = vrot.slane %v8288_v11, %v8223_v41  ;;  %v363_v19 = vsel %vm315_vm3, %v353_v6, 0.0 }
  0x36   : > { %v393_v16 = vrot.slane %v377_v8, %v8229_v43  ;;  %v367_v21 = vsel %vm319_vm4, %v353_v6, 0.0  ;;  %v365_v26 = vsel %vm317_vm5, %v361_v17, 0.0  ;;  %v447_v28 = vrot.slane %v427_v9, %v8229_v43 }
  0x37   : > { %v369_v31 = vsel %vm321_vm6, %v361_v17, 0.0  ;;  %v401_v32 = vrot.slane %v385_v18, %v8229_v43  ;;  %v285_v45 = vrot.slane %v8235_v47, %v8229_v43  ;;  %v329_v55 = vrot.slane %v8238_v48, %v8229_v43 }
  0x38   : > { %vm403_vm7 = vcmp.eq.s32.totalorder %v8193_v24, %v393_v16  ;;  %vm407_vm8 = vcmp.eq.s32.totalorder %v8209_v35, %v393_v16  ;;  %v373_v56 = vrot.slane %v8277_v5, %v8229_v43  ;;  %v415_v57 = vrot.slane %v8220_v39, %v8229_v43 }
  0x39   : > { %v449_v29 = vsel %vm403_vm7, %v439_v10, 0.0  ;;  %v453_v30 = vsel %vm407_vm8, %v439_v10, 0.0  ;;  %vm405_vm9 = vcmp.eq.s32.totalorder %v8193_v24, %v401_v32  ;;  %vm409_vm10 = vcmp.eq.s32.totalorder %v8209_v35, %v401_v32 }
  0x3a   : > { %v457_v34 = vadd.f32 %v449_v29, %v363_v19  ;;  %v461_v40 = vadd.f32 %v453_v30, %v367_v21  ;;  %v451_v61 = vsel %vm405_vm9, %v447_v28, 0.0  ;;  %v455_v63 = vsel %vm409_vm10, %v447_v28, 0.0 }
  0x3b   : > { %v459_v1 = vadd.f32 %v451_v61, %v365_v26  ;;  %v463_v2 = vadd.f32 %v455_v63, %v369_v31  ;;  %v301_v6 = vrot.slane %v285_v45, %v8229_v43  ;;  %v349_v7 = vrot.slane %v329_v55, %v8229_v43 }
  0x3c   : > { %v513_v59 = vand.u32 4294901760, %v457_v34  ;;  %v517_v60 = vand.u32 4294901760, %v461_v40  ;;  %v389_v16 = vrot.slane %v373_v56, %v8229_v43  ;;  %v435_v30 = vrot.slane %v415_v57, %v8229_v43 }
  0x3d   : > { %v1739_v17 = vand.u32 4294901760, %v459_v1  ;;  %v1743_v18 = vand.u32 4294901760, %v463_v2  ;;  %vm314_vm11 = vcmp.eq.s32.totalorder %v8193_v24, %v301_v6  ;;  %vm318_vm12 = vcmp.eq.s32.totalorder %v8209_v35, %v301_v6 }
  0x3e   : > { %v8319_v8 = vpack.c.bf16 %v517_v60, %v513_v59  ;;  %v8321_v9 = vsub.f32 %v457_v34, %v513_v59  ;;  %v8323_v10 = vsub.f32 %v461_v40, %v517_v60  ;;  %v362_v19 = vsel %vm314_vm11, %v349_v7, 0.0 }
  0x3f   : > { %v366_v21 = vsel %vm318_vm12, %v349_v7, 0.0  ;;  %vm402_vm13 = vcmp.eq.s32.totalorder %v8193_v24, %v389_v16  ;;  %vm406_vm14 = vcmp.eq.s32.totalorder %v8209_v35, %v389_v16  ;;  %v8331_v26 = vpack.c.bf16 %v1743_v18, %v1739_v17 }
  0x40   : > { %7179 = vmatprep.subr.bf16.mxu0 %v8319_v8  ;;  %v8333_v28 = vsub.f32 %v459_v1, %v1739_v17  ;;  %v8335_v29 = vsub.f32 %v463_v2, %v1743_v18  ;;  %v293_v31 = vrot.slane %v8245_v51, %v8229_v43  ;;  %v337_v32 = vrot.slane %v8248_v52, %v8229_v43 }
  0x41   : > { %v381_v34 = vrot.slane %v8288_v11, %v8229_v43  ;;  %v423_v40 = vrot.slane %v8231_v44, %v8229_v43  ;;  %7203 = vmatprep.subr.bf16.mxu1 %v8331_v26  ;;  %v448_v45 = vsel %vm402_vm13, %v435_v30, 0.0  ;;  %v452_v55 = vsel %vm406_vm14, %v435_v30, 0.0  ;;  %v210_v11 = vld [vmem:[%s11339_s1 + $0x50] sm:$0xff] }
  0x42   : > { %v11344_v56 = vand.u32 4294901760, %v8321_v9  ;;  %v11343_v57 = vand.u32 4294901760, %v8323_v10  ;;  %v456_v59 = vadd.f32 %v448_v45, %v362_v19  ;;  %v460_v60 = vadd.f32 %v452_v55, %v366_v21 }
  0x43   : > { %v309_v61 = vrot.slane %v293_v31, %v8229_v43  ;;  %v357_v63 = vrot.slane %v337_v32, %v8229_v43  ;;  %v397_v1 = vrot.slane %v381_v34, %v8229_v43  ;;  %v443_v2 = vrot.slane %v423_v40, %v8229_v43 }
  0x44   : > { %v761_v6 = vsub.f32 %v8321_v9, %v11344_v56  ;;  %v773_v7 = vsub.f32 %v8323_v10, %v11343_v57  ;;  %v515_v16 = vand.u32 4294901760, %v456_v59  ;;  %v519_v17 = vand.u32 4294901760, %v460_v60 }
  0x45   : > { %vm316_vm15 = vcmp.eq.s32.totalorder %v8193_v24, %v309_v61  ;;  %vm320_vm1 = vcmp.eq.s32.totalorder %v8209_v35, %v309_v61  ;;  %vm404_vm2 = vcmp.eq.s32.totalorder %v8193_v24, %v397_v1  ;;  %vm408_vm3 = vcmp.eq.s32.totalorder %v8209_v35, %v397_v1 }
  0x46   : > { %v364_v18 = vsel %vm316_vm15, %v357_v63, 0.0  ;;  %v368_v19 = vsel %vm320_vm1, %v357_v63, 0.0  ;;  %v8363_v21 = vpack.c.bf16 %v519_v17, %v515_v16  ;;  %v8365_v30 = vsub.f32 %v456_v59, %v515_v16 }
  0x47   : > { %v8367_v31 = vsub.f32 %v460_v60, %v519_v17  ;;  %v450_v32 = vsel %vm404_vm2, %v443_v2, 0.0  ;;  %v454_v34 = vsel %vm408_vm3, %v443_v2, 0.0  ;;  %v762_v45 = vand.u32 4294901760, %v761_v6 }
  0x48   : > { %v458_v40 = vadd.f32 %v450_v32, %v364_v18  ;;  %v774_v55 = vand.u32 4294901760, %v773_v7  ;;  %7181 = vmatpush1.bf16.msra.mxu0 %v8363_v21  ;;  %v462_v61 = vadd.f32 %v454_v34, %v368_v19  ;;  %v11348_v63 = vand.u32 4294901760, %v8333_v28 }
  0x49   : > { %v11346_v14 = vand.u32 4294901760, %v8335_v29  ;;  %v11345_v1 = vand.u32 4294901760, %v8365_v30  ;;  %v11347_v59 = vand.u32 4294901760, %v8367_v31  ;;  %v8375_v60 = vand.u32 4294901760, %v8270_v62 }
  0x4a   : > { %v1741_v57 = vand.u32 4294901760, %v458_v40  ;;  %v7182_v56 = vpack.c.bf16 %v774_v55, %v762_v45  ;;  %v1745_v2 = vand.u32 4294901760, %v462_v61  ;;  %v1987_v6 = vsub.f32 %v8333_v28, %v11348_v63 }
  0x4b   : > { %v1999_v7 = vsub.f32 %v8335_v29, %v11346_v14  ;;  %v767_v16 = vsub.f32 %v8365_v30, %v11345_v1  ;;  %587 = vmatmul.mubr.f32.vlgmr.msra.gmra.mrb[0].mxu0 %v8299_v23  ;;  %v597_v18 = vand.u32 4294901760, %v596_v25  ;;  %v779_v19 = vsub.f32 %v8367_v31, %v11347_v59  ;;  %v207_v59 = vld [vmem:[%s11339_s1 + $0x38] sm:$0xff] }
  0x4c   : > { %v8386_v17 = vsub.f32 %v458_v40, %v1741_v57  ;;  %7183 = vmatprep.subr.bf16.mxu0 %v7182_v56  ;;  %v607_v32 = vsub.f32 %v8226_v42, %v8262_v58  ;;  %v8397_v34 = vpack.c.bf16 %v1745_v2, %v1741_v57  ;;  %v8399_v45 = vsub.f32 %v462_v61, %v1745_v2 }
  0x4d   : > { %592 = vmatprep.mubr.f32.mxu0 %v11415_v0  ;;  %v1988_v40 = vand.u32 4294901760, %v1987_v6  ;;  %v2000_v55 = vand.u32 4294901760, %v1999_v7  ;;  %v768_v1 = vand.u32 4294901760, %v767_v16  ;;  %v780_v14 = vand.u32 4294901760, %v779_v19 }
  0x4e   : > { %v11350_v25 = vand.u32 4294901760, %v8386_v17  ;;  %v8404_v56 = vand.u32 4294901760, %v8218_v38  ;;  %7205 = vmatpush1.bf16.msra.mxu1 %v8397_v34  ;;  %v11349_v61 = vand.u32 4294901760, %v8399_v45  ;;  %v618_v2 = vsub.f32 %v8270_v62, %v8375_v60 }
  0x4f   : > { %v7206_v57 = vpack.c.bf16 %v2000_v55, %v1988_v40  ;;  %v8414_v6 = vand.u32 4294901760, %v8292_v12  ;;  %598 = vmatmul.mubr.f32.gmra.mrb[2].mxu0 %v597_v18  ;;  %v7184_v7 = vpack.c.bf16 %v780_v14, %v768_v1  ;;  %v608_v19 = vand.u32 4294901760, %v607_v32  ;;  %v208_v14 = vld [vmem:[%s11339_s1 + $0x40] sm:$0xff] }
  0x50   : > { %v1993_v16 = vsub.f32 %v8386_v17, %v11350_v25  ;;  %v8421_v63 = vsub.f32 %v8215_v37, %v8254_v54  ;;  %v2005_v40 = vsub.f32 %v8399_v45, %v11349_v61  ;;  %603 = vmatprep.mubr.f32.mxu0 %v11415_v0  ;;  %v487_v55 = vsel %vm464_vm0, %v207_v59, 0 }
  0x51   : > { %7207 = vmatprep.subr.bf16.mxu1 %v7206_v57  ;;  %1813 = vmatmul.mubr.f32.vlgmr.msra.gmra.mrb[0].mxu1 %v8299_v23  ;;  %v619_v32 = vand.u32 4294901760, %v618_v2  ;;  %v629_v57 = vsub.f32 %v8292_v12, %v8414_v6  ;;  %v8440_v59 = vsub.f32 %v8218_v38, %v8404_v56  ;;  %v8442_v25 = vand.u32 4294901760, %v487_v55  ;;  %v209_v2 = vld [vmem:[%s11339_s1 + $0x48] sm:$0xff] }
  0x52   : > { %7185 = vmatpush1.bf16.msra.mxu0 %v7184_v7  ;;  %v1994_v1 = vand.u32 4294901760, %v1993_v16  ;;  %1818 = vmatprep.mubr.f32.mxu1 %v11415_v0  ;;  %v2006_v37 = vand.u32 4294901760, %v2005_v40  ;;  %v8436_v61 = vand.u32 4294901760, %v8421_v63  ;;  %v490_v23 = vsel %vm464_vm0, %v208_v14, 0 }
  0x53   : > { %609 = vmatmul.mubr.f32.gmra.mrb[4].mxu0 %v608_v19  ;;  %v8450_v16 = vand.u32 4294901760, %v490_v23  ;;  %v7186_v38 = vpack.c.bf16 %v8323_v10, %v8321_v9  ;;  %v7210_v40 = vpack.c.bf16 %v8335_v29, %v8333_v28  ;;  %v630_v14 = vand.u32 4294901760, %v629_v57 }
  0x54   : > { %v7208_v7 = vpack.c.bf16 %v2006_v37, %v1994_v1  ;;  %614 = vmatprep.mubr.f32.mxu0 %v11415_v0  ;;  %v8459_v1 = vand.u32 4294901760, %v8440_v59  ;;  %v8462_v37 = vsub.f32 %v487_v55, %v8442_v25 }
  0x55   : > { %1824 = vmatmul.mubr.f32.gmra.mrb[2].mxu1 %v597_v18  ;;  %v640_v18 = vsub.f32 %v8421_v63, %v8436_v61  ;;  %7187 = vmatprep.subr.bf16.mxu0 %v7186_v38  ;;  %v8475_v55 = vsub.f32 %v490_v23, %v8450_v16  ;;  %v211_v23 = vld [vmem:[%s11339_s1 + $0x58] sm:$0xff] }
  0x56   : > { %7209 = vmatpush1.bf16.msra.mxu1 %v7208_v7  ;;  %1829 = vmatprep.mubr.f32.mxu1 %v11415_v0  ;;  %v493_v7 = vsel %vm464_vm0, %v209_v2, 0  ;;  %v651_v38 = vsub.f32 %v8440_v59, %v8459_v1  ;;  %v8480_v44 = vand.u32 4294901760, %v8462_v37 }
  0x57   : > { %620 = vmatmul.mubr.f32.gmra.mrb[6].mxu0 %v619_v32  ;;  %7211 = vmatprep.subr.bf16.mxu1 %v7210_v40  ;;  %v641_v2 = vand.u32 4294901760, %v640_v18  ;;  %v8482_v57 = vand.u32 4294901760, %v493_v7  ;;  %v8491_v40 = vand.u32 4294901760, %v8475_v55 }
  0x58   : > { %625 = vmatprep.mubr.f32.mxu0 %v11415_v0  ;;  %v652_v18 = vand.u32 4294901760, %v651_v38  ;;  %v662_v52 = vsub.f32 %v8462_v37, %v8480_v44 }
  0x59   : > { %1835 = vmatmul.mubr.f32.gmra.mrb[4].mxu1 %v608_v19  ;;  %v496_v19 = vsel %vm464_vm0, %v210_v11, 0  ;;  %v8496_v51 = vsub.f32 %v493_v7, %v8482_v57  ;;  %v499_v11 = vsel %vm464_vm0, %v211_v23, 0  ;;  %v673_v38 = vsub.f32 %v8475_v55, %v8491_v40 }
  0x5a   : > { %1840 = vmatprep.mubr.f32.mxu1 %v11415_v0  ;;  %v8498_v39 = vand.u32 4294901760, %v496_v19  ;;  %v663_v5 = vand.u32 4294901760, %v662_v52  ;;  %v8514_v47 = vand.u32 4294901760, %v499_v11 }
  0x5b   : > { %631 = vmatmul.mubr.f32.gmra.mrb[8].mxu0 %v630_v14  ;;  %v8509_v7 = vand.u32 4294901760, %v8496_v51  ;;  %v674_v52 = vand.u32 4294901760, %v673_v38 }
  0x5c   : > { %636 = vmatprep.mubr.f32.mxu0 %v11415_v0  ;;  %v8512_v48 = vsub.f32 %v496_v19, %v8498_v39  ;;  %v8529_v35 = vsub.f32 %v499_v11, %v8514_v47 }
  0x5d   : > { %1846 = vmatmul.mubr.f32.gmra.mrb[6].mxu1 %v619_v32  ;;  %v212_v32 = vld [vmem:[%s11339_s1 + $0x60] sm:$0xff]  ;;  %11574 = vst [vmem:[#allocation24_spill] sm:$0xff] %v8509_v7  ;;  %v684_v19 = vsub.f32 %v8496_v51, %v8509_v7 }
  0x5e   : > { %1851 = vmatprep.mubr.f32.mxu1 %v11415_v0  ;;  %v502_v23 = vsel %vm464_vm0, %v212_v32, 0  ;;  %v8526_v3 = vand.u32 4294901760, %v8512_v48  ;;  %v8543_v11 = vand.u32 4294901760, %v8529_v35 }
  0x5f   : > { %642 = vmatmul.mubr.f32.gmra.mrb[10].mxu0 %v641_v2  ;;  %v8531_v24 = vand.u32 4294901760, %v502_v23  ;;  %v685_v38 = vand.u32 4294901760, %v684_v19 }
  0x60   : > { %647 = vmatprep.mubr.f32.mxu0 %v11415_v0  ;;  %11575 = vst [vmem:[#allocation25_spill] sm:$0xff] %v8526_v3  ;;  %11576 = vst [vmem:[#allocation26_spill] sm:$0xff] %v8543_v11 }
  0x61   : > { %1857 = vmatmul.mubr.f32.gmra.mrb[8].mxu1 %v630_v14  ;;  %v213_v14 = vld [vmem:[%s11339_s1 + $0x68] sm:$0xff]  ;;  %v8546_v43 = vsub.f32 %v502_v23, %v8531_v24  ;;  %v706_v23 = vsub.f32 %v8529_v35, %v8543_v11 }
  0x62   : > { %1862 = vmatprep.mubr.f32.mxu1 %v11415_v0  ;;  %v505_v4 = vsel %vm464_vm0, %v213_v14, 0  ;;  %v695_v14 = vsub.f32 %v8512_v48, %v8526_v3 }
  0x63   : > { %653 = vmatmul.mubr.f32.gmra.mrb[12].mxu0 %v652_v18  ;;  %v8538_v32 = vand.u32 4294901760, %v505_v4  ;;  %v8561_v3 = vand.u32 4294901760, %v8546_v43 }
  0x64   : > { %658 = vmatprep.mubr.f32.mxu0 %v11415_v0  ;;  %v696_v13 = vand.u32 4294901760, %v695_v14 }
  0x65   : > { %1868 = vmatmul.mubr.f32.gmra.mrb[10].mxu1 %v641_v2  ;;  %v214_v2 = vld [vmem:[%s11339_s1 + $0x70] sm:$0xff]  ;;  %v8555_v19 = vsub.f32 %v505_v4, %v8538_v32  ;;  %11577 = vst [vmem:[#allocation27_spill] sm:$0xff] %v8561_v3  ;;  %v707_v4 = vand.u32 4294901760, %v706_v23 }
  0x66   : > { %1873 = vmatprep.mubr.f32.mxu1 %v11415_v0  ;;  %v508_v15 = vsel %vm464_vm0, %v214_v2, 0  ;;  %v717_v2 = vsub.f32 %v8546_v43, %v8561_v3 }
  0x67   : > { %664 = vmatmul.mubr.f32.gmra.mrb[14].mxu0 %v663_v5  ;;  %v8563_v7 = vand.u32 4294901760, %v508_v15  ;;  %v8572_v14 = vand.u32 4294901760, %v8555_v19 }
  0x68   : > { %669 = vmatprep.mubr.f32.mxu0 %v11415_v0 }
  0x69   : > { %1879 = vmatmul.mubr.f32.gmra.mrb[12].mxu1 %v652_v18  ;;  %v215_v18 = vld [vmem:[%s11339_s1 + $0x78] sm:$0xff]  ;;  %v728_v11 = vsub.f32 %v8555_v19, %v8572_v14 }
  0x6a   : > { %1884 = vmatprep.mubr.f32.mxu1 %v11415_v0  ;;  %v511_v41 = vsel %vm464_vm0, %v215_v18, 0  ;;  %v8575_v18 = vsub.f32 %v508_v15, %v8563_v7 }
  0x6b   : > { %675 = vmatmul.mubr.f32.gmra.mrb[16].mxu0 %v674_v52  ;;  %v729_v15 = vand.u32 4294901760, %v728_v11 }
  0x6c   : > { %680 = vmatprep.mubr.f32.mxu0 %v11415_v0  ;;  %v8582_v23 = vand.u32 4294901760, %v8575_v18 }
  0x6d   : > { %1890 = vmatmul.mubr.f32.gmra.mrb[14].mxu1 %v663_v5  ;;  %v8567_v5 = vand.u32 4294901760, %v511_v41 }
  0x6e   : > { %1895 = vmatprep.mubr.f32.mxu1 %v11415_v0 }
  0x6f   : > { %686 = vmatmul.mubr.f32.gmra.mrb[18].mxu0 %v685_v38  ;;  %v8585_v3 = vsub.f32 %v511_v41, %v8567_v5 }
  0x70   : > { %691 = vmatprep.mubr.f32.mxu0 %v11415_v0 }
  0x71   : > { %1901 = vmatmul.mubr.f32.gmra.mrb[16].mxu1 %v674_v52  ;;  %v718_v52 = vand.u32 4294901760, %v717_v2  ;;  %v8592_v2 = vand.u32 4294901760, %v8585_v3 }
  0x72   : > { %1906 = vmatprep.mubr.f32.mxu1 %v11415_v0 }
  0x73   : > { %697 = vmatmul.mubr.f32.gmra.mrb[20].mxu0 %v696_v13 }
  0x74   : > { %702 = vmatprep.mubr.f32.mxu0 %v11415_v0 }
  0x75   : > { %1912 = vmatmul.mubr.f32.gmra.mrb[18].mxu1 %v685_v38  ;;  %v739_v38 = vsub.f32 %v8575_v18, %v8582_v23 }
  0x76   : > { %1917 = vmatprep.mubr.f32.mxu1 %v11415_v0 }
  0x77   : > { %708 = vmatmul.mubr.f32.gmra.mrb[22].mxu0 %v707_v4  ;;  %v740_v41 = vand.u32 4294901760, %v739_v38  ;;  %v11581_v38 = vand.u32 4294901760, %v8323_v10  ;;  %v11583_v10 = vand.u32 4294901760, %v8335_v29 }
  0x78   : > { %713 = vmatprep.mubr.f32.mxu0 %v11415_v0 }
  0x79   : > { %1923 = vmatmul.mubr.f32.gmra.mrb[20].mxu1 %v696_v13  ;;  %v750_v13 = vsub.f32 %v8585_v3, %v8592_v2 }
  0x7a   : > { %1928 = vmatprep.mubr.f32.mxu1 %v11415_v0 }
  0x7b   : > { %719 = vmatmul.mubr.f32.gmra.mrb[24].mxu0 %v718_v52  ;;  %v751_v11 = vand.u32 4294901760, %v750_v13 }
  0x7c   : > { %724 = vmatprep.mubr.f32.mxu0 %v11415_v0 }
  0x7d   : > { %1934 = vmatmul.mubr.f32.gmra.mrb[22].mxu1 %v707_v4  ;;  %v11578_v4 = vpack.c.bf16 %v8367_v31, %v8365_v30 }
  0x7e   : > { %1939 = vmatprep.mubr.f32.mxu1 %v11415_v0 }
  0x7f   : > { %730 = vmatmul.mubr.f32.gmra.mrb[26].mxu0 %v729_v15 }
  0x80   : > { %735 = vmatprep.mubr.f32.mxu0 %v11415_v0 }
  0x81   : > { %1945 = vmatmul.mubr.f32.gmra.mrb[24].mxu1 %v718_v52  ;;  %v11579_v52 = vpack.c.bf16 %v8399_v45, %v8386_v17 }
  0x82   : > { %1950 = vmatprep.mubr.f32.mxu1 %v11415_v0 }
  0x83   : > { %741 = vmatmul.mubr.f32.gmra.mrb[28].mxu0 %v740_v41 }
  0x84   : > { %746 = vmatprep.mubr.f32.mxu0 %v11415_v0 }
  0x85   : > { %1956 = vmatmul.mubr.f32.gmra.mrb[26].mxu1 %v729_v15  ;;  %v11580_v15 = vand.u32 4294901760, %v8321_v9  ;;  %v11582_v9 = vand.u32 4294901760, %v8333_v28  ;;  %v11597_v28 = vld [vmem:[#allocation16_spill] sm:$0xff] }
  0x86   : > { %1961 = vmatprep.mubr.f32.mxu1 %v11415_v0 }
  0x87   : > { %752 = vmatmul.mubr.f32.gmra.mrb[30].mxu0 %v751_v11  ;;  %v7218_v13 = vpack.c.bf16 %v11583_v10, %v11582_v9 }
  0x88   : > { %842 = vmatprep.mubr.f32.mxu0 %v11415_v0 }
  0x89   : > { %1967 = vmatmul.mubr.f32.gmra.mrb[28].mxu1 %v740_v41  ;;  %v7194_v41 = vpack.c.bf16 %v11581_v38, %v11580_v15 }
  0x8a   : > { %1972 = vmatprep.mubr.f32.mxu1 %v11415_v0 }
  0x8b   : > { %844 = vmatmul.mubr.f32.vlgmr.msra.gmra.mrb[0].mxu0 %v8182_v20 }
  0x8c   : > { %849 = vmatprep.mubr.f32.mxu0 %v11415_v0  ;;  %7189 = vmatpush1.bf16.msra.mxu0 %v11578_v4 }
  0x8d   : > { %1978 = vmatmul.mubr.f32.gmra.mrb[30].mxu1 %v751_v11  ;;  %7191 = vmatprep.subr.bf16.mxu0 %v8319_v8 }
  0x8e   : > { %2068 = vmatprep.mubr.f32.mxu1 %v11415_v0 }
  0x8f   : > { %851 = vmatmul.mubr.f32.gmra.mrb[2].mxu0 %v8187_v22 }
  0x90   : > { %856 = vmatprep.mubr.f32.mxu0 %v11415_v0 }
  0x91   : > { %2070 = vmatmul.mubr.f32.vlgmr.msra.gmra.mrb[0].mxu1 %v8182_v20 }
  0x92   : > { %2075 = vmatprep.mubr.f32.mxu1 %v11415_v0  ;;  %7213 = vmatpush1.bf16.msra.mxu1 %v11579_v52 }
  0x93   : > { %858 = vmatmul.mubr.f32.gmra.mrb[4].mxu0 %v8195_v27  ;;  %7215 = vmatprep.subr.bf16.mxu1 %v8331_v26 }
  0x94   : > { %863 = vmatprep.mubr.f32.mxu0 %v11415_v0 }
  0x95   : > { %2077 = vmatmul.mubr.f32.gmra.mrb[2].mxu1 %v8187_v22 }
  0x96   : > { %2082 = vmatprep.mubr.f32.mxu1 %v11415_v0 }
  0x97   : > { %865 = vmatmul.mubr.f32.gmra.mrb[6].mxu0 %v8233_v46 }
  0x98   : > { %870 = vmatprep.mubr.f32.mxu0 %v11415_v0 }
  0x99   : > { %2084 = vmatmul.mubr.f32.gmra.mrb[4].mxu1 %v8195_v27 }
  0x9a   : > { %2089 = vmatprep.mubr.f32.mxu1 %v11415_v0 }
  0x9b   : > { %872 = vmatmul.mubr.f32.gmra.mrb[8].mxu0 %v8243_v50 }
  0x9c   : > { %877 = vmatprep.mubr.f32.mxu0 %v11415_v0 }
  0x9d   : > { %2091 = vmatmul.mubr.f32.gmra.mrb[6].mxu1 %v8233_v46 }
  0x9e   : > { %2096 = vmatprep.mubr.f32.mxu1 %v11415_v0 }
  0x9f   : > { %879 = vmatmul.mubr.f32.gmra.mrb[10].mxu0 %v8254_v54 }
  0xa0   : > { %884 = vmatprep.mubr.f32.mxu0 %v11415_v0 }
  0xa1   : > { %2098 = vmatmul.mubr.f32.gmra.mrb[8].mxu1 %v8243_v50 }
  0xa2   : > { %2103 = vmatprep.mubr.f32.mxu1 %v11415_v0 }
  0xa3   : > { %886 = vmatmul.mubr.f32.gmra.mrb[12].mxu0 %v8404_v56 }
  0xa4   : > { %891 = vmatprep.mubr.f32.mxu0 %v11415_v0 }
  0xa5   : > { %2105 = vmatmul.mubr.f32.gmra.mrb[10].mxu1 %v8254_v54 }
  0xa6   : > { %2110 = vmatprep.mubr.f32.mxu1 %v11415_v0 }
  0xa7   : > { %893 = vmatmul.mubr.f32.gmra.mrb[14].mxu0 %v8442_v25 }
  0xa8   : > { %898 = vmatprep.mubr.f32.mxu0 %v11415_v0 }
  0xa9   : > { %2112 = vmatmul.mubr.f32.gmra.mrb[12].mxu1 %v8404_v56 }
  0xaa   : > { %2117 = vmatprep.mubr.f32.mxu1 %v11415_v0 }
  0xab   : > { %900 = vmatmul.mubr.f32.gmra.mrb[16].mxu0 %v8450_v16 }
  0xac   : > { %905 = vmatprep.mubr.f32.mxu0 %v11415_v0 }
  0xad   : > { %2119 = vmatmul.mubr.f32.gmra.mrb[14].mxu1 %v8442_v25 }
  0xae   : > { %2124 = vmatprep.mubr.f32.mxu1 %v11415_v0 }
  0xaf   : > { %907 = vmatmul.mubr.f32.gmra.mrb[18].mxu0 %v8482_v57 }
  0xb0   : > { %912 = vmatprep.mubr.f32.mxu0 %v11415_v0 }
  0xb1   : > { %2126 = vmatmul.mubr.f32.gmra.mrb[16].mxu1 %v8450_v16 }
  0xb2   : > { %2131 = vmatprep.mubr.f32.mxu1 %v11415_v0 }
  0xb3   : > { %914 = vmatmul.mubr.f32.gmra.mrb[20].mxu0 %v8498_v39 }
  0xb4   : > { %919 = vmatprep.mubr.f32.mxu0 %v11415_v0 }
  0xb5   : > { %2133 = vmatmul.mubr.f32.gmra.mrb[18].mxu1 %v8482_v57 }
  0xb6   : > { %2138 = vmatprep.mubr.f32.mxu1 %v11415_v0 }
  0xb7   : > { %921 = vmatmul.mubr.f32.gmra.mrb[22].mxu0 %v8514_v47 }
  0xb8   : > { %926 = vmatprep.mubr.f32.mxu0 %v11415_v0 }
  0xb9   : > { %2140 = vmatmul.mubr.f32.gmra.mrb[20].mxu1 %v8498_v39 }
  0xba   : > { %2145 = vmatprep.mubr.f32.mxu1 %v11415_v0 }
  0xbb   : > { %928 = vmatmul.mubr.f32.gmra.mrb[24].mxu0 %v8531_v24 }
  0xbc   : > { %933 = vmatprep.mubr.f32.mxu0 %v11415_v0 }
  0xbd   : > { %2147 = vmatmul.mubr.f32.gmra.mrb[22].mxu1 %v8514_v47 }
  0xbe   : > { %2152 = vmatprep.mubr.f32.mxu1 %v11415_v0 }
  0xbf   : > { %935 = vmatmul.mubr.f32.gmra.mrb[26].mxu0 %v8538_v32 }
  0xc0   : > { %940 = vmatprep.mubr.f32.mxu0 %v11415_v0 }
  0xc1   : > { %2154 = vmatmul.mubr.f32.gmra.mrb[24].mxu1 %v8531_v24 }
  0xc2   : > { %2159 = vmatprep.mubr.f32.mxu1 %v11415_v0 }
  0xc3   : > { %942 = vmatmul.mubr.f32.gmra.mrb[28].mxu0 %v8563_v7 }
  0xc4   : > { %947 = vmatprep.mubr.f32.mxu0 %v11415_v0 }
  0xc5   : > { %2161 = vmatmul.mubr.f32.gmra.mrb[26].mxu1 %v8538_v32 }
  0xc6   : > { %2166 = vmatprep.mubr.f32.mxu1 %v11415_v0 }
  0xc7   : > { %949 = vmatmul.mubr.f32.gmra.mrb[30].mxu0 %v8567_v5 }
  0xc8   : > { %1027 = vmatprep.mubr.f32.mxu0 %v11415_v0 }
  0xc9   : > { %2168 = vmatmul.mubr.f32.gmra.mrb[28].mxu1 %v8563_v7 }
  0xca   : > { %2173 = vmatprep.mubr.f32.mxu1 %v11415_v0 }
  0xcb   : > { %1030 = vmatmul.mubr.f32.vlgmr.msra.gmra.mrb[0].mxu0 %v8205_v33 }
  0xcc   : > { %1035 = vmatprep.mubr.f32.mxu0 %v11415_v0  ;;  %7193 = vmatpush1.bf16.msra.mxu0 %v8363_v21 }
  0xcd   : > { %2175 = vmatmul.mubr.f32.gmra.mrb[30].mxu1 %v8567_v5  ;;  %7195 = vmatprep.subr.bf16.mxu0 %v7194_v41 }
  0xce   : > { %2253 = vmatprep.mubr.f32.mxu1 %v11415_v0 }
  0xcf   : > { %1038 = vmatmul.mubr.f32.gmra.mrb[2].mxu0 %v8212_v36 }
  0xd0   : > { %1043 = vmatprep.mubr.f32.mxu0 %v11415_v0 }
  0xd1   : > { %2256 = vmatmul.mubr.f32.vlgmr.msra.gmra.mrb[0].mxu1 %v8205_v33  ;;  %v11584_v33 = vand.u32 4294901760, %v8365_v30 }
  0xd2   : > { %2261 = vmatprep.mubr.f32.mxu1 %v11415_v0  ;;  %7217 = vmatpush1.bf16.msra.mxu1 %v8397_v34 }
  0xd3   : > { %1046 = vmatmul.mubr.f32.gmra.mrb[4].mxu0 %v8226_v42  ;;  %7219 = vmatprep.subr.bf16.mxu1 %v7218_v13 }
  0xd4   : > { %1051 = vmatprep.mubr.f32.mxu0 %v11415_v0 }
  0xd5   : > { %2264 = vmatmul.mubr.f32.gmra.mrb[2].mxu1 %v8212_v36 }
  0xd6   : > { %2269 = vmatprep.mubr.f32.mxu1 %v11415_v0 }
  0xd7   : > { %1054 = vmatmul.mubr.f32.gmra.mrb[6].mxu0 %v8270_v62 }
  0xd8   : > { %1059 = vmatprep.mubr.f32.mxu0 %v11415_v0 }
  0xd9   : > { %2272 = vmatmul.mubr.f32.gmra.mrb[4].mxu1 %v8226_v42  ;;  %v11586_v42 = vand.u32 4294901760, %v8386_v17  ;;  %v11600_v17 = vmov 0 }
  0xda   : > { %2277 = vmatprep.mubr.f32.mxu1 %v11415_v0 }
  0xdb   : > { %1062 = vmatmul.mubr.f32.gmra.mrb[8].mxu0 %v8292_v12 }
  0xdc   : > { %1067 = vmatprep.mubr.f32.mxu0 %v11415_v0 }
  0xdd   : > { %2280 = vmatmul.mubr.f32.gmra.mrb[6].mxu1 %v8270_v62  ;;  %v11594_v62 = vld [vmem:[#allocation15_spill] sm:$0xff] }
  0xde   : > { %2285 = vmatprep.mubr.f32.mxu1 %v11415_v0 }
  0xdf   : > { %1070 = vmatmul.mubr.f32.gmra.mrb[10].mxu0 %v8421_v63 }
  0xe0   : > { %1075 = vmatprep.mubr.f32.mxu0 %v11415_v0 }
  0xe1   : > { %2288 = vmatmul.mubr.f32.gmra.mrb[8].mxu1 %v8292_v12 }
  0xe2   : > { %2293 = vmatprep.mubr.f32.mxu1 %v11415_v0 }
  0xe3   : > { %1078 = vmatmul.mubr.f32.gmra.mrb[12].mxu0 %v8440_v59 }
  0xe4   : > { %1083 = vmatprep.mubr.f32.mxu0 %v11415_v0 }
  0xe5   : > { %2296 = vmatmul.mubr.f32.gmra.mrb[10].mxu1 %v8421_v63  ;;  %v11599_v63 = vld [vmem:[#allocation13_spill] sm:$0xff] }
  0xe6   : > { %2301 = vmatprep.mubr.f32.mxu1 %v11415_v0 }
  0xe7   : > { %1086 = vmatmul.mubr.f32.gmra.mrb[14].mxu0 %v8462_v37 }
  0xe8   : > { %1091 = vmatprep.mubr.f32.mxu0 %v11415_v0 }
  0xe9   : > { %2304 = vmatmul.mubr.f32.gmra.mrb[12].mxu1 %v8440_v59 }
  0xea   : > { %2309 = vmatprep.mubr.f32.mxu1 %v11415_v0 }
  0xeb   : > { %1094 = vmatmul.mubr.f32.gmra.mrb[16].mxu0 %v8475_v55 }
  0xec   : > { %1099 = vmatprep.mubr.f32.mxu0 %v11415_v0 }
  0xed   : > { %2312 = vmatmul.mubr.f32.gmra.mrb[14].mxu1 %v8462_v37 }
  0xee   : > { %2317 = vmatprep.mubr.f32.mxu1 %v11415_v0 }
  0xef   : > { %1102 = vmatmul.mubr.f32.gmra.mrb[18].mxu0 %v8496_v51 }
  0xf0   : > { %1107 = vmatprep.mubr.f32.mxu0 %v11415_v0 }
  0xf1   : > { %2320 = vmatmul.mubr.f32.gmra.mrb[16].mxu1 %v8475_v55 }
  0xf2   : > { %2325 = vmatprep.mubr.f32.mxu1 %v11415_v0 }
  0xf3   : > { %1110 = vmatmul.mubr.f32.gmra.mrb[20].mxu0 %v8512_v48 }
  0xf4   : > { %1115 = vmatprep.mubr.f32.mxu0 %v11415_v0 }
  0xf5   : > { %2328 = vmatmul.mubr.f32.gmra.mrb[18].mxu1 %v8496_v51  ;;  %v11590_v51 = vld [vmem:[#allocation26_spill] sm:$0xff] }
  0xf6   : > { %2333 = vmatprep.mubr.f32.mxu1 %v11415_v0 }
  0xf7   : > { %1118 = vmatmul.mubr.f32.gmra.mrb[22].mxu0 %v8529_v35 }
  0xf8   : > { %1123 = vmatprep.mubr.f32.mxu0 %v11415_v0 }
  0xf9   : > { %2336 = vmatmul.mubr.f32.gmra.mrb[20].mxu1 %v8512_v48 }
  0xfa   : > { %2341 = vmatprep.mubr.f32.mxu1 %v11415_v0 }
  0xfb   : > { %1126 = vmatmul.mubr.f32.gmra.mrb[24].mxu0 %v8546_v43 }
  0xfc   : > { %1131 = vmatprep.mubr.f32.mxu0 %v11415_v0 }
  0xfd   : > { %2344 = vmatmul.mubr.f32.gmra.mrb[22].mxu1 %v8529_v35  ;;  %v11585_v35 = vand.u32 4294901760, %v8367_v31  ;;  %v11598_v31 = vld [vmem:[#allocation12_spill] sm:$0xff] }
  0xfe   : > { %2349 = vmatprep.mubr.f32.mxu1 %v11415_v0 }
  0xff   : > { %1134 = vmatmul.mubr.f32.gmra.mrb[26].mxu0 %v8555_v19  ;;  %v7196_v36 = vpack.c.bf16 %v11585_v35, %v11584_v33  ;;  %v11610_v33 = vmov 0 }
 0x100   : > { %1139 = vmatprep.mubr.f32.mxu0 %v11415_v0 }
 0x101   : > { %2352 = vmatmul.mubr.f32.gmra.mrb[24].mxu1 %v8546_v43  ;;  %v11587_v43 = vand.u32 4294901760, %v8399_v45  ;;  %v11391_v45 = vmov 1.0|1.0  }
 0x102   : > { %2357 = vmatprep.mubr.f32.mxu1 %v11415_v0 }
 0x103   : > { %1142 = vmatmul.mubr.f32.gmra.mrb[28].mxu0 %v8575_v18  ;;  %v7220_v48 = vpack.c.bf16 %v11587_v43, %v11586_v42 }
 0x104   : > { %1147 = vmatprep.mubr.f32.mxu0 %v11415_v0 }
 0x105   : > { %2360 = vmatmul.mubr.f32.gmra.mrb[26].mxu1 %v8555_v19 }
 0x106   : > { %2365 = vmatprep.mubr.f32.mxu1 %v11415_v0 }
 0x107   : > { %1150 = vmatmul.mubr.f32.gmra.mrb[30].mxu0 %v8585_v3 }
 0x108   : > { %1224 = vmatprep.mubr.f32.mxu0 %v11415_v0 }
 0x109   : > { %2368 = vmatmul.mubr.f32.gmra.mrb[28].mxu1 %v8575_v18 }
 0x10a   : > { %2373 = vmatprep.mubr.f32.mxu1 %v11415_v0 }
 0x10b   : > { %1228 = vmatmul.mubr.f32.vlgmr.msra.gmra.mrb[0].mxu0 %v8241_v49 }
 0x10c   : > { %1233 = vmatprep.mubr.f32.mxu0 %v11415_v0  ;;  %7197 = vmatpush1.bf16.msra.mxu0 %v7196_v36 }
 0x10d   : > { %2376 = vmatmul.mubr.f32.gmra.mrb[30].mxu1 %v8585_v3  ;;  %7199 = vmatprep.subr.bf16.mxu0 %v8319_v8  ;;  %v11588_v3 = vld [vmem:[#allocation24_spill] sm:$0xff]  ;;  %v11595_v8 = vld [vmem:[#allocation11_spill] sm:$0xff] }
 0x10e   : > { %2450 = vmatprep.mubr.f32.mxu1 %v11415_v0 }
 0x10f   : > { %1237 = vmatmul.mubr.f32.gmra.mrb[2].mxu0 %v8251_v53 }
 0x110   : > { %1242 = vmatprep.mubr.f32.mxu0 %v11415_v0 }
 0x111   : > { %2454 = vmatmul.mubr.f32.vlgmr.msra.gmra.mrb[0].mxu1 %v8241_v49  ;;  %v11589_v49 = vld [vmem:[#allocation25_spill] sm:$0xff] }
 0x112   : > { %2459 = vmatprep.mubr.f32.mxu1 %v11415_v0  ;;  %7221 = vmatpush1.bf16.msra.mxu1 %v7220_v48  ;;  %v11613_v48 = vmov 0 }
 0x113   : > { %1246 = vmatmul.mubr.f32.gmra.mrb[4].mxu0 %v8262_v58  ;;  %7223 = vmatprep.subr.bf16.mxu1 %v8331_v26  ;;  %v8820_v26 = vcvt.f32.s32 %v11595_v8 }
 0x114   : > { %1251 = vmatprep.mubr.f32.mxu0 %v11415_v0 }
 0x115   : > { %2463 = vmatmul.mubr.f32.gmra.mrb[2].mxu1 %v8251_v53  ;;  %v11592_v53 = vld [vmem:[#allocation10_spill] sm:$0xff]  ;;  %11596 = vst [vmem:[#allocation25_spill] sm:$0xff] %v8820_v26  ;;  %v4184_v30 = vrot.slane %v8820_v26, %v11594_v62  ;;  %v4180_v15 = vrot.slane %v8820_v26, %v11597_v28 }
 0x116   : > { %2468 = vmatprep.mubr.f32.mxu1 %v11415_v0 }
 0x117   : > { %1255 = vmatmul.mubr.f32.gmra.mrb[6].mxu0 %v8375_v60  ;;  %v4196_v13 = vrot.slane %v4180_v15, %v11597_v28 }
 0x118   : > { %1260 = vmatprep.mubr.f32.mxu0 %v11415_v0 }
 0x119   : > { %2472 = vmatmul.mubr.f32.gmra.mrb[4].mxu1 %v8262_v58  ;;  %v8809_v58 = vcvt.f32.s32 %v11592_v53  ;;  %vm4203_vm13 = vcmp.eq.s32.totalorder %v11598_v31, %v4196_v13  ;;  %vm4207_vm14 = vcmp.eq.s32.totalorder %v11599_v63, %v4196_v13 }
 0x11a   : > { %2477 = vmatprep.mubr.f32.mxu1 %v11415_v0  ;;  %vm9008_vm15 = vmpackc.low %vm4207_vm14, %vm4203_vm13 }
 0x11b   : > { %1264 = vmatmul.mubr.f32.gmra.mrb[8].mxu0 %v8414_v6  ;;  %11593 = vst [vmem:[#allocation24_spill] sm:$0xff] %v8809_v58  ;;  %v4176_v12 = vrot.slane %v8809_v58, %v11594_v62  ;;  %v4172_v19 = vrot.slane %v8809_v58, %v11597_v28  ;;  %v11614_v48 = vsel %vm9008_vm15, 4294967295, %v11613_v48 }
 0x11c   : > { %1269 = vmatprep.mubr.f32.mxu0 %v11415_v0  ;;  %11615 = vst [vmem:[#allocation29_spill] sm:$0xff] %v11614_v48 }
 0x11d   : > { %2481 = vmatmul.mubr.f32.gmra.mrb[6].mxu1 %v8375_v60  ;;  %v8825_v29 = vrot.slane %v4176_v12, %v11597_v28  ;;  %v8840_v60 = vrot.slane %v4184_v30, %v11597_v28  ;;  %v4188_v11 = vrot.slane %v4172_v19, %v11597_v28  ;;  %v7129_v30 = vld [vmem:[%s11339_s1 + $0xb8] sm:$0xff] }
 0x11e   : > { %2486 = vmatprep.mubr.f32.mxu1 %v11415_v0  ;;  %v4239_v62 = vsel %vm464_vm0, %v7129_v30, 0 }
 0x11f   : > { %1273 = vmatmul.mubr.f32.gmra.mrb[10].mxu0 %v8436_v61  ;;  %vm4202_vm4 = vcmp.eq.s32.totalorder %v11598_v31, %v8825_v29  ;;  %vm4206_vm5 = vcmp.eq.s32.totalorder %v11599_v63, %v8825_v29  ;;  %vm4204_vm7 = vcmp.eq.s32.totalorder %v11598_v31, %v8840_v60  ;;  %vm4208_vm8 = vcmp.eq.s32.totalorder %v11599_v63, %v8840_v60  ;;  %v7131_v29 = vld [vmem:[%s11339_s1 + $0xc8] sm:$0xff] }
 0x120   : > { %1278 = vmatprep.mubr.f32.mxu0 %v11415_v0  ;;  %vm8849_vm6 = vmpackc.low %vm4206_vm5, %vm4202_vm4  ;;  %v4216_v37 = vsel %vm4208_vm8, 1.0, %v11415_v0  ;;  %vm4201_vm10 = vcmp.eq.s32.totalorder %v11598_v31, %v4188_v11  ;;  %vm4205_vm11 = vcmp.eq.s32.totalorder %v11599_v63, %v4188_v11  ;;  %v9235_v48 = vand.u32 4294901760, %v4239_v62 }
 0x121   : > { %2490 = vmatmul.mubr.f32.gmra.mrb[8].mxu1 %v8414_v6  ;;  %v11601_v17 = vsel %vm8849_vm6, 4294967295, %v11600_v17  ;;  %vm8873_vm9 = vmpackc.low %vm4208_vm8, %vm4204_vm7  ;;  %v8954_v18 = vsub.f32 %v4216_v37, %v4216_v37  ;;  %v4209_v43 = vsel %vm4201_vm10, 1.0, %v11415_v0 }
 0x122   : > { %2495 = vmatprep.mubr.f32.mxu1 %v11415_v0  ;;  %11602 = vst [vmem:[#allocation26_spill] sm:$0xff] %v11601_v17  ;;  %vm8990_vm12 = vmpackc.low %vm4205_vm11, %vm4201_vm10  ;;  %v9020_v53 = vsub.f32 %v4209_v43, %v4209_v43 }
 0x123   : > { %1282 = vmatmul.mubr.f32.gmra.mrb[12].mxu0 %v8459_v1  ;;  %11609 = vst [vmem:[#allocation16_spill] sm:$0xff] %v8954_v18  ;;  %v11387_v52 = vand.u32 4294901760, %v8954_v18  ;;  %v11611_v33 = vsel %vm8990_vm12, 4294967295, %v11610_v33  ;;  %11642 = vst [vmem:[#allocation42_spill] sm:$0xff] %v9235_v48 }
 0x124   : > { %1287 = vmatprep.mubr.f32.mxu0 %v11415_v0  ;;  %11612 = vst [vmem:[#allocation28_spill] sm:$0xff] %v11611_v33  ;;  %11616 = vst [vmem:[#allocation30_spill] sm:$0xff] %v9020_v53 }
 0x125   : > { %2499 = vmatmul.mubr.f32.gmra.mrb[10].mxu1 %v8436_v61  ;;  %v4214_v61 = vsel %vm4206_vm5, 1.0, %v11415_v0  ;;  %v5720_v10 = vsub.f32 %v8954_v18, %v11387_v52  ;;  %v11636_v52 = vld [vmem:[#allocation20_spill] sm:$0xff] }
 0x126   : > { %2504 = vmatprep.mubr.f32.mxu1 %v11415_v0  ;;  %v8932_v59 = vsub.f32 %v4214_v61, %v4214_v61 }
 0x127   : > { %1291 = vmatmul.mubr.f32.gmra.mrb[14].mxu0 %v8480_v44  ;;  %v5721_v42 = vand.u32 4294901760, %v5720_v10 }
 0x128   : > { %1296 = vmatprep.mubr.f32.mxu0 %v11415_v0  ;;  %11607 = vst [vmem:[#allocation15_spill] sm:$0xff] %v8932_v59 }
 0x129   : > { %2508 = vmatmul.mubr.f32.gmra.mrb[12].mxu1 %v8459_v1  ;;  %v4212_v1 = vsel %vm4204_vm7, 1.0, %v11415_v0 }
 0x12a   : > { %2513 = vmatprep.mubr.f32.mxu1 %v11415_v0 }
 0x12b   : > { %1300 = vmatmul.mubr.f32.gmra.mrb[16].mxu0 %v8491_v40 }
 0x12c   : > { %1305 = vmatprep.mubr.f32.mxu0 %v11415_v0 }
 0x12d   : > { %2517 = vmatmul.mubr.f32.gmra.mrb[14].mxu1 %v8480_v44  ;;  %v11591_v44 = vld [vmem:[#allocation27_spill] sm:$0xff] }
 0x12e   : > { %2522 = vmatprep.mubr.f32.mxu1 %v11415_v0 }
 0x12f   : > { %1309 = vmatmul.mubr.f32.gmra.mrb[18].mxu0 %v11588_v3 }
 0x130   : > { %1314 = vmatprep.mubr.f32.mxu0 %v11415_v0 }
 0x131   : > { %2526 = vmatmul.mubr.f32.gmra.mrb[16].mxu1 %v8491_v40  ;;  %v11389_v40 = vand.u32 4294901760, %v8932_v59 }
 0x132   : > { %2531 = vmatprep.mubr.f32.mxu1 %v11415_v0 }
 0x133   : > { %1318 = vmatmul.mubr.f32.gmra.mrb[20].mxu0 %v11589_v49 }
 0x134   : > { %1323 = vmatprep.mubr.f32.mxu0 %v11415_v0 }
 0x135   : > { %2535 = vmatmul.mubr.f32.gmra.mrb[18].mxu1 %v11588_v3 }
 0x136   : > { %2540 = vmatprep.mubr.f32.mxu1 %v11415_v0 }
 0x137   : > { %1327 = vmatmul.mubr.f32.gmra.mrb[22].mxu0 %v11590_v51 }
 0x138   : > { %1332 = vmatprep.mubr.f32.mxu0 %v11415_v0 }
 0x139   : > { %2544 = vmatmul.mubr.f32.gmra.mrb[20].mxu1 %v11589_v49  ;;  %v4213_v49 = vsel %vm4205_vm11, 1.0, %v11415_v0 }
 0x13a   : > { %2549 = vmatprep.mubr.f32.mxu1 %v11415_v0  ;;  %v9027_v12 = vsub.f32 %v4213_v49, %v4213_v49 }
 0x13b   : > { %1336 = vmatmul.mubr.f32.gmra.mrb[24].mxu0 %v11591_v44 }
 0x13c   : > { %1341 = vmatprep.mubr.f32.mxu0 %v11415_v0  ;;  %11617 = vst [vmem:[#allocation31_spill] sm:$0xff] %v9027_v12 }
 0x13d   : > { %2553 = vmatmul.mubr.f32.gmra.mrb[22].mxu1 %v11590_v51  ;;  %v4211_v51 = vsel %vm4203_vm13, 1.0, %v11415_v0 }
 0x13e   : > { %2558 = vmatprep.mubr.f32.mxu1 %v11415_v0  ;;  %v9029_v8 = vsub.f32 %v4211_v51, %v4211_v51 }
 0x13f   : > { %1345 = vmatmul.mubr.f32.gmra.mrb[26].mxu0 %v8572_v14 }
 0x140   : > { %1350 = vmatprep.mubr.f32.mxu0 %v11415_v0  ;;  %11618 = vst [vmem:[#allocation32_spill] sm:$0xff] %v9029_v8 }
 0x141   : > { %2562 = vmatmul.mubr.f32.gmra.mrb[24].mxu1 %v11591_v44  ;;  %v4215_v44 = vsel %vm4207_vm14, 1.0, %v11415_v0 }
 0x142   : > { %2567 = vmatprep.mubr.f32.mxu1 %v11415_v0  ;;  %v9031_v28 = vsub.f32 %v4215_v44, %v4215_v44 }
 0x143   : > { %1354 = vmatmul.mubr.f32.gmra.mrb[28].mxu0 %v8582_v23 }
 0x144   : > { %1359 = vmatprep.mubr.f32.mxu0 %v11415_v0  ;;  %11619 = vst [vmem:[#allocation33_spill] sm:$0xff] %v9031_v28 }
 0x145   : > { %2571 = vmatmul.mubr.f32.gmra.mrb[26].mxu1 %v8572_v14  ;;  %v8952_v14 = vsub.f32 %v4212_v1, %v4212_v1 }
 0x146   : > { %2576 = vmatprep.mubr.f32.mxu1 %v11415_v0 }
 0x147   : > { %1363 = vmatmul.mubr.f32.gmra.mrb[30].mxu0 %v8592_v2  ;;  %11608 = vst [vmem:[#allocation11_spill] sm:$0xff] %v8952_v14  ;;  %v11388_v4 = vand.u32 4294901760, %v8952_v14 }
 0x148   : > { %1445 = vmatprep.mubr.f32.mxu0 %v11415_v0 }
 0x149   : > { %2580 = vmatmul.mubr.f32.gmra.mrb[28].mxu1 %v8582_v23  ;;  %v5710_v9 = vsub.f32 %v8952_v14, %v11388_v4 }
 0x14a   : > { %2585 = vmatprep.mubr.f32.mxu1 %v11415_v0 }
 0x14b   : > { %1447 = vmatmul.mubr.f32.vlgmr.msra.gmra.mrb[0].mxu0 %v8182_v20  ;;  %v5711_v36 = vand.u32 4294901760, %v5710_v9 }
 0x14c   : > { %1452 = vmatprep.mubr.f32.mxu0 %v11415_v0  ;;  %7201 = vmatpush1.bf16.msra.mxu0 %v8363_v21  ;;  %v11603_v21 = vmov 0 }
 0x14d   : > { %2589 = vmatmul.mubr.f32.gmra.mrb[30].mxu1 %v8592_v2  ;;  %7227 = vmatprep.subr.msk.bf16.mxu0 %vm8849_vm6, %v11391_v45  ;;  %v11604_v21 = vsel %vm8873_vm9, 4294967295, %v11603_v21  ;;  %v4518_v2 = vsub.f32 %v8932_v59, %v11389_v40  ;;  %v7254_v3 = vpack.c.bf16 %v5721_v42, %v5711_v36 }
 0x14e   : > { %2671 = vmatprep.mubr.f32.mxu1 %v11415_v0  ;;  %11605 = vst [vmem:[#allocation27_spill] sm:$0xff] %v11604_v21 }
 0x14f   : > { %1454 = vmatmul.mubr.f32.gmra.mrb[2].mxu0 %v8187_v22  ;;  %v4519_v41 = vand.u32 4294901760, %v4518_v2 }
 0x150   : > { %1459 = vmatprep.mubr.f32.mxu0 %v11415_v0 }
 0x151   : > { %2673 = vmatmul.mubr.f32.vlgmr.msra.gmra.mrb[0].mxu1 %v8182_v20 }
 0x152   : > { %2678 = vmatprep.mubr.f32.mxu1 %v11415_v0  ;;  %7225 = vmatpush1.bf16.msra.mxu1 %v8397_v34  ;;  %v4210_v34 = vsel %vm4202_vm4, 1.0, %v11415_v0 }
 0x153   : > { %1461 = vmatmul.mubr.f32.gmra.mrb[4].mxu0 %v8195_v27  ;;  %7251 = vmatprep.subr.msk.bf16.mxu1 %vm8873_vm9, %v11391_v45  ;;  %v8930_v6 = vsub.f32 %v4210_v34, %v4210_v34  ;;  %v11621_v34 = vld [vmem:[#allocation9_spill] sm:$0xff] }
 0x154   : > { %1466 = vmatprep.mubr.f32.mxu0 %v11415_v0  ;;  %v195_v61 = vmul.f32 8.0, %v11621_v34 }
 0x155   : > { %2680 = vmatmul.mubr.f32.gmra.mrb[2].mxu1 %v8187_v22  ;;  %11606 = vst [vmem:[#allocation10_spill] sm:$0xff] %v8930_v6  ;;  %v11390_v55 = vand.u32 4294901760, %v8930_v6 }
 0x156   : > { %2685 = vmatprep.mubr.f32.mxu1 %v11415_v0 }
 0x157   : > { %1468 = vmatmul.mubr.f32.gmra.mrb[6].mxu0 %v8233_v46  ;;  %v4508_v23 = vsub.f32 %v8930_v6, %v11390_v55 }
 0x158   : > { %1473 = vmatprep.mubr.f32.mxu0 %v11415_v0 }
 0x159   : > { %2687 = vmatmul.mubr.f32.gmra.mrb[4].mxu1 %v8195_v27  ;;  %v4509_v38 = vand.u32 4294901760, %v4508_v23 }
 0x15a   : > { %2692 = vmatprep.mubr.f32.mxu1 %v11415_v0 }
 0x15b   : > { %1475 = vmatmul.mubr.f32.gmra.mrb[8].mxu0 %v8243_v50  ;;  %v7230_v35 = vpack.c.bf16 %v4519_v41, %v4509_v38  ;;  %v7124_v38 = vld [vmem:[%s11339_s1 + $0x90] sm:$0xff] }
 0x15c   : > { %1480 = vmatprep.mubr.f32.mxu0 %v11415_v0  ;;  %v4224_v13 = vsel %vm464_vm0, %v7124_v38, 0  ;;  %v11634_v38 = vld [vmem:[#allocation22_spill] sm:$0xff] }
 0x15d   : > { %2694 = vmatmul.mubr.f32.gmra.mrb[6].mxu1 %v8233_v46  ;;  %v9103_v42 = vand.u32 4294901760, %v4224_v13 }
 0x15e   : > { %2699 = vmatprep.mubr.f32.mxu1 %v11415_v0 }
 0x15f   : > { %1482 = vmatmul.mubr.f32.gmra.mrb[10].mxu0 %v8254_v54  ;;  %11628 = vst [vmem:[#allocation38_spill] sm:$0xff] %v9103_v42  ;;  %v9124_v44 = vsub.f32 %v4224_v13, %v9103_v42 }
 0x160   : > { %1487 = vmatprep.mubr.f32.mxu0 %v11415_v0 }
 0x161   : > { %2701 = vmatmul.mubr.f32.gmra.mrb[8].mxu1 %v8243_v50  ;;  %11630 = vst [vmem:[#allocation40_spill] sm:$0xff] %v9124_v44  ;;  %v9161_v55 = vand.u32 4294901760, %v9124_v44 }
 0x162   : > { %2706 = vmatprep.mubr.f32.mxu1 %v11415_v0 }
 0x163   : > { %1489 = vmatmul.mubr.f32.gmra.mrb[12].mxu0 %v8404_v56 }
 0x164   : > { %1494 = vmatprep.mubr.f32.mxu0 %v11415_v0 }
 0x165   : > { %2708 = vmatmul.mubr.f32.gmra.mrb[10].mxu1 %v8254_v54 }
 0x166   : > { %2713 = vmatprep.mubr.f32.mxu1 %v11415_v0 }
 0x167   : > { %1496 = vmatmul.mubr.f32.gmra.mrb[14].mxu0 %v8442_v25 }
 0x168   : > { %1501 = vmatprep.mubr.f32.mxu0 %v11415_v0 }
 0x169   : > { %2715 = vmatmul.mubr.f32.gmra.mrb[12].mxu1 %v8404_v56 }
 0x16a   : > { %2720 = vmatprep.mubr.f32.mxu1 %v11415_v0 }
 0x16b   : > { %1503 = vmatmul.mubr.f32.gmra.mrb[16].mxu0 %v8450_v16 }
 0x16c   : > { %1508 = vmatprep.mubr.f32.mxu0 %v11415_v0 }
 0x16d   : > { %2722 = vmatmul.mubr.f32.gmra.mrb[14].mxu1 %v8442_v25 }
 0x16e   : > { %2727 = vmatprep.mubr.f32.mxu1 %v11415_v0 }
 0x16f   : > { %1510 = vmatmul.mubr.f32.gmra.mrb[18].mxu0 %v8482_v57 }
 0x170   : > { %1515 = vmatprep.mubr.f32.mxu0 %v11415_v0 }
 0x171   : > { %2729 = vmatmul.mubr.f32.gmra.mrb[16].mxu1 %v8450_v16 }
 0x172   : > { %2734 = vmatprep.mubr.f32.mxu1 %v11415_v0 }
 0x173   : > { %1517 = vmatmul.mubr.f32.gmra.mrb[20].mxu0 %v8498_v39 }
 0x174   : > { %1522 = vmatprep.mubr.f32.mxu0 %v11415_v0 }
 0x175   : > { %2736 = vmatmul.mubr.f32.gmra.mrb[18].mxu1 %v8482_v57 }
 0x176   : > { %2741 = vmatprep.mubr.f32.mxu1 %v11415_v0 }
 0x177   : > { %1524 = vmatmul.mubr.f32.gmra.mrb[22].mxu0 %v8514_v47 }
 0x178   : > { %1529 = vmatprep.mubr.f32.mxu0 %v11415_v0 }
 0x179   : > { %2743 = vmatmul.mubr.f32.gmra.mrb[20].mxu1 %v8498_v39 }
 0x17a   : > { %2748 = vmatprep.mubr.f32.mxu1 %v11415_v0 }
 0x17b   : > { %1531 = vmatmul.mubr.f32.gmra.mrb[24].mxu0 %v8531_v24 }
 0x17c   : > { %1536 = vmatprep.mubr.f32.mxu0 %v11415_v0 }
 0x17d   : > { %2750 = vmatmul.mubr.f32.gmra.mrb[22].mxu1 %v8514_v47 }
 0x17e   : > { %2755 = vmatprep.mubr.f32.mxu1 %v11415_v0 }
 0x17f   : > { %1538 = vmatmul.mubr.f32.gmra.mrb[26].mxu0 %v8538_v32 }
 0x180   : > { %1543 = vmatprep.mubr.f32.mxu0 %v11415_v0 }
 0x181   : > { %2757 = vmatmul.mubr.f32.gmra.mrb[24].mxu1 %v8531_v24 }
 0x182   : > { %2762 = vmatprep.mubr.f32.mxu1 %v11415_v0 }
 0x183   : > { %1545 = vmatmul.mubr.f32.gmra.mrb[28].mxu0 %v8563_v7 }
 0x184   : > { %1550 = vmatprep.mubr.f32.mxu0 %v11415_v0 }
 0x185   : > { %2764 = vmatmul.mubr.f32.gmra.mrb[26].mxu1 %v8538_v32 }
 0x186   : > { %2769 = vmatprep.mubr.f32.mxu1 %v11415_v0 }
 0x187   : > { %1552 = vmatmul.mubr.f32.gmra.mrb[30].mxu0 %v8567_v5 }
 0x188   : > { %1626 = vmatprep.mubr.f32.mxu0 %v11415_v0 }
 0x189   : > { %2771 = vmatmul.mubr.f32.gmra.mrb[28].mxu1 %v8563_v7 }
 0x18a   : > { %2776 = vmatprep.mubr.f32.mxu1 %v11415_v0 }
 0x18b   : > { %1628 = vmatmul.mubr.f32.vlgmr.msra.gmra.mrb[0].mxu0 %v8182_v20 }
 0x18c   : > { %1633 = vmatprep.mubr.f32.mxu0 %v11415_v0  ;;  %7229 = vmatpush1.bf16.msk.msra.mxu0 %vm8990_vm12, %v11391_v45 }
 0x18d   : > { %2778 = vmatmul.mubr.f32.gmra.mrb[30].mxu1 %v8567_v5  ;;  %7231 = vmatprep.subr.bf16.mxu0 %v7230_v35 }
 0x18e   : > { %2852 = vmatprep.mubr.f32.mxu1 %v11415_v0 }
 0x18f   : > { %1635 = vmatmul.mubr.f32.gmra.mrb[2].mxu0 %v8187_v22 }
 0x190   : > { %1640 = vmatprep.mubr.f32.mxu0 %v11415_v0 }
 0x191   : > { %2854 = vmatmul.mubr.f32.vlgmr.msra.gmra.mrb[0].mxu1 %v8182_v20  ;;  %v7135_v20 = vld [vmem:[%s11339_s1 + $0xe8] sm:$0xff] }
 0x192   : > { %2859 = vmatprep.mubr.f32.mxu1 %v11415_v0  ;;  %7253 = vmatpush1.bf16.msk.msra.mxu1 %vm9008_vm15, %v11391_v45  ;;  %v7130_v45 = vld [vmem:[%s11339_s1 + $0xc0] sm:$0xff]  ;;  %v4257_v30 = vsel %vm464_vm0, %v7135_v20, 0 }
 0x193   : > { %1642 = vmatmul.mubr.f32.gmra.mrb[4].mxu0 %v8195_v27  ;;  %7255 = vmatprep.subr.bf16.mxu1 %v7254_v3  ;;  %v7125_v3 = vld [vmem:[%s11339_s1 + $0x98] sm:$0xff] }
 0x194   : > { %1647 = vmatprep.mubr.f32.mxu0 %v11415_v0 }
 0x195   : > { %2861 = vmatmul.mubr.f32.gmra.mrb[2].mxu1 %v8187_v22  ;;  %v11620_v22 = vld [vmem:[#allocation8_spill] sm:$0xff] }
 0x196   : > { %2866 = vmatprep.mubr.f32.mxu1 %v11415_v0  ;;  %v194_v60 = vmul.f32 8.0, %v11620_v22 }
 0x197   : > { %1649 = vmatmul.mubr.f32.gmra.mrb[6].mxu0 %v8233_v46 }
 0x198   : > { %1654 = vmatprep.mubr.f32.mxu0 %v11415_v0  ;;  %v7120_v1 = vadd.f32 -1.0, %v194_v60 }
 0x199   : > { %2868 = vmatmul.mubr.f32.gmra.mrb[4].mxu1 %v8195_v27  ;;  %v7121_v27 = vadd.f32 -1.0, %v195_v61  ;;  %v9134_v61 = vsel %vm464_vm0, %v7125_v3, 0 }
 0x19a   : > { %2873 = vmatprep.mubr.f32.mxu1 %v11415_v0  ;;  %v9059_v37 = vmul.f32 0.5, %v7120_v1  ;;  %v11393_v1 = vand.u32 4294901760, %v9020_v53  ;;  %v9176_v4 = vand.u32 4294901760, %v9134_v61 }
 0x19b   : > { %1656 = vmatmul.mubr.f32.gmra.mrb[8].mxu0 %v8243_v50 }
 0x19c   : > { %1661 = vmatprep.mubr.f32.mxu0 %v11415_v0  ;;  %11622 = vst [vmem:[#allocation8_spill] sm:$0xff] %v9059_v37  ;;  %v258_v19 = vmax.f32 %v9059_v37, 0.0 }
 0x19d   : > { %2875 = vmatmul.mubr.f32.gmra.mrb[6].mxu1 %v8233_v46  ;;  %v7122_v46 = vld [vmem:[%s11339_s1 + $0x80] sm:$0xff] }
 0x19e   : > { %2880 = vmatprep.mubr.f32.mxu1 %v11415_v0  ;;  %v4218_v23 = vsel %vm464_vm0, %v7122_v46, 0  ;;  %v260_v15 = vmin.f32 %v258_v19, 7.0  ;;  %v11395_v46 = vand.u32 4294901760, %v9029_v8  ;;  %v11396_v19 = vand.u32 4294901760, %v9031_v28 }
 0x19f   : > { %1663 = vmatmul.mubr.f32.gmra.mrb[10].mxu0 %v8254_v54  ;;  %v9080_v11 = vand.u32 4294901760, %v4218_v23 }
 0x1a0   : > { %1668 = vmatprep.mubr.f32.mxu0 %v11415_v0  ;;  %v262_v10 = vfloor.f32 %v260_v15  ;;  %v9199_v3 = vsub.f32 %v9029_v8, %v11395_v46  ;;  %v9204_v22 = vsub.f32 %v9031_v28, %v11396_v19  ;;  %v4242_v19 = vsel %vm464_vm0, %v7130_v45, 0 }
 0x1a1   : > { %2882 = vmatmul.mubr.f32.gmra.mrb[8].mxu1 %v8243_v50  ;;  %v9067_v50 = vmul.f32 0.5, %v7121_v27  ;;  %11624 = vst [vmem:[#allocation34_spill] sm:$0xff] %v9080_v11  ;;  %v9091_v9 = vsub.f32 %v4218_v23, %v9080_v11  ;;  %v11394_v27 = vand.u32 4294901760, %v9027_v12  ;;  %v7127_v23 = vld [vmem:[%s11339_s1 + $0xa8] sm:$0xff]  ;;  %v9237_v33 = vand.u32 4294901760, %v4242_v19 }
 0x1a2   : > { %2887 = vmatprep.mubr.f32.mxu1 %v11415_v0  ;;  %v9105_v43 = vtrunc.f32 %v262_v10  ;;  %v9116_v49 = vsub.f32 %v260_v15, %v262_v10  ;;  %v11633_v15 = vld [vmem:[#allocation19_spill] sm:$0xff]  ;;  %v11635_v10 = vld [vmem:[#allocation14_spill] sm:$0xff]  ;;  %v5716_v42 = vand.u32 4294901760, %v9199_v3  ;;  %v11654_v8 = vmov 0.0  }
 0x1a3   : > { %1670 = vmatmul.mubr.f32.gmra.mrb[12].mxu0 %v8404_v56  ;;  %11623 = vst [vmem:[#allocation9_spill] sm:$0xff] %v9067_v50  ;;  %v259_v2 = vmax.f32 %v9067_v50, 0.0  ;;  %11625 = vst [vmem:[#allocation35_spill] sm:$0xff] %v9091_v9  ;;  %v9101_v36 = vand.u32 4294901760, %v9091_v9 }
 0x1a4   : > { %1675 = vmatprep.mubr.f32.mxu0 %v11415_v0  ;;  %11638 = vst [vmem:[#allocation19_spill] sm:$0xff] %v9176_v4  ;;  %11643 = vst [vmem:[#allocation43_spill] sm:$0xff] %v9237_v33 }
 0x1a5   : > { %2889 = vmatmul.mubr.f32.gmra.mrb[10].mxu1 %v8254_v54  ;;  %v7123_v54 = vld [vmem:[%s11339_s1 + $0x88] sm:$0xff]  ;;  %v261_v41 = vmin.f32 %v259_v2, 7.0  ;;  %11627 = vst [vmem:[#allocation37_spill] sm:$0xff] %v9101_v36  ;;  %v7133_v2 = vld [vmem:[%s11339_s1 + $0xd8] sm:$0xff] }
 0x1a6   : > { %2894 = vmatprep.mubr.f32.mxu1 %v11415_v0  ;;  %v4251_v37 = vsel %vm464_vm0, %v7133_v2, 0 }
 0x1a7   : > { %1677 = vmatmul.mubr.f32.gmra.mrb[14].mxu0 %v8442_v25  ;;  %v263_v35 = vfloor.f32 %v261_v41  ;;  %v9244_v20 = vand.u32 4294901760, %v4251_v37 }
 0x1a8   : > { %1682 = vmatprep.mubr.f32.mxu0 %v11415_v0 }
 0x1a9   : > { %2896 = vmatmul.mubr.f32.gmra.mrb[12].mxu1 %v8404_v56  ;;  %v4221_v56 = vsel %vm464_vm0, %v7123_v54, 0  ;;  %v9118_v51 = vtrunc.f32 %v263_v35  ;;  %v9127_v60 = vsub.f32 %v261_v41, %v263_v35  ;;  %v11632_v54 = vld [vmem:[#allocation18_spill] sm:$0xff]  ;;  %v7128_v35 = vld [vmem:[%s11339_s1 + $0xb0] sm:$0xff]  ;;  %11646 = vst [vmem:[#allocation46_spill] sm:$0xff] %v9244_v20 }
 0x1aa   : > { %2901 = vmatprep.mubr.f32.mxu1 %v11415_v0  ;;  %11637 = vst [vmem:[#allocation18_spill] sm:$0xff] %v9161_v55  ;;  %v7132_v41 = vld [vmem:[%s11339_s1 + $0xd0] sm:$0xff]  ;;  %v4236_v46 = vsel %vm464_vm0, %v7128_v35, 0 }
 0x1ab   : > { %1684 = vmatmul.mubr.f32.gmra.mrb[16].mxu0 %v8450_v16  ;;  %v4248_v50 = vsel %vm464_vm0, %v7132_v41, 0 }
 0x1ac   : > { %1689 = vmatprep.mubr.f32.mxu0 %v11415_v0 }
 0x1ad   : > { %2903 = vmatmul.mubr.f32.gmra.mrb[14].mxu1 %v8442_v25  ;;  %v9094_v25 = vand.u32 4294901760, %v4221_v56 }
 0x1ae   : > { %2908 = vmatprep.mubr.f32.mxu1 %v11415_v0 }
 0x1af   : > { %1691 = vmatmul.mubr.f32.gmra.mrb[18].mxu0 %v8482_v57  ;;  %11626 = vst [vmem:[#allocation36_spill] sm:$0xff] %v9094_v25 }
 0x1b0   : > { %1696 = vmatprep.mubr.f32.mxu0 %v11415_v0 }
 0x1b1   : > { %2910 = vmatmul.mubr.f32.gmra.mrb[16].mxu1 %v8450_v16  ;;  %v9109_v16 = vsub.f32 %v4221_v56, %v9094_v25  ;;  %v4233_v56 = vsel %vm464_vm0, %v7127_v23, 0  ;;  %v4523_v23 = vsub.f32 %v9027_v12, %v11394_v27  ;;  %v7137_v27 = vld [vmem:[%s11339_s1 + $0xf8] sm:$0xff]  ;;  %v9272_v25 = vsub.f32 %v4239_v62, %v9235_v48 }
 0x1b2   : > { %2915 = vmatprep.mubr.f32.mxu1 %v11415_v0  ;;  %v9223_v58 = vand.u32 4294901760, %v4233_v56 }
 0x1b3   : > { %1698 = vmatmul.mubr.f32.gmra.mrb[20].mxu0 %v8498_v39  ;;  %11629 = vst [vmem:[#allocation39_spill] sm:$0xff] %v9109_v16  ;;  %v9131_v34 = vand.u32 4294901760, %v9109_v16  ;;  %v4524_v2 = vand.u32 4294901760, %v4523_v23  ;;  %11656 = vst [vmem:[#allocation55_spill] sm:$0xff] %v9272_v25 }
 0x1b4   : > { %1703 = vmatprep.mubr.f32.mxu0 %v11415_v0  ;;  %11640 = vst [vmem:[#allocation14_spill] sm:$0xff] %v9223_v58 }
 0x1b5   : > { %2917 = vmatmul.mubr.f32.gmra.mrb[18].mxu1 %v8482_v57  ;;  %v4333_v57 = vsub.f32 %v9091_v9, %v9101_v36  ;;  %11631 = vst [vmem:[#allocation41_spill] sm:$0xff] %v9131_v34  ;;  %v9233_v36 = vand.u32 4294901760, %v4236_v46 }
 0x1b6   : > { %2922 = vmatprep.mubr.f32.mxu1 %v11415_v0 }
 0x1b7   : > { %1705 = vmatmul.mubr.f32.gmra.mrb[22].mxu0 %v8514_v47  ;;  %v9158_v40 = vand.u32 4294901760, %v4333_v57  ;;  %v4245_v57 = vsel %vm464_vm0, %v7131_v29, 0  ;;  %v4263_v29 = vsel %vm464_vm0, %v7137_v27, 0  ;;  %11641 = vst [vmem:[#allocation20_spill] sm:$0xff] %v9233_v36  ;;  %v9249_v27 = vand.u32 4294901760, %v4257_v30 }
 0x1b8   : > { %1710 = vmatprep.mubr.f32.mxu0 %v11415_v0  ;;  %v9239_v41 = vand.u32 4294901760, %v4245_v57  ;;  %v9253_v21 = vand.u32 4294901760, %v4263_v29  ;;  %v9269_v28 = vsub.f32 %v4236_v46, %v9233_v36  ;;  %v9286_v46 = vsub.f32 %v4251_v37, %v9244_v20 }
 0x1b9   : > { %2924 = vmatmul.mubr.f32.gmra.mrb[20].mxu1 %v8498_v39  ;;  %v7126_v39 = vld [vmem:[%s11339_s1 + $0xa0] sm:$0xff]  ;;  %11648 = vst [vmem:[#allocation48_spill] sm:$0xff] %v9249_v27  ;;  %v11665_v37 = vsub.f32 %v9109_v16, %v9131_v34  ;;  %v4355_v34 = vsub.f32 %v9124_v44, %v9161_v55  ;;  %v11679_v55 = vld [vmem:[#allocation21_spill] sm:$0xff] }
 0x1ba   : > { %2929 = vmatprep.mubr.f32.mxu1 %v11415_v0  ;;  %v4230_v13 = vsel %vm464_vm0, %v7126_v39, 0  ;;  %v4513_v39 = vsub.f32 %v9020_v53, %v11393_v1  ;;  %v7136_v1 = vld [vmem:[%s11339_s1 + $0xf0] sm:$0xff]  ;;  %11644 = vst [vmem:[#allocation44_spill] sm:$0xff] %v9239_v41  ;;  %11650 = vst [vmem:[#allocation50_spill] sm:$0xff] %v9253_v21 }
 0x1bb   : > { %1712 = vmatmul.mubr.f32.gmra.mrb[24].mxu0 %v8531_v24  ;;  %v9221_v26 = vand.u32 4294901760, %v4230_v13  ;;  %v4260_v45 = vsel %vm464_vm0, %v7136_v1, 0  ;;  %11655 = vst [vmem:[#allocation54_spill] sm:$0xff] %v9269_v28  ;;  %11660 = vst [vmem:[#allocation59_spill] sm:$0xff] %v9286_v46 }
 0x1bc   : > { %1717 = vmatprep.mubr.f32.mxu0 %v11415_v0  ;;  %v9251_v9 = vand.u32 4294901760, %v4260_v45 }
 0x1bd   : > { %2931 = vmatmul.mubr.f32.gmra.mrb[22].mxu1 %v8514_v47  ;;  %v7134_v47 = vld [vmem:[%s11339_s1 + $0xe0] sm:$0xff]  ;;  %11639 = vst [vmem:[#allocation22_spill] sm:$0xff] %v9221_v26  ;;  %v9262_v23 = vsub.f32 %v4230_v13, %v9221_v26 }
 0x1be   : > { %2936 = vmatprep.mubr.f32.mxu1 %v11415_v0  ;;  %v4254_v35 = vsel %vm464_vm0, %v7134_v47, 0  ;;  %v9242_v47 = vand.u32 4294901760, %v4248_v50  ;;  %11649 = vst [vmem:[#allocation49_spill] sm:$0xff] %v9251_v9 }
 0x1bf   : > { %1719 = vmatmul.mubr.f32.gmra.mrb[26].mxu0 %v8538_v32  ;;  %v9247_v1 = vand.u32 4294901760, %v4254_v35  ;;  %11652 = vst [vmem:[#allocation52_spill] sm:$0xff] %v9262_v23 }
 0x1c0   : > { %1724 = vmatprep.mubr.f32.mxu0 %v11415_v0  ;;  %11645 = vst [vmem:[#allocation45_spill] sm:$0xff] %v9242_v47  ;;  %v9283_v3 = vsub.f32 %v4248_v50, %v9242_v47  ;;  %v4345_v50 = vand.u32 4294901760, %v11665_v37  ;;  %v11680_v47 = vpack.c.bf16 %v8932_v59, %v8930_v6 }
 0x1c1   : > { %2938 = vmatmul.mubr.f32.gmra.mrb[24].mxu1 %v8531_v24  ;;  %v4514_v24 = vand.u32 4294901760, %v4513_v39  ;;  %11647 = vst [vmem:[#allocation47_spill] sm:$0xff] %v9247_v1  ;;  %v9259_v39 = vsub.f32 %v9134_v61, %v9176_v4  ;;  %v9278_v61 = vsub.f32 %v4245_v57, %v9239_v41  ;;  %v9290_v62 = vsub.f32 %v4254_v35, %v9247_v1 }
 0x1c2   : > { %2943 = vmatprep.mubr.f32.mxu1 %v11415_v0  ;;  %11659 = vst [vmem:[#allocation58_spill] sm:$0xff] %v9283_v3  ;;  %v9296_v57 = vsub.f32 %v4260_v45, %v9251_v9  ;;  %v9309_v35 = vand.u32 4294901760, %v9262_v23  ;;  %v9316_v45 = vand.u32 4294901760, %v9269_v28  ;;  %v9331_v16 = vand.u32 4294901760, %v9283_v3 }
 0x1c3   : > { %1726 = vmatmul.mubr.f32.gmra.mrb[28].mxu0 %v8563_v7  ;;  %11651 = vst [vmem:[#allocation51_spill] sm:$0xff] %v9259_v39  ;;  %11658 = vst [vmem:[#allocation57_spill] sm:$0xff] %v9278_v61  ;;  %v7232_v13 = vpack.c.bf16 %v4524_v2, %v4514_v24  ;;  %v9299_v24 = vsub.f32 %v4263_v29, %v9253_v21  ;;  %v9325_v2 = vand.u32 4294901760, %v9278_v61  ;;  %v9334_v21 = vand.u32 4294901760, %v9286_v46 }
 0x1c4   : > { %1731 = vmatprep.mubr.f32.mxu0 %v11415_v0  ;;  %v9265_v0 = vsub.f32 %v4233_v56, %v9223_v58  ;;  %v5726_v56 = vand.u32 4294901760, %v9204_v22  ;;  %11661 = vst [vmem:[#allocation60_spill] sm:$0xff] %v9290_v62  ;;  %11663 = vst [vmem:[#allocation62_spill] sm:$0xff] %v9296_v57  ;;  %v9306_v22 = vand.u32 4294901760, %v9259_v39  ;;  %v9338_v9 = vand.u32 4294901760, %v9290_v62 }
 0x1c5   : > { %2945 = vmatmul.mubr.f32.gmra.mrb[26].mxu1 %v8538_v32  ;;  %v9275_v32 = vsub.f32 %v4242_v19, %v9237_v33  ;;  %v9293_v19 = vsub.f32 %v4257_v30, %v9249_v27  ;;  %11664 = vst [vmem:[#allocation63_spill] sm:$0xff] %v9299_v24  ;;  %11667 = vst [vmem:[#allocation65_spill] sm:$0xff] %v9309_v35  ;;  %v4399_v44 = vsub.f32 %v9269_v28, %v9316_v45 }
 0x1c6   : > { %11653 = vst [vmem:[#allocation53_spill] sm:$0xff] %v9265_v0  ;;  %2950 = vmatprep.mubr.f32.mxu1 %v11654_v8  ;;  %11666 = vst [vmem:[#allocation64_spill] sm:$0xff] %v9306_v22  ;;  %v9312_v30 = vand.u32 4294901760, %v9265_v0  ;;  %v7256_v37 = vpack.c.bf16 %v5726_v56, %v5716_v42  ;;  %v9344_v42 = vand.u32 4294901760, %v9296_v57  ;;  %v9347_v56 = vand.u32 4294901760, %v9299_v24 }
 0x1c7   : > { %11657 = vst [vmem:[#allocation56_spill] sm:$0xff] %v9275_v32  ;;  %1733 = vmatmul.mubr.f32.gmra.mrb[30].mxu0 %v8567_v5  ;;  %11662 = vst [vmem:[#allocation61_spill] sm:$0xff] %v9293_v19  ;;  %v9322_v29 = vand.u32 4294901760, %v9275_v32  ;;  %v9341_v27 = vand.u32 4294901760, %v9293_v19  ;;  %v4366_v1 = vsub.f32 %v9259_v39, %v9306_v22  ;;  %v4454_v59 = vsub.f32 %v9286_v46, %v9334_v21 }
 0x1c8   : > { %4329 = vmatprep.mubr.f32.mxu0 %v11654_v8  ;;  %11668 = vst [vmem:[#allocation66_spill] sm:$0xff] %v9312_v30  ;;  %11669 = vst [vmem:[#allocation67_spill] sm:$0xff] %v9316_v45  ;;  %v4388_v20 = vsub.f32 %v9265_v0, %v9312_v30  ;;  %v4356_v0 = vand.u32 4294901760, %v4355_v34  ;;  %v4498_v34 = vsub.f32 %v9299_v24, %v9347_v56  ;;  %v11682_v30 = vld [vmem:[#allocation17_spill] sm:$0xff] }
 0x1c9   : > { %2952 = vmatmul.mubr.f32.gmra.mrb[28].mxu1 %v8563_v7  ;;  %v9319_v7 = vand.u32 4294901760, %v9272_v25  ;;  %11671 = vst [vmem:[#allocation69_spill] sm:$0xff] %v9322_v29  ;;  %11672 = vst [vmem:[#allocation70_spill] sm:$0xff] %v9325_v2  ;;  %v4421_v22 = vsub.f32 %v9275_v32, %v9322_v29  ;;  %v4476_v29 = vsub.f32 %v9293_v19, %v9341_v27  ;;  %v11700_v32 = vrot.slane %v11679_v55, 7 }
 0x1ca   : > { %2957 = vmatprep.mubr.f32.mxu1 %v11654_v8  ;;  %11673 = vst [vmem:[#allocation71_spill] sm:$0xff] %v9331_v16  ;;  %11674 = vst [vmem:[#allocation72_spill] sm:$0xff] %v9334_v21  ;;  %v9387_v6 = vand.u32 4294901760, %v4388_v20  ;;  %v11683_v20 = vpack.c.bf16 %v8954_v18, %v8952_v14 }
 0x1cb   : > { %11670 = vst [vmem:[#allocation68_spill] sm:$0xff] %v9319_v7  ;;  %4335 = vmatmul.mubr.f32.vlgmr.msra.gmra.mrb[32].mxu0 %v9158_v40  ;;  %11675 = vst [vmem:[#allocation73_spill] sm:$0xff] %v9338_v9 }
 0x1cc   : > { %4340 = vmatprep.mubr.f32.mxu0 %v11654_v8  ;;  %7233 = vmatpush1.bf16.msra.mxu0 %v7232_v13  ;;  %11676 = vst [vmem:[#allocation74_spill] sm:$0xff] %v9341_v27  ;;  %11677 = vst [vmem:[#allocation75_spill] sm:$0xff] %v9344_v42  ;;  %v4377_v13 = vsub.f32 %v9262_v23, %v9309_v35  ;;  %v4432_v35 = vsub.f32 %v9278_v61, %v9325_v2  ;;  %v11681_v23 = vld [vmem:[#allocation23_spill] sm:$0xff] }
 0x1cd   : > { %11678 = vst [vmem:[#allocation76_spill] sm:$0xff] %v9347_v56  ;;  %2959 = vmatmul.mubr.f32.gmra.mrb[30].mxu1 %v8567_v5  ;;  %7235 = vmatprep.subr.bf16.mxu0 %v11680_v47  ;;  %v4410_v5 = vsub.f32 %v9272_v25, %v9319_v7  ;;  %v4443_v47 = vsub.f32 %v9283_v3, %v9331_v16  ;;  %v4367_v16 = vand.u32 4294901760, %v4366_v1  ;;  %v11684_v1 = vcvt.f32.s32 %v9105_v43 }
 0x1ce   : > { %5531 = vmatprep.mubr.f32.mxu1 %v11654_v8  ;;  %v4465_v7 = vsub.f32 %v9290_v62, %v9338_v9  ;;  %v4487_v2 = vsub.f32 %v9296_v57, %v9344_v42  ;;  %v9385_v21 = vand.u32 4294901760, %v4377_v13  ;;  %v9390_v9 = vand.u32 4294901760, %v4399_v44 }
 0x1cf   : > { %4346 = vmatmul.mubr.f32.gmra.mrb[34].mxu0 %v4345_v50  ;;  %v9392_v27 = vand.u32 4294901760, %v4410_v5  ;;  %v9394_v42 = vand.u32 4294901760, %v4421_v22  ;;  %v9396_v57 = vand.u32 4294901760, %v4432_v35  ;;  %v9398_v45 = vand.u32 4294901760, %v4443_v47 }
 0x1d0   : > { %4351 = vmatprep.mubr.f32.mxu0 %v11654_v8  ;;  %v11685_v44 = vcvt.f32.s32 %v9118_v51  ;;  %v9410_v22 = vand.u32 4294901760, %v4465_v7  ;;  %v9412_v35 = vand.u32 4294901760, %v4476_v29  ;;  %v9414_v5 = vand.u32 4294901760, %v4487_v2 }
 0x1d1   : > { %5537 = vmatmul.mubr.f32.vlgmr.msra.gmra.mrb[32].mxu1 %v9158_v40  ;;  %v9400_v40 = vand.u32 4294901760, %v4454_v59  ;;  %v9416_v59 = vand.u32 4294901760, %v4498_v34  ;;  %v11686_v47 = vmov %v11684_v1  ;;  %v2971_v7 = vsub.f32 1.0, %v9116_v49 }
 0x1d2   : > { %5542 = vmatprep.mubr.f32.mxu1 %v11654_v8  ;;  %7257 = vmatpush1.bf16.msra.mxu1 %v7256_v37  ;;  %v276_v37 = vadd.s32 1, %v11684_v1  ;;  %v277_v13 = vadd.s32 1, %v11685_v44  ;;  %v11687_v1 = vmov %v11685_v44  ;;  %v2972_v2 = vsub.f32 1.0, %v9127_v60 }
 0x1d3   : > { %4357 = vmatmul.mubr.f32.gmra.mrb[36].mxu0 %v4356_v0  ;;  %7259 = vmatprep.subr.bf16.mxu1 %v11683_v20  ;;  %v2965_v20 = vmul.u32 16, %v11686_v47  ;;  %v2966_v56 = vmul.u32 16, %v11687_v1  ;;  %v11688_v34 = vrot.slane %v11632_v54, 7  ;;  %v11689_v43 = vrot.slane %v11634_v38, 7 }
 0x1d4   : > { %4362 = vmatprep.mubr.f32.mxu0 %v11654_v8  ;;  %vm278_vm0 = vcmp.lt.s32.totalorder %v276_v37, 7  ;;  %vm280_vm1 = vcmp.lt.s32.totalorder %v277_v13, 7  ;;  %v9434_v51 = vsub.s32 2, %v11598_v31  ;;  %v11691_v1 = vrot.slane %v11635_v10, 7 }
 0x1d5   : > { %5548 = vmatmul.mubr.f32.gmra.mrb[34].mxu1 %v4345_v50  ;;  %v279_v44 = vsel %vm278_vm0, %v276_v37, 7  ;;  %v281_v29 = vsel %vm280_vm1, %v277_v13, 7  ;;  %v9427_v50 = vadd.s32 %v11688_v34, %v2965_v20  ;;  %v9431_v47 = vadd.s32 %v11689_v43, %v2965_v20 }
 0x1d6   : > { %5553 = vmatprep.mubr.f32.mxu1 %v11654_v8  ;;  %v2989_v18 = vmul.u32 16, %v279_v44  ;;  %v11690_v37 = vrot.slane %v11633_v15, 7  ;;  %v9443_v14 = vmul.f32 %v11691_v1, %v2971_v7  ;;  %v11692_v34 = vrot.slane %v11636_v52, 7 }
 0x1d7   : > { %4368 = vmatmul.mubr.f32.gmra.mrb[38].mxu0 %v4367_v16  ;;  %v11693_v20 = vrot.slane %v11679_v55, 7  ;;  %v11694_v43 = vrot.slane %v11632_v54, 7  ;;  %v11695_v1 = vrot.slane %v11681_v23, 7  ;;  %v9537_v25 = vmul.f32 %v11700_v32, %v9127_v60 }
 0x1d8   : > { %4373 = vmatprep.mubr.f32.mxu0 %v11654_v8  ;;  %v9439_v13 = vmul.f32 %v11690_v37, %v2971_v7  ;;  %v9447_v24 = vadd.s32 %v11692_v34, %v2966_v56  ;;  %v3002_v37 = vrot.slane %v9427_v50, %v9434_v51  ;;  %v3200_v7 = vrot.slane %v9431_v47, %v9434_v51 }
 0x1d9   : > { %v9451_v44 = vmul.f32 %v11693_v20, %v2972_v2  ;;  %5559 = vmatmul.mubr.f32.gmra.mrb[36].mxu1 %v4356_v0  ;;  %v9455_v19 = vadd.s32 %v2989_v18, %v11694_v43  ;;  %v9463_v62 = vadd.s32 %v11695_v1, %v2966_v56  ;;  %v11696_v34 = vrot.slane %v11633_v15, 7 }
 0x1da   : > { %5564 = vmatprep.mubr.f32.mxu1 %v11654_v8  ;;  %v3100_v54 = vrot.slane %v9439_v13, %v9434_v51  ;;  %v3298_v20 = vrot.slane %v9443_v14, %v9434_v51  ;;  %v11697_v43 = vrot.slane %v11682_v30, 7  ;;  %v11698_v56 = vrot.slane %v11634_v38, 7 }
 0x1db   : > { %v9469_v0 = vmul.f32 %v11696_v34, %v9116_v49  ;;  %4379 = vmatmul.mubr.f32.gmra.mrb[40].mxu0 %v9385_v21  ;;  %v9485_v15 = vrot.slane %v3002_v37, %v9434_v51  ;;  %v9488_v34 = vrot.slane %v3200_v7, %v9434_v51  ;;  %v3462_v3 = vrot.slane %v9455_v19, %v9434_v51 }
 0x1dc   : > { %v9477_v46 = vmul.f32 %v11697_v43, %v2972_v2  ;;  %v9482_v1 = vadd.s32 %v2989_v18, %v11698_v56  ;;  %4384 = vmatprep.mubr.f32.mxu0 %v11654_v8  ;;  %v11699_v2 = vrot.slane %v11635_v10, 7  ;;  %v9499_v38 = vrot.slane %v3100_v54, %v9434_v51 }
 0x1dd   : > { %v9502_v18 = vrot.slane %v3298_v20, %v9434_v51  ;;  %v3560_v37 = vrot.slane %v9469_v0, %v9434_v51  ;;  %5570 = vmatmul.mubr.f32.gmra.mrb[38].mxu1 %v4367_v16  ;;  %vm3031_vm2 = vcmp.eq.s32.totalorder %v11598_v31, %v9485_v15  ;;  %vm3229_vm3 = vcmp.eq.s32.totalorder %v11598_v31, %v9488_v34 }
 0x1de   : > { %v9496_v43 = vmul.f32 %v11699_v2, %v9116_v49  ;;  %v9511_v10 = vrot.slane %v3462_v3, %v9434_v51  ;;  %v3724_v49 = vrot.slane %v9482_v1, %v9434_v51  ;;  %5575 = vmatprep.mubr.f32.mxu1 %v11654_v8  ;;  %v3133_v7 = vsel %vm3031_vm2, %v9499_v38, 0.0 }
 0x1df   : > { %v3331_v54 = vsel %vm3229_vm3, %v9502_v18, 0.0  ;;  %v9519_v16 = vrot.slane %v3560_v37, %v9434_v51  ;;  %4390 = vmatmul.mubr.f32.gmra.mrb[42].mxu0 %v9387_v6  ;;  %v2990_v2 = vmul.u32 16, %v281_v29  ;;  %v11703_v28 = vrot.slane %v11681_v23, 7 }
 0x1e0   : > { %v3822_v20 = vrot.slane %v9496_v43, %v9434_v51  ;;  %v3395_v56 = vadd.f32 %v3331_v54, %v3133_v7  ;;  %vm3491_vm4 = vcmp.eq.s32.totalorder %v11598_v31, %v9511_v10  ;;  %v9527_v3 = vrot.slane %v3724_v49, %v9434_v51  ;;  %4395 = vmatprep.mubr.f32.mxu0 %v11654_v8 }
 0x1e1   : > { %v3593_v61 = vsel %vm3491_vm4, %v9519_v16, 0.0  ;;  %v11701_v7 = vrot.slane %v11682_v30, 7  ;;  %5581 = vmatmul.mubr.f32.gmra.mrb[40].mxu1 %v9385_v21  ;;  %v11702_v49 = vrot.slane %v11636_v52, 7  ;;  %v9553_v55 = vadd.s32 %v2990_v2, %v11703_v28 }
 0x1e2   : > { %v9532_v37 = vrot.slane %v3822_v20, %v9434_v51  ;;  %v3657_v29 = vadd.f32 %v3593_v61, %v3395_v56  ;;  %vm3753_vm5 = vcmp.eq.s32.totalorder %v11598_v31, %v9527_v3  ;;  %5586 = vmatprep.mubr.f32.mxu1 %v11654_v8  ;;  %v3108_v21 = vrot.slane %v9451_v44, %v9434_v51 }
 0x1e3   : > { %v9542_v54 = vmul.f32 %v11701_v7, %v9127_v60  ;;  %v9549_v20 = vadd.s32 %v2990_v2, %v11702_v49  ;;  %v3010_v60 = vrot.slane %v9447_v24, %v9434_v51  ;;  %v3208_v61 = vrot.slane %v9463_v62, %v9434_v51  ;;  %4401 = vmatmul.mubr.f32.gmra.mrb[44].mxu0 %v9390_v9 }
 0x1e4   : > { %v3855_v32 = vsel %vm3753_vm5, %v9532_v37, 0.0  ;;  %v3306_v28 = vrot.slane %v9477_v46, %v9434_v51  ;;  %v3568_v30 = vrot.slane %v9537_v25, %v9434_v51  ;;  %4406 = vmatprep.mubr.f32.mxu0 %v11654_v8  ;;  %v9577_v2 = vrot.slane %v3108_v21, %v9434_v51 }
 0x1e5   : > { %v9564_v52 = vadd.f32 %v3855_v32, %v3657_v29  ;;  %v3470_v23 = vrot.slane %v9549_v20, %v9434_v51  ;;  %v9574_v56 = vrot.slane %v3010_v60, %v9434_v51  ;;  %v9580_v7 = vrot.slane %v3208_v61, %v9434_v51  ;;  %5592 = vmatmul.mubr.f32.gmra.mrb[42].mxu1 %v9387_v6 }
 0x1e6   : > { %v3732_v29 = vrot.slane %v9553_v55, %v9434_v51  ;;  %v9586_v49 = vrot.slane %v3306_v28, %v9434_v51  ;;  %v9592_v60 = vrot.slane %v3568_v30, %v9434_v51  ;;  %v3830_v21 = vrot.slane %v9542_v54, %v9434_v51  ;;  %5597 = vmatprep.mubr.f32.mxu1 %v11654_v8 }
 0x1e7   : > { %11704 = vst [vmem:[#allocation21_spill] sm:$0xff] %v9564_v52  ;;  %v9589_v32 = vrot.slane %v3470_v23, %v9434_v51  ;;  %vm3033_vm7 = vcmp.eq.s32.totalorder %v11598_v31, %v9574_v56  ;;  %vm3231_vm8 = vcmp.eq.s32.totalorder %v11598_v31, %v9580_v7  ;;  %v9605_v61 = vsub.s32 6, %v11598_v31  ;;  %4412 = vmatmul.mubr.f32.gmra.mrb[46].mxu0 %v9392_v27 }
 0x1e8   : > { %v9602_v6 = vrot.slane %v3732_v29, %v9434_v51  ;;  %v3135_v28 = vsel %vm3033_vm7, %v9577_v2, 0.0  ;;  %v3333_v23 = vsel %vm3231_vm8, %v9586_v49, 0.0  ;;  %v9613_v30 = vrot.slane %v3830_v21, %v9434_v51  ;;  %4417 = vmatprep.mubr.f32.mxu0 %v11654_v8 }
 0x1e9   : > { %vm3493_vm10 = vcmp.eq.s32.totalorder %v11598_v31, %v9589_v32  ;;  %v3397_v52 = vadd.f32 %v3333_v23, %v3135_v28  ;;  %v3006_v39 = vrot.slane %v9427_v50, %v9605_v61  ;;  %5603 = vmatmul.mubr.f32.gmra.mrb[44].mxu1 %v9390_v9  ;;  %v3104_v33 = vrot.slane %v9439_v13, %v9605_v61 }
 0x1ea   : > { %v3595_v29 = vsel %vm3493_vm10, %v9592_v60, 0.0  ;;  %vm3755_vm11 = vcmp.eq.s32.totalorder %v11598_v31, %v9602_v6  ;;  %v3204_v21 = vrot.slane %v9431_v47, %v9605_v61  ;;  %v3302_v28 = vrot.slane %v9443_v14, %v9605_v61  ;;  %5608 = vmatprep.mubr.f32.mxu1 %v11654_v8 }
 0x1eb   : > { %v3857_v41 = vsel %vm3755_vm11, %v9613_v30, 0.0  ;;  %v3659_v23 = vadd.f32 %v3595_v29, %v3397_v52  ;;  %v9631_v48 = vrot.slane %v3006_v39, %v9434_v51  ;;  %v3466_v9 = vrot.slane %v9455_v19, %v9605_v61  ;;  %4423 = vmatmul.mubr.f32.gmra.mrb[48].mxu0 %v9394_v42 }
 0x1ec   : > { %v3564_v50 = vrot.slane %v9469_v0, %v9605_v61  ;;  %v9639_v13 = vrot.slane %v3104_v33, %v9434_v51  ;;  %v9642_v47 = vrot.slane %v3204_v21, %v9434_v51  ;;  %v9645_v14 = vrot.slane %v3302_v28, %v9434_v51  ;;  %4428 = vmatprep.mubr.f32.mxu0 %v11654_v8 }
 0x1ed   : > { %v3728_v39 = vrot.slane %v9482_v1, %v9605_v61  ;;  %v9650_v19 = vadd.f32 %v3857_v41, %v3659_v23  ;;  %vm3032_vm13 = vcmp.eq.s32.totalorder %v11598_v31, %v9631_v48  ;;  %v9655_v0 = vrot.slane %v3466_v9, %v9434_v51  ;;  %5614 = vmatmul.mubr.f32.gmra.mrb[46].mxu1 %v9392_v27 }
 0x1ee   : > { %v9658_v33 = vrot.slane %v3564_v50, %v9434_v51  ;;  %v3134_v52 = vsel %vm3032_vm13, %v9639_v13, 0.0  ;;  %vm3230_vm14 = vcmp.eq.s32.totalorder %v11598_v31, %v9642_v47  ;;  %v3826_v41 = vrot.slane %v9496_v43, %v9605_v61  ;;  %5619 = vmatprep.mubr.f32.mxu1 %v11654_v8 }
 0x1ef   : > { %v9665_v1 = vrot.slane %v3728_v39, %v9434_v51  ;;  %v3332_v29 = vsel %vm3230_vm14, %v9645_v14, 0.0  ;;  %vm3492_vm0 = vcmp.eq.s32.totalorder %v11598_v31, %v9655_v0  ;;  %v3014_v27 = vrot.slane %v9447_v24, %v9605_v61  ;;  %4434 = vmatmul.mubr.f32.gmra.mrb[50].mxu0 %v9396_v57 }
 0x1f0   : > { %v3112_v21 = vrot.slane %v9451_v44, %v9605_v61  ;;  %v3396_v28 = vadd.f32 %v3332_v29, %v3134_v52  ;;  %v3594_v23 = vsel %vm3492_vm0, %v9658_v33, 0.0  ;;  %v9682_v43 = vrot.slane %v3826_v41, %v9434_v51  ;;  %4439 = vmatprep.mubr.f32.mxu0 %v11654_v8 }
 0x1f1   : > { %vm3754_vm1 = vcmp.eq.s32.totalorder %v11598_v31, %v9665_v1  ;;  %v9686_v9 = vrot.slane %v3014_v27, %v9434_v51  ;;  %v3212_v44 = vrot.slane %v9463_v62, %v9605_v61  ;;  %v3310_v50 = vrot.slane %v9477_v46, %v9605_v61  ;;  %5625 = vmatmul.mubr.f32.gmra.mrb[48].mxu1 %v9394_v42 }
 0x1f2   : > { %v9689_v24 = vrot.slane %v3112_v21, %v9434_v51  ;;  %v3658_v39 = vadd.f32 %v3594_v23, %v3396_v28  ;;  %v3856_v52 = vsel %vm3754_vm1, %v9682_v43, 0.0  ;;  %v3474_v41 = vrot.slane %v9549_v20, %v9605_v61  ;;  %5630 = vmatprep.mubr.f32.mxu1 %v11654_v8 }
 0x1f3   : > { %v3572_v29 = vrot.slane %v9537_v25, %v9605_v61  ;;  %vm3034_vm2 = vcmp.eq.s32.totalorder %v11598_v31, %v9686_v9  ;;  %v9705_v62 = vrot.slane %v3212_v44, %v9434_v51  ;;  %v9708_v46 = vrot.slane %v3310_v50, %v9434_v51  ;;  %4445 = vmatmul.mubr.f32.gmra.mrb[52].mxu0 %v9398_v45 }
 0x1f4   : > { %v3736_v42 = vrot.slane %v9553_v55, %v9605_v61  ;;  %v9713_v20 = vadd.f32 %v3856_v52, %v3658_v39  ;;  %v3136_v25 = vsel %vm3034_vm2, %v9689_v24, 0.0  ;;  %v9717_v27 = vrot.slane %v3474_v41, %v9434_v51  ;;  %4450 = vmatprep.mubr.f32.mxu0 %v11654_v8 }
 0x1f5   : > { %v9720_v21 = vrot.slane %v3572_v29, %v9434_v51  ;;  %vm3232_vm3 = vcmp.eq.s32.totalorder %v11598_v31, %v9705_v62  ;;  %v3834_v55 = vrot.slane %v9542_v54, %v9605_v61  ;;  %vm3035_vm4 = vcmp.eq.s32.totalorder %v11599_v63, %v9485_v15  ;;  %5636 = vmatmul.mubr.f32.gmra.mrb[50].mxu1 %v9396_v57 }
 0x1f6   : > { %v9726_v28 = vrot.slane %v3736_v42, %v9434_v51  ;;  %v3334_v23 = vsel %vm3232_vm3, %v9708_v46, 0.0  ;;  %vm3494_vm5 = vcmp.eq.s32.totalorder %v11598_v31, %v9717_v27  ;;  %v3137_v44 = vsel %vm3035_vm4, %v9499_v38, 0.0  ;;  %5641 = vmatprep.mubr.f32.mxu1 %v11654_v8 }
 0x1f7   : > { %vm3233_vm7 = vcmp.eq.s32.totalorder %v11599_v63, %v9488_v34  ;;  %v3398_v50 = vadd.f32 %v3334_v23, %v3136_v25  ;;  %v3596_v54 = vsel %vm3494_vm5, %v9720_v21, 0.0  ;;  %v9744_v57 = vrot.slane %v3834_v55, %v9434_v51  ;;  %4456 = vmatmul.mubr.f32.gmra.mrb[54].mxu0 %v9400_v40 }
 0x1f8   : > { %vm3756_vm8 = vcmp.eq.s32.totalorder %v11598_v31, %v9726_v28  ;;  %v3335_v61 = vsel %vm3233_vm7, %v9502_v18, 0.0  ;;  %vm3495_vm10 = vcmp.eq.s32.totalorder %v11599_v63, %v9511_v10  ;;  %vm3757_vm11 = vcmp.eq.s32.totalorder %v11599_v63, %v9527_v3  ;;  %4461 = vmatprep.mubr.f32.mxu0 %v11654_v8 }
 0x1f9   : > { %vm3037_vm13 = vcmp.eq.s32.totalorder %v11599_v63, %v9574_v56  ;;  %v3660_v39 = vadd.f32 %v3596_v54, %v3398_v50  ;;  %v3858_v52 = vsel %vm3756_vm8, %v9744_v57, 0.0  ;;  %v3399_v51 = vadd.f32 %v3335_v61, %v3137_v44  ;;  %5647 = vmatmul.mubr.f32.gmra.mrb[52].mxu1 %v9398_v45 }
 0x1fa   : > { %v3597_v41 = vsel %vm3495_vm10, %v9519_v16, 0.0  ;;  %v3859_v29 = vsel %vm3757_vm11, %v9532_v37, 0.0  ;;  %v3139_v42 = vsel %vm3037_vm13, %v9577_v2, 0.0  ;;  %vm3235_vm14 = vcmp.eq.s32.totalorder %v11599_v63, %v9580_v7  ;;  %5652 = vmatprep.mubr.f32.mxu1 %v11654_v8 }
 0x1fb   : > { %vm3497_vm0 = vcmp.eq.s32.totalorder %v11599_v63, %v9589_v32  ;;  %v9765_v25 = vadd.f32 %v3858_v52, %v3660_v39  ;;  %v3661_v55 = vadd.f32 %v3597_v41, %v3399_v51  ;;  %v3337_v23 = vsel %vm3235_vm14, %v9586_v49, 0.0  ;;  %4467 = vmatmul.mubr.f32.gmra.mrb[56].mxu0 %v9410_v22 }
 0x1fc   : > { %v3599_v44 = vsel %vm3497_vm0, %v9592_v60, 0.0  ;;  %v3401_v45 = vadd.f32 %v3337_v23, %v3139_v42  ;;  %vm3759_vm1 = vcmp.eq.s32.totalorder %v11599_v63, %v9602_v6  ;;  %vm3036_vm2 = vcmp.eq.s32.totalorder %v11599_v63, %v9631_v48  ;;  %4472 = vmatprep.mubr.f32.mxu0 %v11654_v8 }
 0x1fd   : > { %vm3234_vm3 = vcmp.eq.s32.totalorder %v11599_v63, %v9642_v47  ;;  %v9777_v50 = vadd.f32 %v3859_v29, %v3661_v55  ;;  %v3861_v54 = vsel %vm3759_vm1, %v9613_v30, 0.0  ;;  %v3138_v61 = vsel %vm3036_vm2, %v9639_v13, 0.0  ;;  %5658 = vmatmul.mubr.f32.gmra.mrb[54].mxu1 %v9400_v40 }
 0x1fe   : > { %v3336_v39 = vsel %vm3234_vm3, %v9645_v14, 0.0  ;;  %v3663_v52 = vadd.f32 %v3599_v44, %v3401_v45  ;;  %vm3496_vm4 = vcmp.eq.s32.totalorder %v11599_v63, %v9655_v0  ;;  %vm3758_vm5 = vcmp.eq.s32.totalorder %v11599_v63, %v9665_v1  ;;  %5663 = vmatprep.mubr.f32.mxu1 %v11654_v8 }
 0x1ff   : > { %v3400_v51 = vadd.f32 %v3336_v39, %v3138_v61  ;;  %v3598_v41 = vsel %vm3496_vm4, %v9658_v33, 0.0  ;;  %v3860_v29 = vsel %vm3758_vm5, %v9682_v43, 0.0  ;;  %vm3038_vm7 = vcmp.eq.s32.totalorder %v11599_v63, %v9686_v9  ;;  %4478 = vmatmul.mubr.f32.gmra.mrb[58].mxu0 %v9412_v35 }
 0x200   : > { %vm3236_vm8 = vcmp.eq.s32.totalorder %v11599_v63, %v9705_v62  ;;  %v9795_v40 = vadd.f32 %v3861_v54, %v3663_v52  ;;  %v3140_v55 = vsel %vm3038_vm7, %v9689_v24, 0.0  ;;  %4483 = vmatprep.mubr.f32.mxu0 %v11654_v8  ;;  %vm3498_vm10 = vcmp.eq.s32.totalorder %v11599_v63, %v9717_v27 }
 0x201   : > { %v3662_v42 = vadd.f32 %v3598_v41, %v3400_v51  ;;  %v3338_v23 = vsel %vm3236_vm8, %v9708_v46, 0.0  ;;  %vm3760_vm11 = vcmp.eq.s32.totalorder %v11599_v63, %v9726_v28  ;;  %v9805_v45 = vadd.s32 16, %v11598_v31  ;;  %5669 = vmatmul.mubr.f32.gmra.mrb[56].mxu1 %v9410_v22 }
 0x202   : > { %v3402_v44 = vadd.f32 %v3338_v23, %v3140_v55  ;;  %v3600_v61 = vsel %vm3498_vm10, %v9720_v21, 0.0  ;;  %v3862_v39 = vsel %vm3760_vm11, %v9744_v57, 0.0  ;;  %v9813_v52 = vadd.s32 24, %v11598_v31  ;;  %5674 = vmatprep.mubr.f32.mxu1 %v11654_v8 }
 0x203   : > { %11705 = vst [vmem:[#allocation23_spill] sm:$0xff] %v9805_v45  ;;  %v9808_v54 = vadd.f32 %v3860_v29, %v3662_v42  ;;  %vm3039_vm13 = vcmp.eq.s32.totalorder %v9805_v45, %v9485_v15  ;;  %vm3237_vm14 = vcmp.eq.s32.totalorder %v9805_v45, %v9488_v34  ;;  %vm3499_vm0 = vcmp.eq.s32.totalorder %v9805_v45, %v9511_v10 }
 0x204   : > { %11706 = vst [vmem:[#allocation17_spill] sm:$0xff] %v9813_v52  ;;  %v3664_v51 = vadd.f32 %v3600_v61, %v3402_v44  ;;  %4489 = vmatmul.mubr.f32.gmra.mrb[60].mxu0 %v9414_v5  ;;  %v3141_v22 = vsel %vm3039_vm13, %v9499_v38, 0.0  ;;  %v3339_v41 = vsel %vm3237_vm14, %v9502_v18, 0.0  ;;  %v3601_v29 = vsel %vm3499_vm0, %v9519_v16, 0.0 }
 0x205   : > { %vm3761_vm1 = vcmp.eq.s32.totalorder %v9805_v45, %v9527_v3  ;;  %4494 = vmatprep.mubr.f32.mxu0 %v11654_v8  ;;  %v3403_v55 = vadd.f32 %v3339_v41, %v3141_v22  ;;  %vm3041_vm2 = vcmp.eq.s32.totalorder %v9805_v45, %v9574_v56  ;;  %5680 = vmatmul.mubr.f32.gmra.mrb[58].mxu1 %v9412_v35 }
 0x206   : > { %v9829_v42 = vadd.f32 %v3862_v39, %v3664_v51  ;;  %v3863_v23 = vsel %vm3761_vm1, %v9532_v37, 0.0  ;;  %v3143_v44 = vsel %vm3041_vm2, %v9577_v2, 0.0  ;;  %vm3239_vm3 = vcmp.eq.s32.totalorder %v9805_v45, %v9580_v7  ;;  %5685 = vmatprep.mubr.f32.mxu1 %v11654_v8 }
 0x207   : > { %vm3501_vm4 = vcmp.eq.s32.totalorder %v9805_v45, %v9589_v32  ;;  %vm3763_vm5 = vcmp.eq.s32.totalorder %v9805_v45, %v9602_v6  ;;  %v3665_v61 = vadd.f32 %v3601_v29, %v3403_v55  ;;  %v3341_v39 = vsel %vm3239_vm3, %v9586_v49, 0.0 }
 0x208   : > { %11707 = vst [vmem:[#allocation77_spill] sm:$0xff] %v9829_v42  ;;  %v3603_v51 = vsel %vm3501_vm4, %v9592_v60, 0.0  ;;  %v3865_v35 = vsel %vm3763_vm5, %v9613_v30, 0.0  ;;  %4500 = vmatmul.mubr.f32.gmra.mrb[62].mxu0 %v9416_v59  ;;  %v3405_v22 = vadd.f32 %v3341_v39, %v3143_v44  ;;  %vm3040_vm7 = vcmp.eq.s32.totalorder %v9805_v45, %v9631_v48 }
 0x209   : > { %vm3238_vm8 = vcmp.eq.s32.totalorder %v9805_v45, %v9642_v47  ;;  %vm3500_vm10 = vcmp.eq.s32.totalorder %v9805_v45, %v9655_v0  ;;  %4586 = vmatprep.mubr.f32.mxu0 %v11654_v8  ;;  %v9854_v41 = vadd.f32 %v3863_v23, %v3665_v61  ;;  %v3142_v29 = vsel %vm3040_vm7, %v9639_v13, 0.0  ;;  %5691 = vmatmul.mubr.f32.gmra.mrb[60].mxu1 %v9414_v5 }
 0x20a   : > { %v3340_v55 = vsel %vm3238_vm8, %v9645_v14, 0.0  ;;  %v3602_v63 = vsel %vm3500_vm10, %v9658_v33, 0.0  ;;  %v3667_v44 = vadd.f32 %v3603_v51, %v3405_v22  ;;  %vm3762_vm11 = vcmp.eq.s32.totalorder %v9805_v45, %v9665_v1  ;;  %5696 = vmatprep.mubr.f32.mxu1 %v11654_v8 }
 0x20b   : > { %v3404_v39 = vadd.f32 %v3340_v55, %v3142_v29  ;;  %vm3042_vm13 = vcmp.eq.s32.totalorder %v9805_v45, %v9686_v9  ;;  %v3864_v23 = vsel %vm3762_vm11, %v9682_v43, 0.0  ;;  %vm3240_vm14 = vcmp.eq.s32.totalorder %v9805_v45, %v9705_v62 }
 0x20c   : > { %v3144_v61 = vsel %vm3042_vm13, %v9689_v24, 0.0  ;;  %vm3502_vm0 = vcmp.eq.s32.totalorder %v9805_v45, %v9717_v27  ;;  %4588 = vmatmul.mubr.f32.vlgmr.msra.gmra.mrb[32].mxu0 %v9080_v11  ;;  %v9872_v5 = vadd.f32 %v3865_v35, %v3667_v44  ;;  %v3342_v22 = vsel %vm3240_vm14, %v9708_v46, 0.0 }
 0x20d   : > { %v3666_v51 = vadd.f32 %v3602_v63, %v3404_v39  ;;  %v3604_v29 = vsel %vm3502_vm0, %v9720_v21, 0.0  ;;  %4593 = vmatprep.mubr.f32.mxu0 %v11654_v8  ;;  %v11708_v55 = vpack.c.bf16 %v9027_v12, %v9020_v53  ;;  %v3406_v42 = vadd.f32 %v3342_v22, %v3144_v61  ;;  %5702 = vmatmul.mubr.f32.gmra.mrb[62].mxu1 %v9416_v59  ;;  %v11711_v59 = vld [vmem:[#allocation36_spill] sm:$0xff] }
 0x20e   : > { %vm3764_vm1 = vcmp.eq.s32.totalorder %v9805_v45, %v9726_v28  ;;  %vm3043_vm2 = vcmp.eq.s32.totalorder %v9813_v52, %v9485_v15  ;;  %v9885_v35 = vadd.s32 32, %v11598_v31  ;;  %v11710_v63 = vmov 1.0|1.0   ;;  %5788 = vmatprep.mubr.f32.mxu1 %v11654_v8 }
 0x20f   : > { %7237 = vmatpush1.bf16.msra.mxu0 %v11708_v55  ;;  %v9891_v44 = vadd.f32 %v3864_v23, %v3666_v51  ;;  %v3866_v39 = vsel %vm3764_vm1, %v9744_v57, 0.0  ;;  %v3145_v61 = vsel %vm3043_vm2, %v9499_v38, 0.0  ;;  %vm3241_vm3 = vcmp.eq.s32.totalorder %v9813_v52, %v9488_v34 }
 0x210   : > { %11709 = vst [vmem:[#allocation78_spill] sm:$0xff] %v9885_v35  ;;  %7239 = vmatprep.subr.msk.bf16.mxu0 %vm8849_vm6, %v11710_v63  ;;  %v3668_v22 = vadd.f32 %v3604_v29, %v3406_v42  ;;  %v3343_v55 = vsel %vm3241_vm3, %v9502_v18, 0.0  ;;  %vm3503_vm4 = vcmp.eq.s32.totalorder %v9813_v52, %v9511_v10  ;;  %vm3765_vm5 = vcmp.eq.s32.totalorder %v9813_v52, %v9527_v3 }
 0x211   : > { %4595 = vmatmul.mubr.f32.gmra.mrb[34].mxu0 %v11711_v59  ;;  %v3407_v23 = vadd.f32 %v3343_v55, %v3145_v61  ;;  %v3605_v51 = vsel %vm3503_vm4, %v9519_v16, 0.0  ;;  %v3867_v45 = vsel %vm3765_vm5, %v9532_v37, 0.0  ;;  %vm3045_vm7 = vcmp.eq.s32.totalorder %v9813_v52, %v9574_v56  ;;  %5790 = vmatmul.mubr.f32.vlgmr.msra.gmra.mrb[32].mxu1 %v9080_v11 }
 0x212   : > { %4600 = vmatprep.mubr.f32.mxu0 %v11654_v8  ;;  %v9909_v42 = vadd.f32 %v3866_v39, %v3668_v22  ;;  %v3147_v29 = vsel %vm3045_vm7, %v9577_v2, 0.0  ;;  %vm3243_vm8 = vcmp.eq.s32.totalorder %v9813_v52, %v9580_v7  ;;  %vm3505_vm10 = vcmp.eq.s32.totalorder %v9813_v52, %v9589_v32  ;;  %5795 = vmatprep.mubr.f32.mxu1 %v11654_v8  ;;  %v11713_v39 = vld [vmem:[#allocation33_spill] sm:$0xff]  ;;  %v11714_v22 = vld [vmem:[#allocation32_spill] sm:$0xff] }
 0x213   : > { %v3669_v61 = vadd.f32 %v3605_v51, %v3407_v23  ;;  %v3345_v55 = vsel %vm3243_vm8, %v9586_v49, 0.0  ;;  %v3607_v17 = vsel %vm3505_vm10, %v9592_v60, 0.0  ;;  %vm3767_vm11 = vcmp.eq.s32.totalorder %v9813_v52, %v9602_v6  ;;  %v11716_v23 = vld [vmem:[#allocation38_spill] sm:$0xff] }
 0x214   : > { %11712 = vst [vmem:[#allocation79_spill] sm:$0xff] %v9909_v42  ;;  %v11715_v12 = vpack.c.bf16 %v11713_v39, %v11714_v22  ;;  %v3409_v53 = vadd.f32 %v3345_v55, %v3147_v29  ;;  %v3869_v42 = vsel %vm3767_vm11, %v9613_v30, 0.0  ;;  %vm3044_vm13 = vcmp.eq.s32.totalorder %v9813_v52, %v9631_v48 }
 0x215   : > { %vm3242_vm14 = vcmp.eq.s32.totalorder %v9813_v52, %v9642_v47  ;;  %4602 = vmatmul.mubr.f32.gmra.mrb[36].mxu0 %v11716_v23  ;;  %v9934_v11 = vadd.f32 %v3867_v45, %v3669_v61  ;;  %v3146_v39 = vsel %vm3044_vm13, %v9639_v13, 0.0  ;;  %vm3504_vm0 = vcmp.eq.s32.totalorder %v9813_v52, %v9655_v0  ;;  %5797 = vmatmul.mubr.f32.gmra.mrb[34].mxu1 %v11711_v59 }
 0x216   : > { %7261 = vmatpush1.bf16.msra.mxu1 %v11715_v12  ;;  %v3344_v12 = vsel %vm3242_vm14, %v9645_v14, 0.0  ;;  %4607 = vmatprep.mubr.f32.mxu0 %v11654_v8  ;;  %v3671_v29 = vadd.f32 %v3607_v17, %v3409_v53  ;;  %v3606_v22 = vsel %vm3504_vm0, %v9658_v33, 0.0  ;;  %vm3766_vm1 = vcmp.eq.s32.totalorder %v9813_v52, %v9665_v1 }
 0x217   : > { %7263 = vmatprep.subr.msk.bf16.mxu1 %vm8873_vm9, %v11710_v63  ;;  %v3408_v55 = vadd.f32 %v3344_v12, %v3146_v39  ;;  %v3868_v45 = vsel %vm3766_vm1, %v9682_v43, 0.0  ;;  %vm3046_vm2 = vcmp.eq.s32.totalorder %v9813_v52, %v9686_v9  ;;  %vm3244_vm3 = vcmp.eq.s32.totalorder %v9813_v52, %v9705_v62  ;;  %5802 = vmatprep.mubr.f32.mxu1 %v11654_v8 }
 0x218   : > { %vm3506_vm4 = vcmp.eq.s32.totalorder %v9813_v52, %v9717_v27  ;;  %v9953_v17 = vadd.f32 %v3869_v42, %v3671_v29  ;;  %v3148_v61 = vsel %vm3046_vm2, %v9689_v24, 0.0  ;;  %v3346_v39 = vsel %vm3244_vm3, %v9708_v46, 0.0 }
 0x219   : > { %v3670_v53 = vadd.f32 %v3606_v22, %v3408_v55  ;;  %4609 = vmatmul.mubr.f32.gmra.mrb[38].mxu0 %v9176_v4  ;;  %v3410_v12 = vadd.f32 %v3346_v39, %v3148_v61  ;;  %v3608_v59 = vsel %vm3506_vm4, %v9720_v21, 0.0  ;;  %vm3768_vm5 = vcmp.eq.s32.totalorder %v9813_v52, %v9726_v28  ;;  %5804 = vmatmul.mubr.f32.gmra.mrb[36].mxu1 %v11716_v23 }
 0x21a   : > { %11718 = vst [vmem:[#allocation80_spill] sm:$0xff] %v9953_v17  ;;  %vm3047_vm7 = vcmp.eq.s32.totalorder %v9885_v35, %v9485_v15  ;;  %4614 = vmatprep.mubr.f32.mxu0 %v11654_v8  ;;  %v3870_v22 = vsel %vm3768_vm5, %v9744_v57, 0.0  ;;  %vm3245_vm8 = vcmp.eq.s32.totalorder %v9885_v35, %v9488_v34  ;;  %vm3507_vm10 = vcmp.eq.s32.totalorder %v9885_v35, %v9511_v10 }
 0x21b   : > { %v9964_v42 = vadd.f32 %v3868_v45, %v3670_v53  ;;  %v3149_v29 = vsel %vm3047_vm7, %v9499_v38, 0.0  ;;  %v3672_v55 = vadd.f32 %v3608_v59, %v3410_v12  ;;  %v3347_v61 = vsel %vm3245_vm8, %v9502_v18, 0.0  ;;  %5809 = vmatprep.mubr.f32.mxu1 %v11654_v8 }
 0x21c   : > { %vm3769_vm11 = vcmp.eq.s32.totalorder %v9885_v35, %v9527_v3  ;;  %v3411_v45 = vadd.f32 %v3347_v61, %v3149_v29  ;;  %v3609_v53 = vsel %vm3507_vm10, %v9519_v16, 0.0  ;;  %vm3049_vm13 = vcmp.eq.s32.totalorder %v9885_v35, %v9574_v56 }
 0x21d   : > { %v3871_v39 = vsel %vm3769_vm11, %v9532_v37, 0.0  ;;  %4616 = vmatmul.mubr.f32.gmra.mrb[40].mxu0 %v9221_v26  ;;  %v9982_v59 = vadd.f32 %v3870_v22, %v3672_v55  ;;  %v3151_v12 = vsel %vm3049_vm13, %v9577_v2, 0.0  ;;  %vm3247_vm14 = vcmp.eq.s32.totalorder %v9885_v35, %v9580_v7  ;;  %5811 = vmatmul.mubr.f32.gmra.mrb[38].mxu1 %v9176_v4 }
 0x21e   : > { %vm3509_vm0 = vcmp.eq.s32.totalorder %v9885_v35, %v9589_v32  ;;  %4621 = vmatprep.mubr.f32.mxu0 %v11654_v8  ;;  %v3673_v29 = vadd.f32 %v3609_v53, %v3411_v45  ;;  %v3349_v61 = vsel %vm3247_vm14, %v9586_v49, 0.0  ;;  %vm3771_vm1 = vcmp.eq.s32.totalorder %v9885_v35, %v9602_v6  ;;  %5816 = vmatprep.mubr.f32.mxu1 %v11654_v8 }
 0x21f   : > { %11719 = vst [vmem:[#allocation81_spill] sm:$0xff] %v9982_v59  ;;  %v3611_v52 = vsel %vm3509_vm0, %v9592_v60, 0.0  ;;  %v3413_v22 = vadd.f32 %v3349_v61, %v3151_v12  ;;  %v3873_v55 = vsel %vm3771_vm1, %v9613_v30, 0.0  ;;  %vm3048_vm2 = vcmp.eq.s32.totalorder %v9885_v35, %v9631_v48 }
 0x220   : > { %vm3246_vm3 = vcmp.eq.s32.totalorder %v9885_v35, %v9642_v47  ;;  %v10001_v45 = vadd.f32 %v3871_v39, %v3673_v29  ;;  %v3150_v53 = vsel %vm3048_vm2, %v9639_v13, 0.0  ;;  %vm3508_vm4 = vcmp.eq.s32.totalorder %v9885_v35, %v9655_v0 }
 0x221   : > { %v3348_v23 = vsel %vm3246_vm3, %v9645_v14, 0.0  ;;  %4623 = vmatmul.mubr.f32.gmra.mrb[42].mxu0 %v9223_v58  ;;  %v3675_v12 = vadd.f32 %v3611_v52, %v3413_v22  ;;  %v3610_v4 = vsel %vm3508_vm4, %v9658_v33, 0.0  ;;  %vm3770_vm5 = vcmp.eq.s32.totalorder %v9885_v35, %v9665_v1  ;;  %5818 = vmatmul.mubr.f32.gmra.mrb[40].mxu1 %v9221_v26 }
 0x222   : > { %11720 = vst [vmem:[#allocation82_spill] sm:$0xff] %v10001_v45  ;;  %v3412_v61 = vadd.f32 %v3348_v23, %v3150_v53  ;;  %4628 = vmatprep.mubr.f32.mxu0 %v11654_v8  ;;  %v3872_v39 = vsel %vm3770_vm5, %v9682_v43, 0.0  ;;  %vm3050_vm7 = vcmp.eq.s32.totalorder %v9885_v35, %v9686_v9  ;;  %vm3248_vm8 = vcmp.eq.s32.totalorder %v9885_v35, %v9705_v62 }
 0x223   : > { %vm3510_vm10 = vcmp.eq.s32.totalorder %v9885_v35, %v9717_v27  ;;  %v10020_v52 = vadd.f32 %v3873_v55, %v3675_v12  ;;  %v3152_v29 = vsel %vm3050_vm7, %v9689_v24, 0.0  ;;  %v3350_v22 = vsel %vm3248_vm8, %v9708_v46, 0.0  ;;  %5823 = vmatprep.mubr.f32.mxu1 %v11654_v8 }
 0x224   : > { %v3674_v23 = vadd.f32 %v3610_v4, %v3412_v61  ;;  %v3414_v53 = vadd.f32 %v3350_v22, %v3152_v29  ;;  %v3612_v51 = vsel %vm3510_vm10, %v9720_v21, 0.0  ;;  %vm3772_vm11 = vcmp.eq.s32.totalorder %v9885_v35, %v9726_v28 }
 0x225   : > { %11721 = vst [vmem:[#allocation83_spill] sm:$0xff] %v10020_v52  ;;  %v10029_v59 = vadd.s32 40, %v11598_v31  ;;  %4630 = vmatmul.mubr.f32.gmra.mrb[44].mxu0 %v9233_v36  ;;  %v3874_v4 = vsel %vm3772_vm11, %v9744_v57, 0.0  ;;  %v10036_v12 = vadd.s32 48, %v11598_v31  ;;  %v10039_v61 = vadd.s32 56, %v11598_v31  ;;  %5825 = vmatmul.mubr.f32.gmra.mrb[42].mxu1 %v9223_v58  ;;  %v11727_v58 = vld [vmem:[#allocation42_spill] sm:$0xff] }
 0x226   : > { %v10032_v55 = vadd.f32 %v3872_v39, %v3674_v23  ;;  %4635 = vmatprep.mubr.f32.mxu0 %v11654_v8  ;;  %v3676_v29 = vadd.f32 %v3612_v51, %v3414_v53  ;;  %5830 = vmatprep.mubr.f32.mxu1 %v11654_v8 }
 0x227   : > { %11722 = vst [vmem:[#allocation84_spill] sm:$0xff] %v10029_v59  ;;  %11724 = vst [vmem:[#allocation86_spill] sm:$0xff] %v10036_v12  ;;  %vm3051_vm13 = vcmp.eq.s32.totalorder %v10029_v59, %v9485_v15  ;;  %vm3249_vm14 = vcmp.eq.s32.totalorder %v10029_v59, %v9488_v34  ;;  %vm3511_vm0 = vcmp.eq.s32.totalorder %v10029_v59, %v9511_v10 }
 0x228   : > { %11723 = vst [vmem:[#allocation85_spill] sm:$0xff] %v10032_v55  ;;  %11725 = vst [vmem:[#allocation87_spill] sm:$0xff] %v10039_v61  ;;  %v3153_v39 = vsel %vm3051_vm13, %v9499_v38, 0.0  ;;  %v3351_v23 = vsel %vm3249_vm14, %v9502_v18, 0.0  ;;  %v3613_v22 = vsel %vm3511_vm0, %v9519_v16, 0.0  ;;  %vm3773_vm1 = vcmp.eq.s32.totalorder %v10029_v59, %v9527_v3 }
 0x229   : > { %v10055_v51 = vadd.f32 %v3874_v4, %v3676_v29  ;;  %v3415_v53 = vadd.f32 %v3351_v23, %v3153_v39  ;;  %v3875_v35 = vsel %vm3773_vm1, %v9532_v37, 0.0  ;;  %vm3053_vm2 = vcmp.eq.s32.totalorder %v10029_v59, %v9574_v56  ;;  %4637 = vmatmul.mubr.f32.gmra.mrb[46].mxu0 %v11727_v58  ;;  %5832 = vmatmul.mubr.f32.gmra.mrb[44].mxu1 %v9233_v36 }
 0x22a   : > { %v3155_v26 = vsel %vm3053_vm2, %v9577_v2, 0.0  ;;  %vm3251_vm3 = vcmp.eq.s32.totalorder %v10029_v59, %v9580_v7  ;;  %vm3513_vm4 = vcmp.eq.s32.totalorder %v10029_v59, %v9589_v32  ;;  %vm3775_vm5 = vcmp.eq.s32.totalorder %v10029_v59, %v9602_v6  ;;  %4642 = vmatprep.mubr.f32.mxu0 %v11654_v8  ;;  %5837 = vmatprep.mubr.f32.mxu1 %v11654_v8 }
 0x22b   : > { %11726 = vst [vmem:[#allocation88_spill] sm:$0xff] %v10055_v51  ;;  %v3677_v4 = vadd.f32 %v3613_v22, %v3415_v53  ;;  %v3353_v29 = vsel %vm3251_vm3, %v9586_v49, 0.0  ;;  %v3615_v39 = vsel %vm3513_vm4, %v9592_v60, 0.0  ;;  %v3877_v23 = vsel %vm3775_vm5, %v9613_v30, 0.0 }
 0x22c   : > { %v3417_v51 = vadd.f32 %v3353_v29, %v3155_v26  ;;  %vm3052_vm7 = vcmp.eq.s32.totalorder %v10029_v59, %v9631_v48  ;;  %vm3250_vm8 = vcmp.eq.s32.totalorder %v10029_v59, %v9642_v47  ;;  %vm3512_vm10 = vcmp.eq.s32.totalorder %v10029_v59, %v9655_v0  ;;  %v11729_v26 = vld [vmem:[#allocation43_spill] sm:$0xff] }
 0x22d   : > { %v10080_v22 = vadd.f32 %v3875_v35, %v3677_v4  ;;  %v3154_v53 = vsel %vm3052_vm7, %v9639_v13, 0.0  ;;  %v3352_v52 = vsel %vm3250_vm8, %v9645_v14, 0.0  ;;  %v3614_v36 = vsel %vm3512_vm10, %v9658_v33, 0.0  ;;  %4644 = vmatmul.mubr.f32.gmra.mrb[48].mxu0 %v11729_v26  ;;  %5839 = vmatmul.mubr.f32.gmra.mrb[46].mxu1 %v11727_v58  ;;  %v11731_v58 = vld [vmem:[#allocation44_spill] sm:$0xff] }
 0x22e   : > { %v3679_v29 = vadd.f32 %v3615_v39, %v3417_v51  ;;  %v3416_v17 = vadd.f32 %v3352_v52, %v3154_v53  ;;  %vm3774_vm11 = vcmp.eq.s32.totalorder %v10029_v59, %v9665_v1  ;;  %vm3054_vm13 = vcmp.eq.s32.totalorder %v10029_v59, %v9686_v9  ;;  %4649 = vmatprep.mubr.f32.mxu0 %v11654_v8 }
 0x22f   : > { %11728 = vst [vmem:[#allocation89_spill] sm:$0xff] %v10080_v22  ;;  %v3876_v35 = vsel %vm3774_vm11, %v9682_v43, 0.0  ;;  %v3156_v4 = vsel %vm3054_vm13, %v9689_v24, 0.0  ;;  %vm3252_vm14 = vcmp.eq.s32.totalorder %v10029_v59, %v9705_v62  ;;  %vm3514_vm0 = vcmp.eq.s32.totalorder %v10029_v59, %v9717_v27  ;;  %5844 = vmatprep.mubr.f32.mxu1 %v11654_v8 }
 0x230   : > { %v10098_v52 = vadd.f32 %v3877_v23, %v3679_v29  ;;  %v3678_v51 = vadd.f32 %v3614_v36, %v3416_v17  ;;  %v3354_v39 = vsel %vm3252_vm14, %v9708_v46, 0.0  ;;  %v3616_v53 = vsel %vm3514_vm0, %v9720_v21, 0.0 }
 0x231   : > { %v3418_v22 = vadd.f32 %v3354_v39, %v3156_v4  ;;  %vm3776_vm1 = vcmp.eq.s32.totalorder %v10029_v59, %v9726_v28  ;;  %vm3055_vm2 = vcmp.eq.s32.totalorder %v10036_v12, %v9485_v15  ;;  %vm3253_vm3 = vcmp.eq.s32.totalorder %v10036_v12, %v9488_v34  ;;  %4651 = vmatmul.mubr.f32.gmra.mrb[50].mxu0 %v11731_v58  ;;  %v11734_v59 = vld [vmem:[#allocation45_spill] sm:$0xff] }
 0x232   : > { %11730 = vst [vmem:[#allocation90_spill] sm:$0xff] %v10098_v52  ;;  %v10110_v23 = vadd.f32 %v3876_v35, %v3678_v51  ;;  %v3878_v36 = vsel %vm3776_vm1, %v9744_v57, 0.0  ;;  %v3157_v17 = vsel %vm3055_vm2, %v9499_v38, 0.0  ;;  %v3355_v29 = vsel %vm3253_vm3, %v9502_v18, 0.0  ;;  %4656 = vmatprep.mubr.f32.mxu0 %v11654_v8  ;;  %5846 = vmatmul.mubr.f32.gmra.mrb[48].mxu1 %v11729_v26 }
 0x233   : > { %v3680_v4 = vadd.f32 %v3616_v53, %v3418_v22  ;;  %v3419_v39 = vadd.f32 %v3355_v29, %v3157_v17  ;;  %vm3515_vm4 = vcmp.eq.s32.totalorder %v10036_v12, %v9511_v10  ;;  %vm3777_vm5 = vcmp.eq.s32.totalorder %v10036_v12, %v9527_v3  ;;  %5851 = vmatprep.mubr.f32.mxu1 %v11654_v8 }
 0x234   : > { %11732 = vst [vmem:[#allocation91_spill] sm:$0xff] %v10110_v23  ;;  %v3617_v35 = vsel %vm3515_vm4, %v9519_v16, 0.0  ;;  %v3879_v51 = vsel %vm3777_vm5, %v9532_v37, 0.0  ;;  %vm3057_vm7 = vcmp.eq.s32.totalorder %v10036_v12, %v9574_v56  ;;  %vm3255_vm8 = vcmp.eq.s32.totalorder %v10036_v12, %v9580_v7 }
 0x235   : > { %v10128_v22 = vadd.f32 %v3878_v36, %v3680_v4  ;;  %v3681_v53 = vadd.f32 %v3617_v35, %v3419_v39  ;;  %v3159_v17 = vsel %vm3057_vm7, %v9577_v2, 0.0  ;;  %v3357_v29 = vsel %vm3255_vm8, %v9586_v49, 0.0  ;;  %4658 = vmatmul.mubr.f32.gmra.mrb[52].mxu0 %v11734_v59 }
 0x236   : > { %v3421_v26 = vadd.f32 %v3357_v29, %v3159_v17  ;;  %vm3517_vm10 = vcmp.eq.s32.totalorder %v10036_v12, %v9589_v32  ;;  %vm3779_vm11 = vcmp.eq.s32.totalorder %v10036_v12, %v9602_v6  ;;  %vm3056_vm13 = vcmp.eq.s32.totalorder %v10036_v12, %v9631_v48  ;;  %4663 = vmatprep.mubr.f32.mxu0 %v11654_v8 }
 0x237   : > { %11733 = vst [vmem:[#allocation92_spill] sm:$0xff] %v10128_v22  ;;  %v10140_v36 = vadd.f32 %v3879_v51, %v3681_v53  ;;  %v3619_v4 = vsel %vm3517_vm10, %v9592_v60, 0.0  ;;  %v3881_v39 = vsel %vm3779_vm11, %v9613_v30, 0.0  ;;  %v3158_v35 = vsel %vm3056_vm13, %v9639_v13, 0.0  ;;  %5853 = vmatmul.mubr.f32.gmra.mrb[50].mxu1 %v11731_v58 }
 0x238   : > { %v3683_v17 = vadd.f32 %v3619_v4, %v3421_v26  ;;  %vm3254_vm14 = vcmp.eq.s32.totalorder %v10036_v12, %v9642_v47  ;;  %vm3516_vm0 = vcmp.eq.s32.totalorder %v10036_v12, %v9655_v0  ;;  %vm3778_vm1 = vcmp.eq.s32.totalorder %v10036_v12, %v9665_v1  ;;  %5858 = vmatprep.mubr.f32.mxu1 %v11654_v8  ;;  %v11736_v26 = vld [vmem:[#allocation46_spill] sm:$0xff] }
 0x239   : > { %11735 = vst [vmem:[#allocation93_spill] sm:$0xff] %v10140_v36  ;;  %v3356_v51 = vsel %vm3254_vm14, %v9645_v14, 0.0  ;;  %v3618_v53 = vsel %vm3516_vm0, %v9658_v33, 0.0  ;;  %v3880_v29 = vsel %vm3778_vm1, %v9682_v43, 0.0  ;;  %vm3058_vm2 = vcmp.eq.s32.totalorder %v10036_v12, %v9686_v9  ;;  %4665 = vmatmul.mubr.f32.gmra.mrb[54].mxu0 %v11736_v26 }
 0x23a   : > { %v10159_v4 = vadd.f32 %v3881_v39, %v3683_v17  ;;  %v3420_v58 = vadd.f32 %v3356_v51, %v3158_v35  ;;  %v3160_v22 = vsel %vm3058_vm2, %v9689_v24, 0.0  ;;  %vm3256_vm3 = vcmp.eq.s32.totalorder %v10036_v12, %v9705_v62  ;;  %4670 = vmatprep.mubr.f32.mxu0 %v11654_v8 }
 0x23b   : > { %v3358_v52 = vsel %vm3256_vm3, %v9708_v46, 0.0  ;;  %vm3518_vm4 = vcmp.eq.s32.totalorder %v10036_v12, %v9717_v27  ;;  %vm3780_vm5 = vcmp.eq.s32.totalorder %v10036_v12, %v9726_v28  ;;  %vm3059_vm7 = vcmp.eq.s32.totalorder %v10039_v61, %v9485_v15  ;;  %5860 = vmatmul.mubr.f32.gmra.mrb[52].mxu1 %v11734_v59  ;;  %v11738_v12 = vld [vmem:[#allocation47_spill] sm:$0xff] }
 0x23c   : > { %11737 = vst [vmem:[#allocation94_spill] sm:$0xff] %v10159_v4  ;;  %v3682_v39 = vadd.f32 %v3618_v53, %v3420_v58  ;;  %v3422_v35 = vadd.f32 %v3358_v52, %v3160_v22  ;;  %v3620_v17 = vsel %vm3518_vm4, %v9720_v21, 0.0  ;;  %v3882_v51 = vsel %vm3780_vm5, %v9744_v57, 0.0  ;;  %5865 = vmatprep.mubr.f32.mxu1 %v11654_v8 }
 0x23d   : > { %v3161_v4 = vsel %vm3059_vm7, %v9499_v38, 0.0  ;;  %vm3257_vm8 = vcmp.eq.s32.totalorder %v10039_v61, %v9488_v34  ;;  %vm3519_vm10 = vcmp.eq.s32.totalorder %v10039_v61, %v9511_v10  ;;  %vm3781_vm11 = vcmp.eq.s32.totalorder %v10039_v61, %v9527_v3  ;;  %4672 = vmatmul.mubr.f32.gmra.mrb[56].mxu0 %v11738_v12 }
 0x23e   : > { %v10184_v58 = vadd.f32 %v3880_v29, %v3682_v39  ;;  %v3684_v52 = vadd.f32 %v3620_v17, %v3422_v35  ;;  %v3359_v22 = vsel %vm3257_vm8, %v9502_v18, 0.0  ;;  %v3621_v53 = vsel %vm3519_vm10, %v9519_v16, 0.0  ;;  %4677 = vmatprep.mubr.f32.mxu0 %v11654_v8 }
 0x23f   : > { %v3423_v59 = vadd.f32 %v3359_v22, %v3161_v4  ;;  %v3883_v36 = vsel %vm3781_vm11, %v9532_v37, 0.0  ;;  %vm3061_vm13 = vcmp.eq.s32.totalorder %v10039_v61, %v9574_v56  ;;  %vm3259_vm14 = vcmp.eq.s32.totalorder %v10039_v61, %v9580_v7  ;;  %5867 = vmatmul.mubr.f32.gmra.mrb[54].mxu1 %v11736_v26 }
 0x240   : > { %11739 = vst [vmem:[#allocation95_spill] sm:$0xff] %v10184_v58  ;;  %v10195_v29 = vadd.f32 %v3882_v51, %v3684_v52  ;;  %v3163_v39 = vsel %vm3061_vm13, %v9577_v2, 0.0  ;;  %v3361_v35 = vsel %vm3259_vm14, %v9586_v49, 0.0  ;;  %vm3521_vm0 = vcmp.eq.s32.totalorder %v10039_v61, %v9589_v32  ;;  %5872 = vmatprep.mubr.f32.mxu1 %v11654_v8  ;;  %v11741_v58 = vld [vmem:[#allocation48_spill] sm:$0xff] }
 0x241   : > { %v3685_v4 = vadd.f32 %v3621_v53, %v3423_v59  ;;  %v3425_v17 = vadd.f32 %v3361_v35, %v3163_v39  ;;  %v3623_v22 = vsel %vm3521_vm0, %v9592_v60, 0.0  ;;  %vm3783_vm1 = vcmp.eq.s32.totalorder %v10039_v61, %v9602_v6  ;;  %4679 = vmatmul.mubr.f32.gmra.mrb[58].mxu0 %v11741_v58 }
 0x242   : > { %11740 = vst [vmem:[#allocation96_spill] sm:$0xff] %v10195_v29  ;;  %v3885_v51 = vsel %vm3783_vm1, %v9613_v30, 0.0  ;;  %vm3060_vm2 = vcmp.eq.s32.totalorder %v10039_v61, %v9631_v48  ;;  %vm3258_vm3 = vcmp.eq.s32.totalorder %v10039_v61, %v9642_v47  ;;  %vm3520_vm4 = vcmp.eq.s32.totalorder %v10039_v61, %v9655_v0  ;;  %4684 = vmatprep.mubr.f32.mxu0 %v11654_v8 }
 0x243   : > { %v10214_v59 = vadd.f32 %v3883_v36, %v3685_v4  ;;  %v3687_v52 = vadd.f32 %v3623_v22, %v3425_v17  ;;  %v3162_v53 = vsel %vm3060_vm2, %v9639_v13, 0.0  ;;  %v3360_v39 = vsel %vm3258_vm3, %v9645_v14, 0.0  ;;  %5874 = vmatmul.mubr.f32.gmra.mrb[56].mxu1 %v11738_v12  ;;  %v11744_v22 = vld [vmem:[#allocation49_spill] sm:$0xff] }
 0x244   : > { %v3424_v35 = vadd.f32 %v3360_v39, %v3162_v53  ;;  %v3622_v26 = vsel %vm3520_vm4, %v9658_v33, 0.0  ;;  %vm3782_vm5 = vcmp.eq.s32.totalorder %v10039_v61, %v9665_v1  ;;  %vm3062_vm7 = vcmp.eq.s32.totalorder %v10039_v61, %v9686_v9  ;;  %5879 = vmatprep.mubr.f32.mxu1 %v11654_v8 }
 0x245   : > { %11742 = vst [vmem:[#allocation97_spill] sm:$0xff] %v10214_v59  ;;  %v10225_v36 = vadd.f32 %v3885_v51, %v3687_v52  ;;  %v3884_v4 = vsel %vm3782_vm5, %v9682_v43, 0.0  ;;  %v3164_v17 = vsel %vm3062_vm7, %v9689_v24, 0.0  ;;  %vm3260_vm8 = vcmp.eq.s32.totalorder %v10039_v61, %v9705_v62  ;;  %4686 = vmatmul.mubr.f32.gmra.mrb[60].mxu0 %v11744_v22 }
 0x246   : > { %v3686_v53 = vadd.f32 %v3622_v26, %v3424_v35  ;;  %v3362_v39 = vsel %vm3260_vm8, %v9708_v46, 0.0  ;;  %vm3522_vm10 = vcmp.eq.s32.totalorder %v10039_v61, %v9717_v27  ;;  %vm3784_vm11 = vcmp.eq.s32.totalorder %v10039_v61, %v9726_v28  ;;  %4691 = vmatprep.mubr.f32.mxu0 %v11654_v8 }
 0x247   : > { %11743 = vst [vmem:[#allocation98_spill] sm:$0xff] %v10225_v36  ;;  %v3426_v51 = vadd.f32 %v3362_v39, %v3164_v17  ;;  %v3624_v52 = vsel %vm3522_vm10, %v9720_v21, 0.0  ;;  %v3886_v12 = vsel %vm3784_vm11, %v9744_v57, 0.0  ;;  %v10241_v36 = vadd.s32 64, %v11598_v31  ;;  %5881 = vmatmul.mubr.f32.gmra.mrb[58].mxu1 %v11741_v58 }
 0x248   : > { %v10244_v26 = vadd.f32 %v3884_v4, %v3686_v53  ;;  %v10247_v35 = vadd.s32 72, %v11598_v31  ;;  %v10250_v29 = vadd.s32 80, %v11598_v31  ;;  %v10253_v61 = vadd.s32 88, %v11598_v31  ;;  %5886 = vmatprep.mubr.f32.mxu1 %v11654_v8  ;;  %v11750_v4 = vld [vmem:[#allocation50_spill] sm:$0xff] }
 0x249   : > { %11745 = vst [vmem:[#allocation99_spill] sm:$0xff] %v10241_v36  ;;  %v3688_v17 = vadd.f32 %v3624_v52, %v3426_v51  ;;  %vm3063_vm13 = vcmp.eq.s32.totalorder %v10241_v36, %v9485_v15  ;;  %vm3261_vm14 = vcmp.eq.s32.totalorder %v10241_v36, %v9488_v34  ;;  %vm3523_vm0 = vcmp.eq.s32.totalorder %v10241_v36, %v9511_v10 }
 0x24a   : > { %11746 = vst [vmem:[#allocation100_spill] sm:$0xff] %v10244_v26  ;;  %11747 = vst [vmem:[#allocation101_spill] sm:$0xff] %v10247_v35  ;;  %4693 = vmatmul.mubr.f32.gmra.mrb[62].mxu0 %v11750_v4  ;;  %v3165_v53 = vsel %vm3063_vm13, %v9499_v38, 0.0  ;;  %v3363_v39 = vsel %vm3261_vm14, %v9502_v18, 0.0  ;;  %v3625_v58 = vsel %vm3523_vm0, %v9519_v16, 0.0  ;;  %vm3785_vm1 = vcmp.eq.s32.totalorder %v10241_v36, %v9527_v3 }
 0x24b   : > { %11748 = vst [vmem:[#allocation102_spill] sm:$0xff] %v10250_v29  ;;  %11749 = vst [vmem:[#allocation103_spill] sm:$0xff] %v10253_v61  ;;  %4767 = vmatprep.mubr.f32.mxu0 %v11654_v8  ;;  %v10269_v51 = vadd.f32 %v3886_v12, %v3688_v17  ;;  %v3427_v52 = vadd.f32 %v3363_v39, %v3165_v53  ;;  %v3887_v26 = vsel %vm3785_vm1, %v9532_v37, 0.0  ;;  %5888 = vmatmul.mubr.f32.gmra.mrb[60].mxu1 %v11744_v22  ;;  %v11752_v22 = vld [vmem:[#allocation35_spill] sm:$0xff] }
 0x24c   : > { %vm3065_vm2 = vcmp.eq.s32.totalorder %v10241_v36, %v9574_v56  ;;  %vm3263_vm3 = vcmp.eq.s32.totalorder %v10241_v36, %v9580_v7  ;;  %vm3525_vm4 = vcmp.eq.s32.totalorder %v10241_v36, %v9589_v32  ;;  %vm3787_vm5 = vcmp.eq.s32.totalorder %v10241_v36, %v9602_v6  ;;  %5893 = vmatprep.mubr.f32.mxu1 %v11654_v8 }
 0x24d   : > { %11751 = vst [vmem:[#allocation104_spill] sm:$0xff] %v10269_v51  ;;  %v3167_v59 = vsel %vm3065_vm2, %v9577_v2, 0.0  ;;  %v3689_v12 = vadd.f32 %v3625_v58, %v3427_v52  ;;  %v3365_v17 = vsel %vm3263_vm3, %v9586_v49, 0.0  ;;  %v3627_v53 = vsel %vm3525_vm4, %v9592_v60, 0.0 }
 0x24e   : > { %v3889_v39 = vsel %vm3787_vm5, %v9613_v30, 0.0  ;;  %4770 = vmatmul.mubr.f32.vlgmr.msra.gmra.mrb[32].mxu0 %v11752_v22  ;;  %v3429_v51 = vadd.f32 %v3365_v17, %v3167_v59  ;;  %vm3064_vm7 = vcmp.eq.s32.totalorder %v10241_v36, %v9631_v48  ;;  %vm3262_vm8 = vcmp.eq.s32.totalorder %v10241_v36, %v9642_v47 }
 0x24f   : > { %vm3524_vm10 = vcmp.eq.s32.totalorder %v10241_v36, %v9655_v0  ;;  %4775 = vmatprep.mubr.f32.mxu0 %v11654_v8  ;;  %7241 = vmatpush1.bf16.msk.msra.mxu0 %vm8990_vm12, %v11710_v63  ;;  %v10297_v52 = vadd.f32 %v3887_v26, %v3689_v12  ;;  %v3166_v23 = vsel %vm3064_vm7, %v9639_v13, 0.0  ;;  %v3364_v59 = vsel %vm3262_vm8, %v9645_v14, 0.0 }
 0x250   : > { %v3626_v17 = vsel %vm3524_vm10, %v9658_v33, 0.0  ;;  %5895 = vmatmul.mubr.f32.gmra.mrb[62].mxu1 %v11750_v4  ;;  %v3691_v55 = vadd.f32 %v3627_v53, %v3429_v51  ;;  %v3428_v45 = vadd.f32 %v3364_v59, %v3166_v23  ;;  %vm3786_vm11 = vcmp.eq.s32.totalorder %v10241_v36, %v9665_v1  ;;  %v11755_v51 = vld [vmem:[#allocation39_spill] sm:$0xff] }
 0x251   : > { %11754 = vst [vmem:[#allocation35_spill] sm:$0xff] %v10297_v52  ;;  %vm3066_vm13 = vcmp.eq.s32.totalorder %v10241_v36, %v9686_v9  ;;  %5969 = vmatprep.mubr.f32.mxu1 %v11654_v8  ;;  %v3888_v26 = vsel %vm3786_vm11, %v9682_v43, 0.0  ;;  %vm3264_vm14 = vcmp.eq.s32.totalorder %v10241_v36, %v9705_v62  ;;  %vm3526_vm0 = vcmp.eq.s32.totalorder %v10241_v36, %v9717_v27  ;;  %v11772_v52 = vld [vmem:[#allocation55_spill] sm:$0xff] }
 0x252   : > { %v3168_v12 = vsel %vm3066_vm13, %v9689_v24, 0.0  ;;  %4778 = vmatmul.mubr.f32.gmra.mrb[34].mxu0 %v11755_v51  ;;  %v10315_v23 = vadd.f32 %v3889_v39, %v3691_v55  ;;  %v3690_v53 = vadd.f32 %v3626_v17, %v3428_v45  ;;  %v3366_v59 = vsel %vm3264_vm14, %v9708_v46, 0.0 }
 0x253   : > { %v3628_v4 = vsel %vm3526_vm0, %v9720_v21, 0.0  ;;  %4783 = vmatprep.mubr.f32.mxu0 %v11654_v8  ;;  %v3430_v58 = vadd.f32 %v3366_v59, %v3168_v12  ;;  %vm3788_vm1 = vcmp.eq.s32.totalorder %v10241_v36, %v9726_v28  ;;  %vm3067_vm2 = vcmp.eq.s32.totalorder %v10247_v35, %v9485_v15 }
 0x254   : > { %11756 = vst [vmem:[#allocation39_spill] sm:$0xff] %v10315_v23  ;;  %vm3265_vm3 = vcmp.eq.s32.totalorder %v10247_v35, %v9488_v34  ;;  %5972 = vmatmul.mubr.f32.vlgmr.msra.gmra.mrb[32].mxu1 %v11752_v22  ;;  %v10327_v55 = vadd.f32 %v3888_v26, %v3690_v53  ;;  %v3890_v45 = vsel %vm3788_vm1, %v9744_v57, 0.0  ;;  %v3169_v39 = vsel %vm3067_vm2, %v9499_v38, 0.0  ;;  %v11760_v26 = vld [vmem:[#allocation40_spill] sm:$0xff] }
 0x255   : > { %v3367_v17 = vsel %vm3265_vm3, %v9502_v18, 0.0  ;;  %5977 = vmatprep.mubr.f32.mxu1 %v11654_v8  ;;  %7265 = vmatpush1.bf16.msk.msra.mxu1 %vm9008_vm15, %v11710_v63  ;;  %v3692_v59 = vadd.f32 %v3628_v4, %v3430_v58  ;;  %vm3527_vm4 = vcmp.eq.s32.totalorder %v10247_v35, %v9511_v10  ;;  %v10339_v22 = vadd.s32 96, %v11598_v31 }
 0x256   : > { %11757 = vst [vmem:[#allocation105_spill] sm:$0xff] %v10327_v55  ;;  %v3431_v36 = vadd.f32 %v3367_v17, %v3169_v39  ;;  %4786 = vmatmul.mubr.f32.gmra.mrb[36].mxu0 %v11760_v26  ;;  %v3629_v53 = vsel %vm3527_vm4, %v9519_v16, 0.0  ;;  %vm3789_vm5 = vcmp.eq.s32.totalorder %v10247_v35, %v9527_v3  ;;  %vm3069_vm7 = vcmp.eq.s32.totalorder %v10247_v35, %v9574_v56 }
 0x257   : > { %11759 = vst [vmem:[#allocation106_spill] sm:$0xff] %v10339_v22  ;;  %vm3267_vm8 = vcmp.eq.s32.totalorder %v10247_v35, %v9580_v7  ;;  %4791 = vmatprep.mubr.f32.mxu0 %v11654_v8  ;;  %v10350_v4 = vadd.f32 %v3890_v45, %v3692_v59  ;;  %v3891_v39 = vsel %vm3789_vm5, %v9532_v37, 0.0  ;;  %v3171_v17 = vsel %vm3069_vm7, %v9577_v2, 0.0 }
 0x258   : > { %v3693_v58 = vadd.f32 %v3629_v53, %v3431_v36  ;;  %5980 = vmatmul.mubr.f32.gmra.mrb[34].mxu1 %v11755_v51  ;;  %v3369_v12 = vsel %vm3267_vm8, %v9586_v49, 0.0  ;;  %vm3529_vm10 = vcmp.eq.s32.totalorder %v10247_v35, %v9589_v32  ;;  %vm3791_vm11 = vcmp.eq.s32.totalorder %v10247_v35, %v9602_v6  ;;  %v11763_v53 = vld [vmem:[#allocation51_spill] sm:$0xff] }
 0x259   : > { %11761 = vst [vmem:[#allocation40_spill] sm:$0xff] %v10350_v4  ;;  %vm3068_vm13 = vcmp.eq.s32.totalorder %v10247_v35, %v9631_v48  ;;  %5985 = vmatprep.mubr.f32.mxu1 %v11654_v8  ;;  %v3433_v45 = vadd.f32 %v3369_v12, %v3171_v17  ;;  %v3631_v59 = vsel %vm3529_vm10, %v9592_v60, 0.0  ;;  %v3893_v51 = vsel %vm3791_vm11, %v9613_v30, 0.0 }
 0x25a   : > { %v10363_v36 = vadd.f32 %v3891_v39, %v3693_v58  ;;  %4794 = vmatmul.mubr.f32.gmra.mrb[38].mxu0 %v11763_v53  ;;  %v3170_v63 = vsel %vm3068_vm13, %v9639_v13, 0.0  ;;  %vm3266_vm14 = vcmp.eq.s32.totalorder %v10247_v35, %v9642_v47  ;;  %vm3528_vm0 = vcmp.eq.s32.totalorder %v10247_v35, %v9655_v0 }
 0x25b   : > { %vm3790_vm1 = vcmp.eq.s32.totalorder %v10247_v35, %v9665_v1  ;;  %4799 = vmatprep.mubr.f32.mxu0 %v11654_v8  ;;  %v3695_v12 = vadd.f32 %v3631_v59, %v3433_v45  ;;  %v3368_v58 = vsel %vm3266_vm14, %v9645_v14, 0.0  ;;  %v3630_v39 = vsel %vm3528_vm0, %v9658_v33, 0.0 }
 0x25c   : > { %11762 = vst [vmem:[#allocation107_spill] sm:$0xff] %v10363_v36  ;;  %v3892_v17 = vsel %vm3790_vm1, %v9682_v43, 0.0  ;;  %5988 = vmatmul.mubr.f32.gmra.mrb[36].mxu1 %v11760_v26  ;;  %v3432_v31 = vadd.f32 %v3368_v58, %v3170_v63  ;;  %vm3070_vm2 = vcmp.eq.s32.totalorder %v10247_v35, %v9686_v9  ;;  %vm3268_vm3 = vcmp.eq.s32.totalorder %v10247_v35, %v9705_v62  ;;  %v11765_v63 = vld [vmem:[#allocation52_spill] sm:$0xff] }
 0x25d   : > { %vm3530_vm4 = vcmp.eq.s32.totalorder %v10247_v35, %v9717_v27  ;;  %5993 = vmatprep.mubr.f32.mxu1 %v11654_v8  ;;  %v10387_v45 = vadd.f32 %v3893_v51, %v3695_v12  ;;  %v3172_v59 = vsel %vm3070_vm2, %v9689_v24, 0.0  ;;  %v3370_v4 = vsel %vm3268_vm3, %v9708_v46, 0.0 }
 0x25e   : > { %v3632_v26 = vsel %vm3530_vm4, %v9720_v21, 0.0  ;;  %4802 = vmatmul.mubr.f32.gmra.mrb[40].mxu0 %v11765_v63  ;;  %v3694_v58 = vadd.f32 %v3630_v39, %v3432_v31  ;;  %v3434_v23 = vadd.f32 %v3370_v4, %v3172_v59  ;;  %vm3792_vm5 = vcmp.eq.s32.totalorder %v10247_v35, %v9726_v28  ;;  %v1629_v35 = vpop.f32.mrb[0].mxu0 }
 0x25f   : > { %11764 = vst [vmem:[#allocation51_spill] sm:$0xff] %v10387_v45  ;;  %vm3071_vm7 = vcmp.eq.s32.totalorder %v10250_v29, %v9485_v15  ;;  %4807 = vmatprep.mubr.f32.mxu0 %v11654_v8  ;;  %v3894_v51 = vsel %vm3792_vm5, %v9744_v57, 0.0  ;;  %vm3269_vm8 = vcmp.eq.s32.totalorder %v10250_v29, %v9488_v34  ;;  %vm3531_vm10 = vcmp.eq.s32.totalorder %v10250_v29, %v9511_v10 }
 0x260   : > { %v3173_v12 = vsel %vm3071_vm7, %v9499_v38, 0.0  ;;  %5996 = vmatmul.mubr.f32.gmra.mrb[38].mxu1 %v11763_v53  ;;  %v10405_v31 = vadd.f32 %v3892_v17, %v3694_v58  ;;  %v3696_v4 = vadd.f32 %v3632_v26, %v3434_v23  ;;  %v3371_v39 = vsel %vm3269_vm8, %v9502_v18, 0.0  ;;  %v11767_v53 = vld [vmem:[#allocation21_spill] sm:$0xff]  ;;  %v1631_v23 = vpop.f32.mrb[1].mxu0 }
 0x261   : > { %v3633_v59 = vsel %vm3531_vm10, %v9519_v16, 0.0  ;;  %6001 = vmatprep.mubr.f32.mxu1 %v11654_v8  ;;  %v3435_v45 = vadd.f32 %v3371_v39, %v3173_v12  ;;  %vm3793_vm11 = vcmp.eq.s32.totalorder %v10250_v29, %v9527_v3  ;;  %vm3073_vm13 = vcmp.eq.s32.totalorder %v10250_v29, %v9574_v56  ;;  %v11768_v26 = vld [vmem:[#allocation53_spill] sm:$0xff] }
 0x262   : > { %11766 = vst [vmem:[#allocation52_spill] sm:$0xff] %v10405_v31  ;;  %vm3271_vm14 = vcmp.eq.s32.totalorder %v10250_v29, %v9580_v7  ;;  %v3983_v17 = vmul.f32 %v11767_v53, %v1629_v35  ;;  %4810 = vmatmul.mubr.f32.gmra.mrb[42].mxu0 %v11768_v26  ;;  %v10418_v58 = vadd.f32 %v3894_v51, %v3696_v4  ;;  %v3895_v31 = vsel %vm3793_vm11, %v9532_v37, 0.0  ;;  %v11771_v53 = vld [vmem:[#allocation54_spill] sm:$0xff] }
 0x263   : > { %v3175_v12 = vsel %vm3073_vm13, %v9577_v2, 0.0  ;;  %v3984_v39 = vmul.f32 %v9713_v20, %v1631_v23  ;;  %4815 = vmatprep.mubr.f32.mxu0 %v11654_v8  ;;  %v3697_v36 = vadd.f32 %v3633_v59, %v3435_v45  ;;  %v3373_v22 = vsel %vm3271_vm14, %v9586_v49, 0.0  ;;  %v1636_v20 = vpop.f32.mrb[2].mxu0 }
 0x264   : > { %11769 = vst [vmem:[#allocation21_spill] sm:$0xff] %v10418_v58  ;;  %vm3533_vm0 = vcmp.eq.s32.totalorder %v10250_v29, %v9589_v32  ;;  %6004 = vmatmul.mubr.f32.gmra.mrb[40].mxu1 %v11765_v63  ;;  %v3437_v35 = vadd.f32 %v3373_v22, %v3175_v12  ;;  %vm3795_vm1 = vcmp.eq.s32.totalorder %v10250_v29, %v9602_v6  ;;  %v1638_v63 = vpop.f32.mrb[3].mxu0 }
 0x265   : > { %v3635_v51 = vsel %vm3533_vm0, %v9592_v60, 0.0  ;;  %vm3072_vm2 = vcmp.eq.s32.totalorder %v10250_v29, %v9631_v48  ;;  %6009 = vmatprep.mubr.f32.mxu1 %v11654_v8  ;;  %v10434_v45 = vadd.f32 %v3895_v31, %v3697_v36  ;;  %v3897_v4 = vsel %vm3795_vm1, %v9613_v30, 0.0  ;;  %v2855_v36 = vpop.f32.mrb[0].mxu1 }
 0x266   : > { %v3174_v59 = vsel %vm3072_vm2, %v9639_v13, 0.0  ;;  %vm3270_vm3 = vcmp.eq.s32.totalorder %v10250_v29, %v9642_v47  ;;  %v3987_v22 = vmul.f32 %v9777_v50, %v1636_v20  ;;  %4818 = vmatmul.mubr.f32.gmra.mrb[44].mxu0 %v11771_v53  ;;  %v3699_v23 = vadd.f32 %v3635_v51, %v3437_v35  ;;  %v2857_v20 = vpop.f32.mrb[1].mxu1 }
 0x267   : > { %11770 = vst [vmem:[#allocation53_spill] sm:$0xff] %v10434_v45  ;;  %v3372_v12 = vsel %vm3270_vm3, %v9645_v14, 0.0  ;;  %vm3532_vm4 = vcmp.eq.s32.totalorder %v10250_v29, %v9655_v0  ;;  %v3988_v31 = vmul.f32 %v9808_v54, %v1638_v63  ;;  %4823 = vmatprep.mubr.f32.mxu0 %v11654_v8  ;;  %vm3794_vm5 = vcmp.eq.s32.totalorder %v10250_v29, %v9665_v1  ;;  %v1643_v63 = vpop.f32.mrb[4].mxu0 }
 0x268   : > { %v3436_v58 = vadd.f32 %v3372_v12, %v3174_v59  ;;  %v3634_v45 = vsel %vm3532_vm4, %v9658_v33, 0.0  ;;  %v3985_v50 = vmul.f32 %v9650_v19, %v2855_v36  ;;  %6012 = vmatmul.mubr.f32.gmra.mrb[42].mxu1 %v11768_v26  ;;  %v4047_v35 = vadd.f32 %v3987_v22, %v3983_v17  ;;  %v1645_v36 = vpop.f32.mrb[5].mxu0 }
 0x269   : > { %v10452_v51 = vadd.f32 %v3897_v4, %v3699_v23  ;;  %v3896_v55 = vsel %vm3794_vm5, %v9682_v43, 0.0  ;;  %v3986_v54 = vmul.f32 %v9765_v25, %v2857_v20  ;;  %6017 = vmatprep.mubr.f32.mxu1 %v11654_v8  ;;  %v4068_v59 = vadd.f32 %v3988_v31, %v3984_v39  ;;  %v2862_v25 = vpop.f32.mrb[2].mxu1  ;;  %v11773_v31 = vld [vmem:[#allocation77_spill] sm:$0xff] }
 0x26a   : > { %v3698_v12 = vadd.f32 %v3634_v45, %v3436_v58  ;;  %vm3074_vm7 = vcmp.eq.s32.totalorder %v10250_v29, %v9686_v9  ;;  %v3991_v19 = vmul.f32 %v9854_v41, %v1643_v63  ;;  %4826 = vmatmul.mubr.f32.gmra.mrb[46].mxu0 %v11772_v52  ;;  %vm3272_vm8 = vcmp.eq.s32.totalorder %v10250_v29, %v9705_v62  ;;  %v2864_v4 = vpop.f32.mrb[3].mxu1  ;;  %v1650_v20 = vpop.f32.mrb[6].mxu0 }
 0x26b   : > { %v3176_v17 = vsel %vm3074_vm7, %v9689_v24, 0.0  ;;  %vm3534_vm10 = vcmp.eq.s32.totalorder %v10250_v29, %v9717_v27  ;;  %v3992_v26 = vmul.f32 %v9891_v44, %v1645_v36  ;;  %4831 = vmatprep.mubr.f32.mxu0 %v11654_v8  ;;  %v3374_v41 = vsel %vm3272_vm8, %v9708_v46, 0.0 }
 0x26c   : > { %v10468_v58 = vadd.f32 %v3896_v55, %v3698_v12  ;;  %v3636_v39 = vsel %vm3534_vm10, %v9720_v21, 0.0  ;;  %v3989_v45 = vmul.f32 %v9795_v40, %v2862_v25  ;;  %6020 = vmatmul.mubr.f32.gmra.mrb[44].mxu1 %v11771_v53  ;;  %v4048_v22 = vadd.f32 %v4047_v35, %v3991_v19  ;;  %v1652_v53 = vpop.f32.mrb[7].mxu0  ;;  %v11774_v35 = vld [vmem:[#allocation56_spill] sm:$0xff]  ;;  %v2869_v25 = vpop.f32.mrb[4].mxu1 }
 0x26d   : > { %v3438_v23 = vadd.f32 %v3374_v41, %v3176_v17  ;;  %vm3796_vm11 = vcmp.eq.s32.totalorder %v10250_v29, %v9726_v28  ;;  %v3990_v44 = vmul.f32 %v11773_v31, %v2864_v4  ;;  %6025 = vmatprep.mubr.f32.mxu1 %v11654_v8  ;;  %v4069_v55 = vadd.f32 %v4068_v59, %v3992_v26 }
 0x26e   : > { %v3898_v63 = vsel %vm3796_vm11, %v9744_v57, 0.0  ;;  %vm3075_vm13 = vcmp.eq.s32.totalorder %v10253_v61, %v9485_v15  ;;  %v4089_v40 = vadd.f32 %v3989_v45, %v3985_v50  ;;  %v3995_v12 = vmul.f32 %v9934_v11, %v1650_v20  ;;  %4834 = vmatmul.mubr.f32.gmra.mrb[48].mxu0 %v11774_v35  ;;  %v2871_v50 = vpop.f32.mrb[5].mxu1  ;;  %v1657_v4 = vpop.f32.mrb[8].mxu0  ;;  %v11776_v20 = vld [vmem:[#allocation82_spill] sm:$0xff] }
 0x26f   : > { %v3700_v19 = vadd.f32 %v3636_v39, %v3438_v23  ;;  %v3177_v36 = vsel %vm3075_vm13, %v9499_v38, 0.0  ;;  %v4110_v17 = vadd.f32 %v3990_v44, %v3986_v54  ;;  %v3996_v41 = vmul.f32 %v9964_v42, %v1652_v53  ;;  %4839 = vmatprep.mubr.f32.mxu0 %v11654_v8  ;;  %v11775_v39 = vld [vmem:[#allocation79_spill] sm:$0xff]  ;;  %v1659_v53 = vpop.f32.mrb[9].mxu0 }
 0x270   : > { %vm3273_vm14 = vcmp.eq.s32.totalorder %v10253_v61, %v9488_v34  ;;  %vm3535_vm0 = vcmp.eq.s32.totalorder %v10253_v61, %v9511_v10  ;;  %v3993_v11 = vmul.f32 %v9872_v5, %v2869_v25  ;;  %6028 = vmatmul.mubr.f32.gmra.mrb[46].mxu1 %v11772_v52  ;;  %v4049_v59 = vadd.f32 %v4048_v22, %v3995_v12  ;;  %v11777_v25 = vld [vmem:[#allocation57_spill] sm:$0xff]  ;;  %v2876_v22 = vpop.f32.mrb[6].mxu1 }
 0x271   : > { %v10492_v26 = vadd.f32 %v3898_v63, %v3700_v19  ;;  %v3375_v54 = vsel %vm3273_vm14, %v9502_v18, 0.0  ;;  %v3994_v42 = vmul.f32 %v11775_v39, %v2871_v50  ;;  %6033 = vmatprep.mubr.f32.mxu1 %v11654_v8  ;;  %v4070_v45 = vadd.f32 %v4069_v55, %v3996_v41  ;;  %v11778_v63 = vld [vmem:[#allocation85_spill] sm:$0xff]  ;;  %v11779_v19 = vld [vmem:[#allocation80_spill] sm:$0xff]  ;;  %v2878_v41 = vpop.f32.mrb[7].mxu1 }
 0x272   : > { %v3439_v23 = vadd.f32 %v3375_v54, %v3177_v36  ;;  %v3637_v31 = vsel %vm3535_vm0, %v9519_v16, 0.0  ;;  %v4090_v44 = vadd.f32 %v4089_v40, %v3993_v11  ;;  %v3999_v5 = vmul.f32 %v11776_v20, %v1657_v4  ;;  %4842 = vmatmul.mubr.f32.gmra.mrb[50].mxu0 %v11777_v25  ;;  %v11781_v20 = vld [vmem:[#allocation89_spill] sm:$0xff] }
 0x273   : > { %vm3797_vm1 = vcmp.eq.s32.totalorder %v10253_v61, %v9527_v3  ;;  %vm3077_vm2 = vcmp.eq.s32.totalorder %v10253_v61, %v9574_v56  ;;  %v4111_v52 = vadd.f32 %v4110_v17, %v3994_v42  ;;  %v4000_v55 = vmul.f32 %v11778_v63, %v1659_v53  ;;  %4847 = vmatprep.mubr.f32.mxu0 %v11654_v8  ;;  %v11780_v17 = vld [vmem:[#allocation81_spill] sm:$0xff]  ;;  %v1664_v42 = vpop.f32.mrb[10].mxu0 }
 0x274   : > { %v3701_v12 = vadd.f32 %v3637_v31, %v3439_v23  ;;  %v3899_v40 = vsel %vm3797_vm1, %v9532_v37, 0.0  ;;  %v3997_v36 = vmul.f32 %v11779_v19, %v2876_v22  ;;  %6036 = vmatmul.mubr.f32.gmra.mrb[48].mxu1 %v11774_v35  ;;  %v4050_v11 = vadd.f32 %v4049_v59, %v3999_v5  ;;  %v1666_v35 = vpop.f32.mrb[11].mxu0  ;;  %v11782_v59 = vld [vmem:[#allocation58_spill] sm:$0xff]  ;;  %v2883_v63 = vpop.f32.mrb[8].mxu1  ;;  %v11783_v19 = vld [vmem:[#allocation91_spill] sm:$0xff] }
 0x275   : > { %v3179_v50 = vsel %vm3077_vm2, %v9577_v2, 0.0  ;;  %vm3275_vm3 = vcmp.eq.s32.totalorder %v10253_v61, %v9580_v7  ;;  %v3998_v54 = vmul.f32 %v11780_v17, %v2878_v41  ;;  %6041 = vmatprep.mubr.f32.mxu1 %v11654_v8  ;;  %v4071_v39 = vadd.f32 %v4070_v45, %v4000_v55 }
 0x276   : > { %v10514_v4 = vadd.f32 %v3899_v40, %v3701_v12  ;;  %v3377_v23 = vsel %vm3275_vm3, %v9586_v49, 0.0  ;;  %v4091_v31 = vadd.f32 %v4090_v44, %v3997_v36  ;;  %v4003_v53 = vmul.f32 %v11781_v20, %v1664_v42  ;;  %4850 = vmatmul.mubr.f32.gmra.mrb[52].mxu0 %v11782_v59  ;;  %v11784_v44 = vld [vmem:[#allocation83_spill] sm:$0xff]  ;;  %v2885_v12 = vpop.f32.mrb[9].mxu1  ;;  %v1671_v42 = vpop.f32.mrb[12].mxu0  ;;  %v11786_v20 = vld [vmem:[#allocation93_spill] sm:$0xff] }
 0x277   : > { %v3441_v5 = vadd.f32 %v3377_v23, %v3179_v50  ;;  %vm3537_vm4 = vcmp.eq.s32.totalorder %v10253_v61, %v9589_v32  ;;  %v4112_v22 = vadd.f32 %v4111_v52, %v3998_v54  ;;  %v4004_v41 = vmul.f32 %v11783_v19, %v1666_v35  ;;  %4855 = vmatprep.mubr.f32.mxu0 %v11654_v8  ;;  %v11785_v52 = vld [vmem:[#allocation88_spill] sm:$0xff] }
 0x278   : > { %v3639_v45 = vsel %vm3537_vm4, %v9592_v60, 0.0  ;;  %vm3799_vm5 = vcmp.eq.s32.totalorder %v10253_v61, %v9602_v6  ;;  %v4001_v55 = vmul.f32 %v11784_v44, %v2883_v63  ;;  %6044 = vmatmul.mubr.f32.gmra.mrb[50].mxu1 %v11777_v25  ;;  %v4051_v40 = vadd.f32 %v4050_v11, %v4003_v53  ;;  %v1673_v25 = vpop.f32.mrb[13].mxu0  ;;  %v11787_v11 = vld [vmem:[#allocation59_spill] sm:$0xff]  ;;  %v2890_v19 = vpop.f32.mrb[10].mxu1 }
 0x279   : > { %v3703_v36 = vadd.f32 %v3639_v45, %v3441_v5  ;;  %v3901_v50 = vsel %vm3799_vm5, %v9613_v30, 0.0  ;;  %v4002_v17 = vmul.f32 %v11785_v52, %v2885_v12  ;;  %6049 = vmatprep.mubr.f32.mxu1 %v11654_v8  ;;  %v4072_v54 = vadd.f32 %v4071_v39, %v4004_v41  ;;  %v11788_v39 = vld [vmem:[#allocation95_spill] sm:$0xff] }
 0x27a   : > { %vm3076_vm7 = vcmp.eq.s32.totalorder %v10253_v61, %v9631_v48  ;;  %vm3274_vm8 = vcmp.eq.s32.totalorder %v10253_v61, %v9642_v47  ;;  %v4092_v23 = vadd.f32 %v4091_v31, %v4001_v55  ;;  %v4007_v35 = vmul.f32 %v11786_v20, %v1671_v42  ;;  %4858 = vmatmul.mubr.f32.gmra.mrb[54].mxu0 %v11787_v11  ;;  %v11789_v31 = vld [vmem:[#allocation90_spill] sm:$0xff]  ;;  %v2892_v55 = vpop.f32.mrb[11].mxu1  ;;  %v1678_v42 = vpop.f32.mrb[14].mxu0 }
 0x27b   : > { %v10537_v53 = vadd.f32 %v3901_v50, %v3703_v36  ;;  %v3178_v5 = vsel %vm3076_vm7, %v9639_v13, 0.0  ;;  %v4113_v63 = vadd.f32 %v4112_v22, %v4002_v17  ;;  %v4008_v41 = vmul.f32 %v11788_v39, %v1673_v25  ;;  %4863 = vmatprep.mubr.f32.mxu0 %v11654_v8  ;;  %v11790_v22 = vld [vmem:[#allocation92_spill] sm:$0xff]  ;;  %v11791_v25 = vld [vmem:[#allocation97_spill] sm:$0xff] }
 0x27c   : > { %v3376_v45 = vsel %vm3274_vm8, %v9645_v14, 0.0  ;;  %vm3536_vm10 = vcmp.eq.s32.totalorder %v10253_v61, %v9655_v0  ;;  %v4005_v44 = vmul.f32 %v11789_v31, %v2890_v19  ;;  %6052 = vmatmul.mubr.f32.gmra.mrb[52].mxu1 %v11782_v59  ;;  %v4052_v12 = vadd.f32 %v4051_v40, %v4007_v35  ;;  %v1680_v59 = vpop.f32.mrb[15].mxu0  ;;  %v11792_v40 = vld [vmem:[#allocation60_spill] sm:$0xff] }
 0x27d   : > { %v3440_v36 = vadd.f32 %v3376_v45, %v3178_v5  ;;  %v3638_v50 = vsel %vm3536_vm10, %v9658_v33, 0.0  ;;  %v4006_v52 = vmul.f32 %v11790_v22, %v2892_v55  ;;  %6057 = vmatprep.mubr.f32.mxu1 %v11654_v8  ;;  %v4073_v17 = vadd.f32 %v4072_v54, %v4008_v41  ;;  %v2897_v45 = vpop.f32.mrb[12].mxu1  ;;  %v11793_v31 = vld [vmem:[#allocation100_spill] sm:$0xff] }
 0x27e   : > { %vm3798_vm11 = vcmp.eq.s32.totalorder %v10253_v61, %v9665_v1  ;;  %vm3078_vm13 = vcmp.eq.s32.totalorder %v10253_v61, %v9686_v9  ;;  %v4093_v20 = vadd.f32 %v4092_v23, %v4005_v44  ;;  %v4011_v19 = vmul.f32 %v11791_v25, %v1678_v42  ;;  %4866 = vmatmul.mubr.f32.gmra.mrb[56].mxu0 %v11792_v40  ;;  %v11794_v23 = vld [vmem:[#allocation94_spill] sm:$0xff]  ;;  %v2899_v55 = vpop.f32.mrb[13].mxu1  ;;  %v1685_v25 = vpop.f32.mrb[16].mxu0 }
 0x27f   : > { %v3702_v35 = vadd.f32 %v3638_v50, %v3440_v36  ;;  %v3900_v5 = vsel %vm3798_vm11, %v9682_v43, 0.0  ;;  %v4114_v39 = vadd.f32 %v4113_v63, %v4006_v52  ;;  %v4012_v54 = vmul.f32 %v11793_v31, %v1680_v59  ;;  %4871 = vmatprep.mubr.f32.mxu0 %v11654_v8  ;;  %v11795_v50 = vld [vmem:[#allocation96_spill] sm:$0xff]  ;;  %v1687_v29 = vpop.f32.mrb[17].mxu0 }
 0x280   : > { %v3180_v41 = vsel %vm3078_vm13, %v9689_v24, 0.0  ;;  %vm3276_vm14 = vcmp.eq.s32.totalorder %v10253_v61, %v9705_v62  ;;  %v4009_v44 = vmul.f32 %v11794_v23, %v2897_v45  ;;  %6060 = vmatmul.mubr.f32.gmra.mrb[54].mxu1 %v11787_v11  ;;  %v4053_v22 = vadd.f32 %v4052_v12, %v4011_v19  ;;  %v11796_v45 = vld [vmem:[#allocation35_spill] sm:$0xff]  ;;  %v11797_v11 = vld [vmem:[#allocation61_spill] sm:$0xff] }
 0x281   : > { %v10564_v36 = vadd.f32 %v3900_v5, %v3702_v35  ;;  %v3378_v63 = vsel %vm3276_vm14, %v9708_v46, 0.0  ;;  %v4010_v52 = vmul.f32 %v11795_v50, %v2899_v55  ;;  %6065 = vmatprep.mubr.f32.mxu1 %v11654_v8  ;;  %v4074_v42 = vadd.f32 %v4073_v17, %v4012_v54  ;;  %v2904_v35 = vpop.f32.mrb[14].mxu1  ;;  %v11798_v5 = vld [vmem:[#allocation105_spill] sm:$0xff]  ;;  %v11800_v50 = vld [vmem:[#allocation106_spill] sm:$0xff] }
 0x282   : > { %v3442_v59 = vadd.f32 %v3378_v63, %v3180_v41  ;;  %vm3538_vm0 = vcmp.eq.s32.totalorder %v10253_v61, %v9717_v27  ;;  %v4094_v31 = vadd.f32 %v4093_v20, %v4009_v44  ;;  %v4015_v23 = vmul.f32 %v11796_v45, %v1685_v25  ;;  %4874 = vmatmul.mubr.f32.gmra.mrb[58].mxu0 %v11797_v11  ;;  %v11799_v20 = vld [vmem:[#allocation98_spill] sm:$0xff]  ;;  %v2906_v55 = vpop.f32.mrb[15].mxu1  ;;  %v1692_v25 = vpop.f32.mrb[18].mxu0 }
 0x283   : > { %v3640_v12 = vsel %vm3538_vm0, %v9720_v21, 0.0  ;;  %vm3800_vm1 = vcmp.eq.s32.totalorder %v10253_v61, %v9726_v28  ;;  %v4115_v19 = vadd.f32 %v4114_v39, %v4010_v52  ;;  %v4016_v17 = vmul.f32 %v11798_v5, %v1687_v29  ;;  %4879 = vmatprep.mubr.f32.mxu0 %v11654_v8  ;;  %v11801_v39 = vld [vmem:[#allocation104_spill] sm:$0xff] }
 0x284   : > { %v3704_v54 = vadd.f32 %v3640_v12, %v3442_v59  ;;  %v3902_v41 = vsel %vm3800_vm1, %v9744_v57, 0.0  ;;  %v4013_v44 = vmul.f32 %v11799_v20, %v2904_v35  ;;  %6068 = vmatmul.mubr.f32.gmra.mrb[56].mxu1 %v11792_v40  ;;  %v4054_v63 = vadd.f32 %v4053_v22, %v4015_v23  ;;  %v11802_v35 = vld [vmem:[#allocation107_spill] sm:$0xff]  ;;  %v1694_v22 = vpop.f32.mrb[19].mxu0  ;;  %v11803_v23 = vld [vmem:[#allocation62_spill] sm:$0xff] }
 0x285   : > { %vm3079_vm2 = vcmp.eq.s32.totalorder %v11800_v50, %v9485_v15  ;;  %vm3277_vm3 = vcmp.eq.s32.totalorder %v11800_v50, %v9488_v34  ;;  %v4014_v52 = vmul.f32 %v11801_v39, %v2906_v55  ;;  %6073 = vmatprep.mubr.f32.mxu1 %v11654_v8  ;;  %v4075_v29 = vadd.f32 %v4074_v42, %v4016_v17  ;;  %v2911_v55 = vpop.f32.mrb[16].mxu1  ;;  %v11804_v39 = vld [vmem:[#allocation52_spill] sm:$0xff] }
 0x286   : > { %v10587_v59 = vadd.f32 %v3902_v41, %v3704_v54  ;;  %v3181_v45 = vsel %vm3079_vm2, %v9499_v38, 0.0  ;;  %v4095_v12 = vadd.f32 %v4094_v31, %v4013_v44  ;;  %v4019_v40 = vmul.f32 %v11802_v35, %v1692_v25  ;;  %4882 = vmatmul.mubr.f32.gmra.mrb[60].mxu0 %v11803_v23  ;;  %v11805_v31 = vld [vmem:[#allocation39_spill] sm:$0xff]  ;;  %v2913_v44 = vpop.f32.mrb[17].mxu1 }
 0x287   : > { %v3379_v5 = vsel %vm3277_vm3, %v9502_v18, 0.0  ;;  %vm3539_vm4 = vcmp.eq.s32.totalorder %v11800_v50, %v9511_v10  ;;  %v4116_v20 = vadd.f32 %v4115_v19, %v4014_v52  ;;  %v4020_v42 = vmul.f32 %v11804_v39, %v1694_v22  ;;  %4887 = vmatprep.mubr.f32.mxu0 %v11654_v8  ;;  %v11806_v19 = vld [vmem:[#allocation40_spill] sm:$0xff]  ;;  %v11807_v39 = vld [vmem:[#allocation53_spill] sm:$0xff] }
 0x288   : > { %v3443_v17 = vadd.f32 %v3379_v5, %v3181_v45  ;;  %v3641_v54 = vsel %vm3539_vm4, %v9519_v16, 0.0  ;;  %v4017_v41 = vmul.f32 %v11805_v31, %v2911_v55  ;;  %6076 = vmatmul.mubr.f32.gmra.mrb[58].mxu1 %v11797_v11  ;;  %v4055_v25 = vadd.f32 %v4054_v63, %v4019_v40  ;;  %v1699_v45 = vpop.f32.mrb[20].mxu0  ;;  %v11808_v63 = vld [vmem:[#allocation63_spill] sm:$0xff] }
 0x289   : > { %vm3801_vm5 = vcmp.eq.s32.totalorder %v11800_v50, %v9527_v3  ;;  %vm3081_vm7 = vcmp.eq.s32.totalorder %v11800_v50, %v9574_v56  ;;  %v4018_v52 = vmul.f32 %v11806_v19, %v2913_v44  ;;  %6081 = vmatprep.mubr.f32.mxu1 %v11654_v8  ;;  %v4076_v35 = vadd.f32 %v4075_v29, %v4020_v42  ;;  %v1701_v11 = vpop.f32.mrb[21].mxu0  ;;  %v2918_v44 = vpop.f32.mrb[18].mxu1 }
 0x28a   : > { %v3705_v22 = vadd.f32 %v3641_v54, %v3443_v17  ;;  %v3903_v5 = vsel %vm3801_vm5, %v9532_v37, 0.0  ;;  %v4096_v55 = vadd.f32 %v4095_v12, %v4017_v41  ;;  %v4023_v31 = vmul.f32 %v11807_v39, %v1699_v45  ;;  %4890 = vmatmul.mubr.f32.gmra.mrb[62].mxu0 %v11808_v63  ;;  %v11809_v12 = vld [vmem:[#allocation51_spill] sm:$0xff]  ;;  %v2920_v54 = vpop.f32.mrb[19].mxu1  ;;  %v11810_v39 = vld [vmem:[#allocation21_spill] sm:$0xff] }
 0x28b   : > { %v3183_v40 = vsel %vm3081_vm7, %v9577_v2, 0.0  ;;  %vm3279_vm8 = vcmp.eq.s32.totalorder %v11800_v50, %v9580_v7  ;;  %v4117_v61 = vadd.f32 %v4116_v20, %v4018_v52  ;;  %v4024_v19 = vmul.f32 %v10468_v58, %v1701_v11  ;;  %4960 = vmatprep.mubr.f32.mxu0 %v11654_v8  ;;  %v1706_v52 = vpop.f32.mrb[22].mxu0 }
 0x28c   : > { %v3967_v29 = vadd.f32 %v3903_v5, %v3705_v22  ;;  %v3381_v42 = vsel %vm3279_vm8, %v9586_v49, 0.0  ;;  %v4021_v17 = vmul.f32 %v11809_v12, %v2918_v44  ;;  %6084 = vmatmul.mubr.f32.gmra.mrb[60].mxu1 %v11803_v23  ;;  %v4056_v41 = vadd.f32 %v4055_v25, %v4023_v31  ;;  %v1708_v23 = vpop.f32.mrb[23].mxu0  ;;  %v11811_v25 = vld [vmem:[#allocation37_spill] sm:$0xff] }
 0x28d   : > { %v3445_v45 = vadd.f32 %v3381_v42, %v3183_v40  ;;  %vm3541_vm10 = vcmp.eq.s32.totalorder %v11800_v50, %v9589_v32  ;;  %v4022_v20 = vmul.f32 %v11810_v39, %v2920_v54  ;;  %6089 = vmatprep.mubr.f32.mxu1 %v11654_v8  ;;  %v4077_v58 = vadd.f32 %v4076_v35, %v4024_v19  ;;  %v2925_v42 = vpop.f32.mrb[20].mxu1 }
 0x28e   : > { %v3643_v22 = vsel %vm3541_vm10, %v9592_v60, 0.0  ;;  %vm3803_vm11 = vcmp.eq.s32.totalorder %v11800_v50, %v9602_v6  ;;  %v4097_v5 = vadd.f32 %v4096_v55, %v4021_v17  ;;  %v4027_v11 = vmul.f32 %v10514_v4, %v1706_v52  ;;  %4964 = vmatmul.mubr.f32.vlgmr.msra.gmra.mrb[32].mxu0 %v11811_v25  ;;  %v2927_v35 = vpop.f32.mrb[21].mxu1  ;;  %v1713_v54 = vpop.f32.mrb[24].mxu0 }
 0x28f   : > { %v3707_v31 = vadd.f32 %v3643_v22, %v3445_v45  ;;  %v3905_v40 = vsel %vm3803_vm11, %v9613_v30, 0.0  ;;  %v4118_v44 = vadd.f32 %v4117_v61, %v4022_v20  ;;  %v4028_v12 = vmul.f32 %v10564_v36, %v1708_v23  ;;  %4969 = vmatprep.mubr.f32.mxu0 %v11654_v8  ;;  %v1715_v20 = vpop.f32.mrb[25].mxu0 }
 0x290   : > { %vm3080_vm13 = vcmp.eq.s32.totalorder %v11800_v50, %v9631_v48  ;;  %vm3278_vm14 = vcmp.eq.s32.totalorder %v11800_v50, %v9642_v47  ;;  %v4025_v4 = vmul.f32 %v10452_v51, %v2925_v42  ;;  %6092 = vmatmul.mubr.f32.gmra.mrb[62].mxu1 %v11808_v63  ;;  %v4057_v55 = vadd.f32 %v4056_v41, %v4027_v11  ;;  %v11812_v41 = vld [vmem:[#allocation41_spill] sm:$0xff]  ;;  %v2932_v11 = vpop.f32.mrb[22].mxu1 }
 0x291   : > { %v3969_v19 = vadd.f32 %v3905_v40, %v3707_v31  ;;  %v3182_v61 = vsel %vm3080_vm13, %v9639_v13, 0.0  ;;  %v4026_v17 = vmul.f32 %v10492_v26, %v2927_v35  ;;  %6162 = vmatprep.mubr.f32.mxu1 %v11654_v8  ;;  %v4078_v36 = vadd.f32 %v4077_v58, %v4028_v12 }
 0x292   : > { %v3380_v45 = vsel %vm3278_vm14, %v9645_v14, 0.0  ;;  %vm3540_vm0 = vcmp.eq.s32.totalorder %v11800_v50, %v9655_v0  ;;  %v4098_v39 = vadd.f32 %v4097_v5, %v4025_v4  ;;  %v4031_v51 = vmul.f32 %v3967_v29, %v1713_v54  ;;  %4973 = vmatmul.mubr.f32.gmra.mrb[34].mxu0 %v11812_v41  ;;  %v2934_v29 = vpop.f32.mrb[23].mxu1 }
 0x293   : > { %v3444_v52 = vadd.f32 %v3380_v45, %v3182_v61  ;;  %v3642_v63 = vsel %vm3540_vm0, %v9658_v33, 0.0  ;;  %v4119_v22 = vadd.f32 %v4118_v44, %v4026_v17  ;;  %vm3802_vm1 = vcmp.eq.s32.totalorder %v11800_v50, %v9665_v1  ;;  %4978 = vmatprep.mubr.f32.mxu0 %v11654_v8  ;;  %v11814_v17 = vld [vmem:[#allocation10_spill] sm:$0xff]  ;;  %v11816_v45 = vld [vmem:[#allocation15_spill] sm:$0xff] }
 0x294   : > { %vm3082_vm2 = vcmp.eq.s32.totalorder %v11800_v50, %v9686_v9  ;;  %vm3280_vm3 = vcmp.eq.s32.totalorder %v11800_v50, %v9705_v62  ;;  %v4029_v26 = vmul.f32 %v10537_v53, %v2932_v11  ;;  %6166 = vmatmul.mubr.f32.vlgmr.msra.gmra.mrb[32].mxu1 %v11811_v25  ;;  %v10652_v58 = vadd.f32 %v4057_v55, %v4031_v51  ;;  %v10661_v53 = vpop.f32.mrb[26].mxu0  ;;  %v11813_v55 = vld [vmem:[#allocation18_spill] sm:$0xff]  ;;  %v2939_v61 = vpop.f32.mrb[24].mxu1  ;;  %v11820_v11 = vld [vmem:[#allocation16_spill] sm:$0xff] }
 0x295   : > { %v3706_v5 = vadd.f32 %v3642_v63, %v3444_v52  ;;  %v3904_v23 = vsel %vm3802_vm1, %v9682_v43, 0.0  ;;  %v4030_v31 = vmul.f32 %v10587_v59, %v2934_v29  ;;  %6171 = vmatprep.mubr.f32.mxu1 %v11654_v8  ;;  %v3184_v40 = vsel %vm3082_vm2, %v9689_v24, 0.0  ;;  %v10664_v35 = vpop.f32.mrb[27].mxu0  ;;  %v11818_v63 = vld [vmem:[#allocation11_spill] sm:$0xff] }
 0x296   : > { %v3382_v44 = vsel %vm3280_vm3, %v9708_v46, 0.0  ;;  %vm3542_vm4 = vcmp.eq.s32.totalorder %v11800_v50, %v9717_v27  ;;  %v4099_v42 = vadd.f32 %v4098_v39, %v4029_v26  ;;  %4982 = vmatmul.mubr.f32.gmra.mrb[36].mxu0 %v11813_v55  ;;  %vm3804_vm5 = vcmp.eq.s32.totalorder %v11800_v50, %v9726_v28 }
 0x297   : > { %v3968_v25 = vadd.f32 %v3904_v23, %v3706_v5  ;;  %v3446_v12 = vadd.f32 %v3382_v44, %v3184_v40  ;;  %v3644_v4 = vsel %vm3542_vm4, %v9720_v21, 0.0  ;;  %v4120_v59 = vadd.f32 %v4119_v22, %v4030_v31  ;;  %4987 = vmatprep.mubr.f32.mxu0 %v11654_v8  ;;  %v2941_v40 = vpop.f32.mrb[25].mxu1  ;;  %v11822_v44 = vld [vmem:[#allocation30_spill] sm:$0xff] }
 0x298   : > { %v11815_v54 = vand.u32 4294901760, %v11814_v17  ;;  %v11817_v51 = vand.u32 4294901760, %v11816_v45  ;;  %v11819_v39 = vand.u32 4294901760, %v11818_v63  ;;  %v11821_v26 = vand.u32 4294901760, %v11820_v11  ;;  %6175 = vmatmul.mubr.f32.gmra.mrb[34].mxu1 %v11812_v41  ;;  %v11826_v63 = vld [vmem:[#allocation32_spill] sm:$0xff] }
 0x299   : > { %v4033_v5 = vmul.f32 %v3969_v19, %v2939_v61  ;;  %v4032_v23 = vmul.f32 %v3968_v25, %v1715_v20  ;;  %v3708_v22 = vadd.f32 %v3644_v4, %v3446_v12  ;;  %v3906_v31 = vsel %vm3804_vm5, %v9744_v57, 0.0  ;;  %v11830_v19 = vld [vmem:[#allocation12_spill] sm:$0xff]  ;;  %v10691_v25 = vpop.f32.mrb[28].mxu0  ;;  %6180 = vmatprep.mubr.f32.mxu1 %v11654_v8 }
 0x29a   : > { %v7242_v52 = vpack.c.bf16 %v11817_v51, %v11815_v54  ;;  %v7266_v29 = vpack.c.bf16 %v11821_v26, %v11819_v39  ;;  %v11823_v17 = vand.u32 4294901760, %v11822_v44  ;;  %v11824_v54 = vld [vmem:[#allocation31_spill] sm:$0xff]  ;;  %v11827_v11 = vand.u32 4294901760, %v11826_v63  ;;  %v11828_v39 = vld [vmem:[#allocation33_spill] sm:$0xff] }
 0x29b   : > { %v11825_v45 = vand.u32 4294901760, %v11824_v54  ;;  %v11829_v26 = vand.u32 4294901760, %v11828_v39  ;;  %v10689_v20 = vadd.s32 104, %v11830_v19  ;;  %v10693_v12 = vadd.f32 %v4099_v42, %v4033_v5  ;;  %v11832_v63 = vld [vmem:[#allocation65_spill] sm:$0xff] }
 0x29c   : > { %7243 = vmatprep.subr.bf16.mxu0 %v7242_v52  ;;  %7267 = vmatprep.subr.bf16.mxu1 %v7266_v29  ;;  %v10695_v41 = vadd.f32 %v4078_v36, %v4032_v23  ;;  %v3970_v4 = vadd.f32 %v3906_v31, %v3708_v22  ;;  %v10699_v61 = vadd.s32 112, %v11830_v19  ;;  %v10701_v52 = vpop.f32.mrb[29].mxu0  ;;  %v11831_v29 = vld [vmem:[#allocation64_spill] sm:$0xff]  ;;  %v2946_v36 = vpop.f32.mrb[26].mxu1  ;;  %v10711_v42 = vadd.s32 120, %v11830_v19 }
 0x29d   : > { %v7244_v51 = vpack.c.bf16 %v11825_v45, %v11823_v17  ;;  %v7268_v50 = vpack.c.bf16 %v11829_v26, %v11827_v11  ;;  %4991 = vmatmul.mubr.f32.gmra.mrb[38].mxu0 %v11831_v29  ;;  %vm3083_vm7 = vcmp.eq.s32.totalorder %v10689_v20, %v9485_v15  ;;  %vm3281_vm8 = vcmp.eq.s32.totalorder %v10689_v20, %v9488_v34  ;;  %v10716_v31 = vpop.f32.mrb[27].mxu1 }
 0x29e   : > { %vm3543_vm10 = vcmp.eq.s32.totalorder %v10689_v20, %v9511_v10  ;;  %v4034_v5 = vmul.f32 %v3970_v4, %v2941_v40  ;;  %v3185_v23 = vsel %vm3083_vm7, %v9499_v38, 0.0  ;;  %v3383_v22 = vsel %vm3281_vm8, %v9502_v18, 0.0  ;;  %6184 = vmatmul.mubr.f32.gmra.mrb[36].mxu1 %v11813_v55  ;;  %4996 = vmatprep.mubr.f32.mxu0 %v11654_v8  ;;  %v10727_v40 = vpop.f32.mrb[30].mxu0 }
 0x29f   : > { %7245 = vmatpush1.bf16.msra.mxu0 %v7244_v51  ;;  %7269 = vmatpush1.bf16.msra.mxu1 %v7268_v50  ;;  %v3645_v50 = vsel %vm3543_vm10, %v9519_v16, 0.0  ;;  %v3447_v44 = vadd.f32 %v3383_v22, %v3185_v23  ;;  %vm3805_vm11 = vcmp.eq.s32.totalorder %v10689_v20, %v9527_v3  ;;  %vm3085_vm13 = vcmp.eq.s32.totalorder %v10689_v20, %v9574_v56  ;;  %v10734_v51 = vpop.f32.mrb[31].mxu0 }
 0x2a0   : > { %vm3283_vm14 = vcmp.eq.s32.totalorder %v10689_v20, %v9580_v7  ;;  %6189 = vmatprep.mubr.f32.mxu1 %v11654_v8  ;;  %v10729_v17 = vadd.f32 %v4120_v59, %v4034_v5  ;;  %v3907_v55 = vsel %vm3805_vm11, %v9532_v37, 0.0  ;;  %v3187_v54 = vsel %vm3085_vm13, %v9577_v2, 0.0  ;;  %v10744_v59 = vpop.f32.mrb[28].mxu1 }
 0x2a1   : > { %v3385_v45 = vsel %vm3283_vm14, %v9586_v49, 0.0  ;;  %5000 = vmatmul.mubr.f32.gmra.mrb[40].mxu0 %v11832_v63  ;;  %v11833_v11 = vmov 1.0|1.0   ;;  %v3709_v26 = vadd.f32 %v3645_v50, %v3447_v44  ;;  %vm3545_vm0 = vcmp.eq.s32.totalorder %v10689_v20, %v9589_v32  ;;  %v10753_v22 = vpop.f32.mrb[29].mxu1 }
 0x2a2   : > { %7247 = vmatprep.subr.msk.bf16.mxu0 %vm8849_vm6, %v11833_v11  ;;  %v3449_v4 = vadd.f32 %v3385_v45, %v3187_v54  ;;  %vm3807_vm1 = vcmp.eq.s32.totalorder %v10689_v20, %v9602_v6  ;;  %5005 = vmatprep.mubr.f32.mxu0 %v11654_v8  ;;  %v3647_v5 = vsel %vm3545_vm0, %v9592_v60, 0.0  ;;  %vm3084_vm2 = vcmp.eq.s32.totalorder %v10689_v20, %v9631_v48  ;;  %v10772_v50 = vpop.f32.mrb[30].mxu1 }
 0x2a3   : > { %v3909_v23 = vsel %vm3807_vm1, %v9613_v30, 0.0  ;;  %vm3282_vm6 = vcmp.eq.s32.totalorder %v10689_v20, %v9642_v47  ;;  %6193 = vmatmul.mubr.f32.gmra.mrb[38].mxu1 %v11831_v29  ;;  %7271 = vmatprep.subr.msk.bf16.mxu1 %vm8873_vm9, %v11833_v11  ;;  %v3971_v44 = vadd.f32 %v3907_v55, %v3709_v26  ;;  %v3186_v45 = vsel %vm3084_vm2, %v9639_v13, 0.0  ;;  %v11836_v29 = vld [vmem:[#allocation66_spill] sm:$0xff]  ;;  %v10780_v11 = vpop.f32.mrb[31].mxu1 }
 0x2a4   : > { %v3711_v54 = vadd.f32 %v3647_v5, %v3449_v4  ;;  %v3384_v39 = vsel %vm3282_vm6, %v9645_v14, 0.0  ;;  %6198 = vmatprep.mubr.f32.mxu1 %v11654_v8  ;;  %vm3544_vm3 = vcmp.eq.s32.totalorder %v10689_v20, %v9655_v0  ;;  %vm3806_vm4 = vcmp.eq.s32.totalorder %v10689_v20, %v9665_v1  ;;  %11837 = vst [vmem:[#allocation54_spill] sm:$0xff] %v10780_v11  ;;  %v11838_v11 = vld [vmem:[#allocation67_spill] sm:$0xff] }
 0x2a5   : > { %v3448_v19 = vadd.f32 %v3384_v39, %v3186_v45  ;;  %vm3086_vm5 = vcmp.eq.s32.totalorder %v10689_v20, %v9686_v9  ;;  %5009 = vmatmul.mubr.f32.gmra.mrb[42].mxu0 %v11836_v29  ;;  %v4035_v55 = vmul.f32 %v3971_v44, %v10661_v53  ;;  %v3646_v4 = vsel %vm3544_vm3, %v9658_v33, 0.0 }
 0x2a6   : > { %v3973_v26 = vadd.f32 %v3909_v23, %v3711_v54  ;;  %v3908_v5 = vsel %vm3806_vm4, %v9682_v43, 0.0  ;;  %5014 = vmatprep.mubr.f32.mxu0 %v11654_v8  ;;  %v3188_v39 = vsel %vm3086_vm5, %v9689_v24, 0.0  ;;  %vm3284_vm9 = vcmp.eq.s32.totalorder %v10689_v20, %v9705_v62 }
 0x2a7   : > { %v3710_v45 = vadd.f32 %v3646_v4, %v3448_v19  ;;  %vm3546_vm7 = vcmp.eq.s32.totalorder %v10689_v20, %v9717_v27  ;;  %6202 = vmatmul.mubr.f32.gmra.mrb[40].mxu1 %v11832_v63  ;;  %v4059_v53 = vadd.f32 %v10652_v58, %v4035_v55  ;;  %v3386_v44 = vsel %vm3284_vm9, %v9708_v46, 0.0 }
 0x2a8   : > { %v4037_v23 = vmul.f32 %v3973_v26, %v2946_v36  ;;  %v3648_v54 = vsel %vm3546_vm7, %v9720_v21, 0.0  ;;  %6207 = vmatprep.mubr.f32.mxu1 %v11654_v8  ;;  %v3450_v4 = vadd.f32 %v3386_v44, %v3188_v39  ;;  %vm3808_vm8 = vcmp.eq.s32.totalorder %v10689_v20, %v9726_v28 }
 0x2a9   : > { %v3972_v19 = vadd.f32 %v3908_v5, %v3710_v45  ;;  %vm3087_vm10 = vcmp.eq.s32.totalorder %v10699_v61, %v9485_v15  ;;  %5018 = vmatmul.mubr.f32.gmra.mrb[44].mxu0 %v11838_v11  ;;  %v3910_v58 = vsel %vm3808_vm8, %v9744_v57, 0.0  ;;  %vm3285_vm11 = vcmp.eq.s32.totalorder %v10699_v61, %v9488_v34 }
 0x2aa   : > { %v10793_v63 = vadd.f32 %v10693_v12, %v4037_v23  ;;  %v3189_v36 = vsel %vm3087_vm10, %v9499_v38, 0.0  ;;  %5023 = vmatprep.mubr.f32.mxu0 %v11654_v8  ;;  %v3712_v26 = vadd.f32 %v3648_v54, %v3450_v4  ;;  %v3387_v5 = vsel %vm3285_vm11, %v9502_v18, 0.0 }
 0x2ab   : > { %v4036_v55 = vmul.f32 %v3972_v19, %v10664_v35  ;;  %vm3547_vm13 = vcmp.eq.s32.totalorder %v10699_v61, %v9511_v10  ;;  %6211 = vmatmul.mubr.f32.gmra.mrb[42].mxu1 %v11836_v29  ;;  %v3451_v12 = vadd.f32 %v3387_v5, %v3189_v36  ;;  %vm3809_vm14 = vcmp.eq.s32.totalorder %v10699_v61, %v9527_v3  ;;  %v11839_v29 = vld [vmem:[#allocation68_spill] sm:$0xff] }
 0x2ac   : > { %v3649_v45 = vsel %vm3547_vm13, %v9519_v16, 0.0  ;;  %vm3089_vm0 = vcmp.eq.s32.totalorder %v10699_v61, %v9574_v56  ;;  %6216 = vmatprep.mubr.f32.mxu1 %v11654_v8  ;;  %v3974_v39 = vadd.f32 %v3910_v58, %v3712_v26  ;;  %v3911_v23 = vsel %vm3809_vm14, %v9532_v37, 0.0 }
 0x2ad   : > { %v10812_v35 = vadd.f32 %v10695_v41, %v4036_v55  ;;  %v3191_v44 = vsel %vm3089_vm0, %v9577_v2, 0.0  ;;  %5027 = vmatmul.mubr.f32.gmra.mrb[46].mxu0 %v11839_v29  ;;  %v3713_v54 = vadd.f32 %v3649_v45, %v3451_v12  ;;  %vm3287_vm1 = vcmp.eq.s32.totalorder %v10699_v61, %v9580_v7 }
 0x2ae   : > { %vm3549_vm2 = vcmp.eq.s32.totalorder %v10699_v61, %v9589_v32  ;;  %vm3811_vm6 = vcmp.eq.s32.totalorder %v10699_v61, %v9602_v6  ;;  %5032 = vmatprep.mubr.f32.mxu0 %v11654_v8  ;;  %v4038_v41 = vmul.f32 %v3974_v39, %v10716_v31  ;;  %v3389_v19 = vsel %vm3287_vm1, %v9586_v49, 0.0 }
 0x2af   : > { %v3651_v4 = vsel %vm3549_vm2, %v9592_v60, 0.0  ;;  %v3913_v58 = vsel %vm3811_vm6, %v9613_v30, 0.0  ;;  %6220 = vmatmul.mubr.f32.gmra.mrb[44].mxu1 %v11838_v11  ;;  %v3975_v36 = vadd.f32 %v3911_v23, %v3713_v54  ;;  %v3453_v55 = vadd.f32 %v3389_v19, %v3191_v44  ;;  %v11840_v11 = vld [vmem:[#allocation69_spill] sm:$0xff] }
 0x2b0   : > { %vm3088_vm3 = vcmp.eq.s32.totalorder %v10699_v61, %v9631_v48  ;;  %vm3286_vm4 = vcmp.eq.s32.totalorder %v10699_v61, %v9642_v47  ;;  %6225 = vmatprep.mubr.f32.mxu1 %v11654_v8  ;;  %v10835_v31 = vadd.f32 %v10729_v17, %v4038_v41  ;;  %vm3548_vm5 = vcmp.eq.s32.totalorder %v10699_v61, %v9655_v0 }
 0x2b1   : > { %v3190_v26 = vsel %vm3088_vm3, %v9639_v13, 0.0  ;;  %v3388_v5 = vsel %vm3286_vm4, %v9645_v14, 0.0  ;;  %5036 = vmatmul.mubr.f32.gmra.mrb[48].mxu0 %v11840_v11  ;;  %v4039_v12 = vmul.f32 %v3975_v36, %v10691_v25  ;;  %v3715_v45 = vadd.f32 %v3651_v4, %v3453_v55  ;;  %v11841_v36 = vld [vmem:[#allocation70_spill] sm:$0xff] }
 0x2b2   : > { %v3452_v39 = vadd.f32 %v3388_v5, %v3190_v26  ;;  %v3650_v23 = vsel %vm3548_vm5, %v9658_v33, 0.0  ;;  %5041 = vmatprep.mubr.f32.mxu0 %v11654_v8  ;;  %vm3810_vm9 = vcmp.eq.s32.totalorder %v10699_v61, %v9665_v1  ;;  %vm3090_vm7 = vcmp.eq.s32.totalorder %v10699_v61, %v9686_v9 }
 0x2b3   : > { %vm3288_vm8 = vcmp.eq.s32.totalorder %v10699_v61, %v9705_v62  ;;  %vm3550_vm10 = vcmp.eq.s32.totalorder %v10699_v61, %v9717_v27  ;;  %6229 = vmatmul.mubr.f32.gmra.mrb[46].mxu1 %v11839_v29  ;;  %v10854_v25 = vadd.f32 %v4059_v53, %v4039_v12  ;;  %v3977_v17 = vadd.f32 %v3913_v58, %v3715_v45 }
 0x2b4   : > { %v3714_v44 = vadd.f32 %v3650_v23, %v3452_v39  ;;  %v3912_v54 = vsel %vm3810_vm9, %v9682_v43, 0.0  ;;  %6234 = vmatprep.mubr.f32.mxu1 %v11654_v8  ;;  %v3192_v41 = vsel %vm3090_vm7, %v9689_v24, 0.0  ;;  %v3390_v19 = vsel %vm3288_vm8, %v9708_v46, 0.0 }
 0x2b5   : > { %v3652_v4 = vsel %vm3550_vm10, %v9720_v21, 0.0  ;;  %vm3812_vm11 = vcmp.eq.s32.totalorder %v10699_v61, %v9726_v28  ;;  %5045 = vmatmul.mubr.f32.gmra.mrb[50].mxu0 %v11841_v36  ;;  %v4041_v53 = vmul.f32 %v3977_v17, %v10744_v59  ;;  %v3454_v58 = vadd.f32 %v3390_v19, %v3192_v41 }
 0x2b6   : > { %v3976_v29 = vadd.f32 %v3912_v54, %v3714_v44  ;;  %v3914_v55 = vsel %vm3812_vm11, %v9744_v57, 0.0  ;;  %5050 = vmatprep.mubr.f32.mxu0 %v11654_v8  ;;  %vm3091_vm13 = vcmp.eq.s32.totalorder %v10711_v42, %v9485_v15  ;;  %vm3289_vm14 = vcmp.eq.s32.totalorder %v10711_v42, %v9488_v34  ;;  %v11846_v44 = vld [vmem:[#allocation54_spill] sm:$0xff] }
 0x2b7   : > { %vm3551_vm0 = vcmp.eq.s32.totalorder %v10711_v42, %v9511_v10  ;;  %vm3813_vm1 = vcmp.eq.s32.totalorder %v10711_v42, %v9527_v3  ;;  %6238 = vmatmul.mubr.f32.gmra.mrb[48].mxu1 %v11840_v11  ;;  %v10877_v59 = vadd.f32 %v10793_v63, %v4041_v53  ;;  %v3716_v5 = vadd.f32 %v3652_v4, %v3454_v58  ;;  %v11842_v3 = vld [vmem:[#allocation71_spill] sm:$0xff] }
 0x2b8   : > { %v4040_v26 = vmul.f32 %v3976_v29, %v10701_v52  ;;  %v3193_v12 = vsel %vm3091_vm13, %v9499_v38, 0.0  ;;  %6243 = vmatprep.mubr.f32.mxu1 %v11654_v8  ;;  %v3391_v15 = vsel %vm3289_vm14, %v9502_v18, 0.0  ;;  %v3653_v34 = vsel %vm3551_vm0, %v9519_v16, 0.0  ;;  %v11847_v4 = vld [vmem:[#allocation75_spill] sm:$0xff] }
 0x2b9   : > { %v3915_v10 = vsel %vm3813_vm1, %v9532_v37, 0.0  ;;  %vm3093_vm2 = vcmp.eq.s32.totalorder %v10711_v42, %v9574_v56  ;;  %5054 = vmatmul.mubr.f32.gmra.mrb[52].mxu0 %v11842_v3  ;;  %v3978_v11 = vadd.f32 %v3914_v55, %v3716_v5  ;;  %v3455_v52 = vadd.f32 %v3391_v15, %v3193_v12  ;;  %v11848_v15 = vld [vmem:[#allocation76_spill] sm:$0xff] }
 0x2ba   : > { %v4081_v63 = vadd.f32 %v10812_v35, %v4040_v26  ;;  %v3195_v45 = vsel %vm3093_vm2, %v9577_v2, 0.0  ;;  %5059 = vmatprep.mubr.f32.mxu0 %v11654_v8  ;;  %vm3291_vm6 = vcmp.eq.s32.totalorder %v10711_v42, %v9580_v7  ;;  %vm3553_vm3 = vcmp.eq.s32.totalorder %v10711_v42, %v9589_v32  ;;  %v11844_v35 = vld [vmem:[#allocation73_spill] sm:$0xff] }
 0x2bb   : > { %vm3815_vm4 = vcmp.eq.s32.totalorder %v10711_v42, %v9602_v6  ;;  %vm3092_vm5 = vcmp.eq.s32.totalorder %v10711_v42, %v9631_v48  ;;  %6247 = vmatmul.mubr.f32.gmra.mrb[50].mxu1 %v11841_v36  ;;  %v4042_v38 = vmul.f32 %v3978_v11, %v10753_v22  ;;  %v3717_v18 = vadd.f32 %v3653_v34, %v3455_v52  ;;  %v11843_v48 = vld [vmem:[#allocation72_spill] sm:$0xff] }
 0x2bc   : > { %v3393_v16 = vsel %vm3291_vm6, %v9586_v49, 0.0  ;;  %v3655_v37 = vsel %vm3553_vm3, %v9592_v60, 0.0  ;;  %6252 = vmatprep.mubr.f32.mxu1 %v11654_v8  ;;  %v3917_v2 = vsel %vm3815_vm4, %v9613_v30, 0.0  ;;  %v3194_v7 = vsel %vm3092_vm5, %v9639_v13, 0.0 }
 0x2bd   : > { %v3457_v56 = vadd.f32 %v3393_v16, %v3195_v45  ;;  %vm3290_vm9 = vcmp.eq.s32.totalorder %v10711_v42, %v9642_v47  ;;  %5063 = vmatmul.mubr.f32.gmra.mrb[54].mxu0 %v11843_v48  ;;  %v4123_v32 = vadd.f32 %v10835_v31, %v4042_v38  ;;  %v3979_v6 = vadd.f32 %v3915_v10, %v3717_v18  ;;  %v11849_v38 = vld [vmem:[#allocation34_spill] sm:$0xff] }
 0x2be   : > { %v3392_v22 = vsel %vm3290_vm9, %v9645_v14, 0.0  ;;  %vm3552_vm7 = vcmp.eq.s32.totalorder %v10711_v42, %v9655_v0  ;;  %5068 = vmatprep.mubr.f32.mxu0 %v11654_v8  ;;  %vm3814_vm8 = vcmp.eq.s32.totalorder %v10711_v42, %v9665_v1  ;;  %vm3094_vm10 = vcmp.eq.s32.totalorder %v10711_v42, %v9686_v9 }
 0x2bf   : > { %v3719_v49 = vadd.f32 %v3655_v37, %v3457_v56  ;;  %v3456_v60 = vadd.f32 %v3392_v22, %v3194_v7  ;;  %v3654_v30 = vsel %vm3552_vm7, %v9658_v33, 0.0  ;;  %6256 = vmatmul.mubr.f32.gmra.mrb[52].mxu1 %v11842_v3  ;;  %v4043_v13 = vmul.f32 %v3979_v6, %v10727_v40  ;;  %v11853_v22 = vld [vmem:[#allocation36_spill] sm:$0xff] }
 0x2c0   : > { %v3916_v47 = vsel %vm3814_vm8, %v9682_v43, 0.0  ;;  %vm3292_vm11 = vcmp.eq.s32.totalorder %v10711_v42, %v9705_v62  ;;  %6261 = vmatprep.mubr.f32.mxu1 %v11654_v8  ;;  %v3196_v33 = vsel %vm3094_vm10, %v9689_v24, 0.0  ;;  %vm3554_vm13 = vcmp.eq.s32.totalorder %v10711_v42, %v9717_v27 }
 0x2c1   : > { %v3981_v14 = vadd.f32 %v3917_v2, %v3719_v49  ;;  %v3718_v0 = vadd.f32 %v3654_v30, %v3456_v60  ;;  %v3394_v1 = vsel %vm3292_vm11, %v9708_v46, 0.0  ;;  %5072 = vmatmul.mubr.f32.gmra.mrb[56].mxu0 %v11844_v35  ;;  %v4061_v40 = vadd.f32 %v10854_v25, %v4043_v13 }
 0x2c2   : > { %v3458_v31 = vadd.f32 %v3394_v1, %v3196_v33  ;;  %vm3816_vm14 = vcmp.eq.s32.totalorder %v10711_v42, %v9726_v28  ;;  %5077 = vmatprep.mubr.f32.mxu0 %v11654_v8  ;;  %v3656_v24 = vsel %vm3554_vm13, %v9720_v21, 0.0  ;;  %v11845_v28 = vld [vmem:[#allocation74_spill] sm:$0xff]  ;;  %v8080_v55 = vmov 1966171168   ;;  %v11856_v33 = vld [vmem:[#allocation19_spill] sm:$0xff] }
 0x2c3   : > { %v4045_v43 = vmul.f32 %v3981_v14, %v10772_v50  ;;  %v3980_v9 = vadd.f32 %v3916_v47, %v3718_v0  ;;  %v3918_v62 = vsel %vm3816_vm14, %v9744_v57, 0.0  ;;  %6265 = vmatmul.mubr.f32.gmra.mrb[54].mxu1 %v11843_v48  ;;  %v4062_v46 = vrot.slane %v4061_v40, 4  ;;  %v11852_v48 = vld [vmem:[#allocation12_spill] sm:$0xff]  ;;  %v11855_v47 = vld [vmem:[#allocation38_spill] sm:$0xff] }
 0x2c4   : > { %v3720_v39 = vadd.f32 %v3656_v24, %v3458_v31  ;;  %6270 = vmatprep.mubr.f32.mxu1 %v11654_v8  ;;  %v11850_v16 = vmov 1.0|1.0   ;;  %v11857_v1 = vlaneseq  ;;  %v11860_v31 = vld [vmem:[#allocation22_spill] sm:$0xff] }
 0x2c5   : > { %v4103_v27 = vadd.f32 %v10877_v59, %v4045_v43  ;;  %v4044_v23 = vmul.f32 %v3980_v9, %v10734_v51  ;;  %5081 = vmatmul.mubr.f32.gmra.mrb[58].mxu0 %v11845_v28  ;;  %v4063_v25 = vadd.f32 %v4062_v46, %v4061_v40  ;;  %v4138_v59 = vunpack.c.l.s4 %v8080_v55  ;;  %v11861_v43 = vld [vmem:[#allocation14_spill] sm:$0xff]  ;;  %v11862_v9 = vld [vmem:[#allocation20_spill] sm:$0xff] }
 0x2c6   : > { %v3982_v17 = vadd.f32 %v3918_v62, %v3720_v39  ;;  %5086 = vmatprep.mubr.f32.mxu0 %v11654_v8  ;;  %v11863_v24 = vld [vmem:[#allocation42_spill] sm:$0xff]  ;;  %v11864_v62 = vld [vmem:[#allocation43_spill] sm:$0xff]  ;;  %v11865_v46 = vld [vmem:[#allocation44_spill] sm:$0xff] }
 0x2c7   : > { %v4104_v50 = vrot.slane %v4103_v27, 4  ;;  %v4082_v21 = vadd.f32 %v4081_v63, %v4044_v23  ;;  %6274 = vmatmul.mubr.f32.gmra.mrb[56].mxu1 %v11844_v35  ;;  %v4064_v57 = vrot.slane %v4063_v25, 2  ;;  %v4139_v11 = vunpack.c.0.s8 %v4138_v59  ;;  %v11866_v39 = vld [vmem:[#allocation45_spill] sm:$0xff]  ;;  %v11868_v23 = vld [vmem:[#allocation47_spill] sm:$0xff] }
 0x2c8   : > { %v4046_v54 = vmul.f32 %v3982_v17, %v11846_v44  ;;  %6279 = vmatprep.mubr.f32.mxu1 %v11654_v8  ;;  %v11871_v17 = vld [vmem:[#allocation50_spill] sm:$0xff] }
 0x2c9   : > { %v4105_v41 = vadd.f32 %v4104_v50, %v4103_v27  ;;  %v4083_v19 = vrot.slane %v4082_v21, 4  ;;  %5090 = vmatmul.mubr.f32.gmra.mrb[60].mxu0 %v11847_v4  ;;  %v4065_v51 = vadd.f32 %v4064_v57, %v4063_v25  ;;  %v11867_v27 = vld [vmem:[#allocation46_spill] sm:$0xff]  ;;  %v11870_v25 = vld [vmem:[#allocation49_spill] sm:$0xff] }
 0x2ca   : > { %v4124_v36 = vadd.f32 %v4123_v32, %v4046_v54  ;;  %5095 = vmatprep.mubr.f32.mxu0 %v11654_v8  ;;  %v10962_v32 = vsub.s32 %v4139_v11, %v11852_v48 }
 0x2cb   : > { %v4106_v53 = vrot.slane %v4105_v41, 2  ;;  %v4084_v29 = vadd.f32 %v4083_v19, %v4082_v21  ;;  %6283 = vmatmul.mubr.f32.gmra.mrb[58].mxu1 %v11845_v28  ;;  %v4066_v26 = vrot.slane %v4065_v51, 1  ;;  %v11869_v28 = vld [vmem:[#allocation48_spill] sm:$0xff] }
 0x2cc   : > { %v4125_v58 = vrot.slane %v4124_v36, 4  ;;  %6288 = vmatprep.mubr.f32.mxu1 %v11654_v8 }
 0x2cd   : > { %v4107_v5 = vadd.f32 %v4106_v53, %v4105_v41  ;;  %v4085_v12 = vrot.slane %v4084_v29, 2  ;;  %5099 = vmatmul.mubr.f32.gmra.mrb[62].mxu0 %v11848_v15  ;;  %v4067_v52 = vadd.f32 %v4066_v26, %v4065_v51 }
 0x2ce   : > { %v4126_v34 = vadd.f32 %v4125_v58, %v4124_v36  ;;  %5177 = vmatprep.mubr.f32.mxu0 %v11654_v8 }
 0x2cf   : > { %v4086_v10 = vadd.f32 %v4085_v12, %v4084_v29  ;;  %6292 = vmatmul.mubr.f32.gmra.mrb[60].mxu1 %v11847_v4  ;;  %v4108_v3 = vrot.slane %v4107_v5, 1 }
 0x2d0   : > { %v4127_v63 = vrot.slane %v4126_v34, 2  ;;  %6297 = vmatprep.mubr.f32.mxu1 %v11654_v8 }
 0x2d1   : > { %v4087_v45 = vrot.slane %v4086_v10, 1  ;;  %5179 = vmatmul.mubr.f32.vlgmr.msra.gmra.mrb[32].mxu0 %v11849_v38  ;;  %v4109_v2 = vadd.f32 %v4108_v3, %v4107_v5 }
 0x2d2   : > { %v4128_v18 = vadd.f32 %v4127_v63, %v4126_v34  ;;  %5184 = vmatprep.mubr.f32.mxu0 %v11654_v8  ;;  %7249 = vmatpush1.bf16.msk.msra.mxu0 %vm8990_vm12, %v11850_v16  ;;  %vm10983_vm12 = vcmp.lt.s32.totalorder %v11857_v1, 512 }
 0x2d3   : > { %v4088_v56 = vadd.f32 %v4087_v45, %v4086_v10  ;;  %6301 = vmatmul.mubr.f32.gmra.mrb[62].mxu1 %v11848_v15 }
 0x2d4   : > { %v4129_v7 = vrot.slane %v4128_v18, 1  ;;  %6379 = vmatprep.mubr.f32.mxu1 %v11654_v8 }
 0x2d5   : > { %v4135_v6 = vcombine.low %v4067_v52, %v4088_v56  ;;  %5186 = vmatmul.mubr.f32.gmra.mrb[34].mxu0 %v11853_v22 }
 0x2d6   : > { %v4130_v49 = vadd.f32 %v4129_v7, %v4128_v18  ;;  %5191 = vmatprep.mubr.f32.mxu0 %v11654_v8 }
 0x2d7   : > { %6381 = vmatmul.mubr.f32.vlgmr.msra.gmra.mrb[32].mxu1 %v11849_v38  ;;  %v4143_v13 = vrot.slane %v4135_v6, %v10962_v32 }
 0x2d8   : > { %v4136_v60 = vcombine.low %v4109_v2, %v4130_v49  ;;  %6386 = vmatprep.mubr.f32.mxu1 %v11654_v8  ;;  %7273 = vmatpush1.bf16.msk.msra.mxu1 %vm9008_vm15, %v11850_v16 }
 0x2d9   : > { %5193 = vmatmul.mubr.f32.gmra.mrb[36].mxu0 %v11855_v47 }
 0x2da   : > { %5198 = vmatprep.mubr.f32.mxu0 %v11654_v8  ;;  %v4150_v14 = vrot.slane %v4136_v60, %v10962_v32 }
 0x2db   : > { %6388 = vmatmul.mubr.f32.gmra.mrb[34].mxu1 %v11853_v22 }
 0x2dc   : > { %6393 = vmatprep.mubr.f32.mxu1 %v11654_v8  ;;  %v4151_v0 = vcombine.low %v4143_v13, %v4150_v14 }
 0x2dd   : > { %5200 = vmatmul.mubr.f32.gmra.mrb[38].mxu0 %v11856_v33 }
 0x2de   : > { %5205 = vmatprep.mubr.f32.mxu0 %v11654_v8  ;;  %v4158_v40 = vrot.slane %v4151_v0, %v10962_v32 }
 0x2df   : > { %6395 = vmatmul.mubr.f32.gmra.mrb[36].mxu1 %v11855_v47 }
 0x2e0   : > { %6400 = vmatprep.mubr.f32.mxu1 %v11654_v8  ;;  %4164 = vst.msk [vmem:[%s10993_s20] sm:$0xf] %vm10983_vm12, %v4158_v40 }
 0x2e1   : > { %5207 = vmatmul.mubr.f32.gmra.mrb[40].mxu0 %v11860_v31 }
 0x2e2   : > { %5212 = vmatprep.mubr.f32.mxu0 %v11654_v8 }
 0x2e3   : > { %6402 = vmatmul.mubr.f32.gmra.mrb[38].mxu1 %v11856_v33 }
 0x2e4   : > { %6407 = vmatprep.mubr.f32.mxu1 %v11654_v8 }
 0x2e5   : > { %5214 = vmatmul.mubr.f32.gmra.mrb[42].mxu0 %v11861_v43 }
 0x2e6   : > { %5219 = vmatprep.mubr.f32.mxu0 %v11654_v8 }
 0x2e7   : > { %6409 = vmatmul.mubr.f32.gmra.mrb[40].mxu1 %v11860_v31 }
 0x2e8   : > { %6414 = vmatprep.mubr.f32.mxu1 %v11654_v8 }
 0x2e9   : > { %5221 = vmatmul.mubr.f32.gmra.mrb[44].mxu0 %v11862_v9 }
 0x2ea   : > { %5226 = vmatprep.mubr.f32.mxu0 %v11654_v8 }
 0x2eb   : > { %6416 = vmatmul.mubr.f32.gmra.mrb[42].mxu1 %v11861_v43 }
 0x2ec   : > { %6421 = vmatprep.mubr.f32.mxu1 %v11654_v8 }
 0x2ed   : > { %5228 = vmatmul.mubr.f32.gmra.mrb[46].mxu0 %v11863_v24 }
 0x2ee   : > { %5233 = vmatprep.mubr.f32.mxu0 %v11654_v8 }
 0x2ef   : > { %6423 = vmatmul.mubr.f32.gmra.mrb[44].mxu1 %v11862_v9 }
 0x2f0   : > { %6428 = vmatprep.mubr.f32.mxu1 %v11654_v8 }
 0x2f1   : > { %5235 = vmatmul.mubr.f32.gmra.mrb[48].mxu0 %v11864_v62 }
 0x2f2   : > { %5240 = vmatprep.mubr.f32.mxu0 %v11654_v8 }
 0x2f3   : > { %6430 = vmatmul.mubr.f32.gmra.mrb[46].mxu1 %v11863_v24 }
 0x2f4   : > { %6435 = vmatprep.mubr.f32.mxu1 %v11654_v8 }
 0x2f5   : > { %5242 = vmatmul.mubr.f32.gmra.mrb[50].mxu0 %v11865_v46 }
 0x2f6   : > { %5247 = vmatprep.mubr.f32.mxu0 %v11654_v8 }
 0x2f7   : > { %6437 = vmatmul.mubr.f32.gmra.mrb[48].mxu1 %v11864_v62 }
 0x2f8   : > { %6442 = vmatprep.mubr.f32.mxu1 %v11654_v8 }
 0x2f9   : > { %5249 = vmatmul.mubr.f32.gmra.mrb[52].mxu0 %v11866_v39 }
 0x2fa   : > { %5254 = vmatprep.mubr.f32.mxu0 %v11654_v8 }
 0x2fb   : > { %6444 = vmatmul.mubr.f32.gmra.mrb[50].mxu1 %v11865_v46 }
 0x2fc   : > { %6449 = vmatprep.mubr.f32.mxu1 %v11654_v8 }
 0x2fd   : > { %5256 = vmatmul.mubr.f32.gmra.mrb[54].mxu0 %v11867_v27 }
 0x2fe   : > { %5261 = vmatprep.mubr.f32.mxu0 %v11654_v8 }
 0x2ff   : > { %6451 = vmatmul.mubr.f32.gmra.mrb[52].mxu1 %v11866_v39 }
 0x300   : > { %6456 = vmatprep.mubr.f32.mxu1 %v11654_v8 }
 0x301   : > { %5263 = vmatmul.mubr.f32.gmra.mrb[56].mxu0 %v11868_v23 }
 0x302   : > { %5268 = vmatprep.mubr.f32.mxu0 %v11654_v8 }
 0x303   : > { %6458 = vmatmul.mubr.f32.gmra.mrb[54].mxu1 %v11867_v27 }
 0x304   : > { %6463 = vmatprep.mubr.f32.mxu1 %v11654_v8 }
 0x305   : > { %5270 = vmatmul.mubr.f32.gmra.mrb[58].mxu0 %v11869_v28 }
 0x306   : > { %5275 = vmatprep.mubr.f32.mxu0 %v11654_v8 }
 0x307   : > { %6465 = vmatmul.mubr.f32.gmra.mrb[56].mxu1 %v11868_v23 }
 0x308   : > { %6470 = vmatprep.mubr.f32.mxu1 %v11654_v8 }
 0x309   : > { %5277 = vmatmul.mubr.f32.gmra.mrb[60].mxu0 %v11870_v25 }
 0x30a   : > { %5282 = vmatprep.mubr.f32.mxu0 %v11654_v8 }
 0x30b   : > { %6472 = vmatmul.mubr.f32.gmra.mrb[58].mxu1 %v11869_v28 }
 0x30c   : > { %6477 = vmatprep.mubr.f32.mxu1 %v11654_v8 }
 0x30d   : > { %5284 = vmatmul.mubr.f32.gmra.mrb[62].mxu0 %v11871_v17 }
 0x30e   : > { %5354 = vmatprep.mubr.f32.mxu0 %v11654_v8 }
 0x30f   : > { %6479 = vmatmul.mubr.f32.gmra.mrb[60].mxu1 %v11870_v25 }
 0x310   : > { %6484 = vmatprep.mubr.f32.mxu1 %v11654_v8 }
 0x311   : > { %5356 = vmatmul.mubr.f32.vlgmr.msra.gmra.mrb[32].mxu0 %v11849_v38 }
 0x312   : > { %5361 = vmatprep.mubr.f32.mxu0 %v11654_v8 }
 0x313   : > { %6486 = vmatmul.mubr.f32.gmra.mrb[62].mxu1 %v11871_v17 }
 0x314   : > { %6556 = vmatprep.mubr.f32.mxu1 %v11654_v8 }
 0x315   : > { %5363 = vmatmul.mubr.f32.gmra.mrb[34].mxu0 %v11853_v22 }
 0x316   : > { %5368 = vmatprep.mubr.f32.mxu0 %v11654_v8 }
 0x317   : > { %6558 = vmatmul.mubr.f32.vlgmr.msra.gmra.mrb[32].mxu1 %v11849_v38 }
 0x318   : > { %6563 = vmatprep.mubr.f32.mxu1 %v11654_v8 }
 0x319   : > { %5370 = vmatmul.mubr.f32.gmra.mrb[36].mxu0 %v11855_v47 }
 0x31a   : > { %5375 = vmatprep.mubr.f32.mxu0 %v11654_v8 }
 0x31b   : > { %6565 = vmatmul.mubr.f32.gmra.mrb[34].mxu1 %v11853_v22 }
 0x31c   : > { %6570 = vmatprep.mubr.f32.mxu1 %v11654_v8 }
 0x31d   : > { %5377 = vmatmul.mubr.f32.gmra.mrb[38].mxu0 %v11856_v33 }
 0x31e   : > { %5382 = vmatprep.mubr.f32.mxu0 %v11654_v8 }
 0x31f   : > { %6572 = vmatmul.mubr.f32.gmra.mrb[36].mxu1 %v11855_v47 }
 0x320   : > { %6577 = vmatprep.mubr.f32.mxu1 %v11654_v8 }
 0x321   : > { %5384 = vmatmul.mubr.f32.gmra.mrb[40].mxu0 %v11860_v31 }
 0x322   : > { %5389 = vmatprep.mubr.f32.mxu0 %v11654_v8 }
 0x323   : > { %6579 = vmatmul.mubr.f32.gmra.mrb[38].mxu1 %v11856_v33 }
 0x324   : > { %6584 = vmatprep.mubr.f32.mxu1 %v11654_v8 }
 0x325   : > { %5391 = vmatmul.mubr.f32.gmra.mrb[42].mxu0 %v11861_v43 }
 0x326   : > { %5396 = vmatprep.mubr.f32.mxu0 %v11654_v8 }
 0x327   : > { %6586 = vmatmul.mubr.f32.gmra.mrb[40].mxu1 %v11860_v31 }
 0x328   : > { %6591 = vmatprep.mubr.f32.mxu1 %v11654_v8 }
 0x329   : > { %5398 = vmatmul.mubr.f32.gmra.mrb[44].mxu0 %v11862_v9 }
 0x32a   : > { %5403 = vmatprep.mubr.f32.mxu0 %v11654_v8 }
 0x32b   : > { %6593 = vmatmul.mubr.f32.gmra.mrb[42].mxu1 %v11861_v43 }
 0x32c   : > { %6598 = vmatprep.mubr.f32.mxu1 %v11654_v8 }
 0x32d   : > { %5405 = vmatmul.mubr.f32.gmra.mrb[46].mxu0 %v11863_v24 }
 0x32e   : > { %5410 = vmatprep.mubr.f32.mxu0 %v11654_v8 }
 0x32f   : > { %6600 = vmatmul.mubr.f32.gmra.mrb[44].mxu1 %v11862_v9 }
 0x330   : > { %6605 = vmatprep.mubr.f32.mxu1 %v11654_v8 }
 0x331   : > { %5412 = vmatmul.mubr.f32.gmra.mrb[48].mxu0 %v11864_v62 }
 0x332   : > { %5417 = vmatprep.mubr.f32.mxu0 %v11654_v8 }
 0x333   : > { %6607 = vmatmul.mubr.f32.gmra.mrb[46].mxu1 %v11863_v24 }
 0x334   : > { %6612 = vmatprep.mubr.f32.mxu1 %v11654_v8 }
 0x335   : > { %5419 = vmatmul.mubr.f32.gmra.mrb[50].mxu0 %v11865_v46 }
 0x336   : > { %5424 = vmatprep.mubr.f32.mxu0 %v11654_v8 }
 0x337   : > { %6614 = vmatmul.mubr.f32.gmra.mrb[48].mxu1 %v11864_v62 }
 0x338   : > { %6619 = vmatprep.mubr.f32.mxu1 %v11654_v8 }
 0x339   : > { %5426 = vmatmul.mubr.f32.gmra.mrb[52].mxu0 %v11866_v39 }
 0x33a   : > { %5431 = vmatprep.mubr.f32.mxu0 %v11654_v8 }
 0x33b   : > { %6621 = vmatmul.mubr.f32.gmra.mrb[50].mxu1 %v11865_v46 }
 0x33c   : > { %6626 = vmatprep.mubr.f32.mxu1 %v11654_v8 }
 0x33d   : > { %5433 = vmatmul.mubr.f32.gmra.mrb[54].mxu0 %v11867_v27 }
 0x33e   : > { %5438 = vmatprep.mubr.f32.mxu0 %v11654_v8 }
 0x33f   : > { %6628 = vmatmul.mubr.f32.gmra.mrb[52].mxu1 %v11866_v39 }
 0x340   : > { %6633 = vmatprep.mubr.f32.mxu1 %v11654_v8 }
 0x341   : > { %5440 = vmatmul.mubr.f32.gmra.mrb[56].mxu0 %v11868_v23 }
 0x342   : > { %5445 = vmatprep.mubr.f32.mxu0 %v11654_v8 }
 0x343   : > { %6635 = vmatmul.mubr.f32.gmra.mrb[54].mxu1 %v11867_v27 }
 0x344   : > { %6640 = vmatprep.mubr.f32.mxu1 %v11654_v8 }
 0x345   : > { %5447 = vmatmul.mubr.f32.gmra.mrb[58].mxu0 %v11869_v28 }
 0x346   : > { %5452 = vmatprep.mubr.f32.mxu0 %v11654_v8 }
 0x347   : > { %6642 = vmatmul.mubr.f32.gmra.mrb[56].mxu1 %v11868_v23 }
 0x348   : > { %6647 = vmatprep.mubr.f32.mxu1 %v11654_v8 }
 0x349   : > { %5454 = vmatmul.mubr.f32.gmra.mrb[60].mxu0 %v11870_v25 }
 0x34a   : > { %5459 = vmatprep.mubr.f32.mxu0 %v11654_v8 }
 0x34b   : > { %6649 = vmatmul.mubr.f32.gmra.mrb[58].mxu1 %v11869_v28 }
 0x34c   : > { %6654 = vmatprep.mubr.f32.mxu1 %v11654_v8 }
 0x34d   : > { %5461 = vmatmul.mubr.f32.gmra.mrb[62].mxu0 %v11871_v17 }
 0x34f   : > { %6656 = vmatmul.mubr.f32.gmra.mrb[60].mxu1 %v11870_v25 }
 0x350   : > { %6661 = vmatprep.mubr.f32.mxu1 %v11654_v8 }
 0x353   : > { %6663 = vmatmul.mubr.f32.gmra.mrb[62].mxu1 %v11871_v17 }
 0x354   : > { %7995 = shalt.err (!%p7992_p3)
}
 0x355   : > { %s7996_s7 = scalar_lea.hbm %s11116_s27, 64  ;;  %s8000_s10 = scalar_lea.hbm %s11340_s2, 256 }
 0x356   : > { %p7997_p4 = scmp.ne.s32.totalorder %s11116_s27, %s7996_s7  ;;  %p8001_p9 = scmp.lt.u32.totalorder %s11116_s27, %s11340_s2 }
 0x357   : > { %p8002_p10 = scmp.lt.u32.totalorder %s8000_s10, %s7996_s7  ;;  %p8004_p12 = scmp.lt.u32.totalorder %s7996_s7, %s11116_s27 }
 0x358   : > { %p7998_p7 = pnand %p7997_p4, %p8142_p5 }
 0x359   : > { %p8003_p11 = por %p8002_p10, %p8001_p9 }
 0x35a   : > { %p7999_p8 = pneg %p7998_p7 }
 0x35b   : > { %p8005_p13 = por %p8004_p12, %p8003_p11 }
 0x35d   : > { %p8006_p0 = pnand %p8005_p13, %p7999_p8 }
 0x35f   : > { %8009 = shalt.err (!%p8006_p0)
}
 0x360   : > { %7934 = dma.vmem_to_hbm [thread:$0]  (%p8142_p5), %s7006_s28, 64, %s11116_s27, %s6986_s29   ;;  %v11872_v8 = vld [vmem:[#allocation8_spill] sm:$0xff]  ;;  %v11873_v21 = vld [vmem:[#allocation9_spill] sm:$0xff]  ;;  %v8082_v44 = vmov 0   ;;  %v6713_v3 = vsub.s32 1, %v11852_v48  ;;  %v6717_v11 = vsub.s32 5, %v11852_v48 }
 0x361   : > { %v7930_v50 = vcvt.f32.s32 %v11872_v8  ;;  %v7933_v57 = vcvt.f32.s32 %v11873_v21  ;;  %v11874_v4 = vld [vmem:[#allocation24_spill] sm:$0xff]  ;;  %v11875_v26 = vld [vmem:[#allocation25_spill] sm:$0xff]  ;;  %v11877_v31 = vld [vmem:[#allocation23_spill] sm:$0xff]  ;;  %s175_s25 = scalar_lea.vmem [#allocation4], %s7114_s19  ;;  %s11293_s29 = scalar_lea.hbm %s11341_s3, %s7176_s24 }
 0x362   : > { %vm6669_vm1 = vcmp.ge.s32.totalorder %v11874_v4, 0  ;;  %vm6671_vm2 = vcmp.lt.s32.totalorder %v11874_v4, 16  ;;  %v6701_v36 = vrot.slane %v11874_v4, 7  ;;  %vm6670_vm8 = vcmp.ge.s32.totalorder %v11875_v26, 0  ;;  %v11876_v13 = vld [vmem:[#allocation13_spill] sm:$0xff]  ;;  %s7019_s26 = sshll.u32 %s175_s25, 4  ;;  %s11295_s26 = int_to_ptr.vmem [resolvable:$true] %s7019_s26 }
 0x363   : > { %vm6675_vm15 = vcmp.ge.s32.totalorder %v7930_v50, 0  ;;  %vm6687_vm0 = vcmp.lt.s32.totalorder %v7930_v50, 8  ;;  %vm6676_vm6 = vcmp.ge.s32.totalorder %v7933_v57, 0  ;;  %v6699_v51 = vmul.u32 16, %v7930_v50  ;;  %vm6673_vm3 = vmand %vm6669_vm1, %vm6671_vm2  ;;  %v11878_v25 = vld [vmem:[#allocation17_spill] sm:$0xff]  ;;  %s6991_s30 = scalar_lea.sflag [#allocation5], %s10968_s17 }
 0x364   : > { %v6677_v54 = vsel %vm6675_vm15, 1, %v8082_v44  ;;  %v6689_v19 = vsel %vm6687_vm0, 1, %v8082_v44  ;;  %v6678_v29 = vsel %vm6676_vm6, 1, %v8082_v44  ;;  %vm6688_vm5 = vcmp.lt.s32.totalorder %v7933_v57, 8  ;;  %s8010_s19 = scalar_lea.vmem %s11295_s26, 64  ;;  %s8083_s16 = smov [#allocation4]  }
 0x365   : > { %v7162_v41 = vrot.slane %v6677_v54, 9  ;;  %v7164_v53 = vrot.slane %v6689_v19, 9  ;;  %v6703_v58 = vadd.s32 %v6701_v36, %v6699_v51  ;;  %v7163_v55 = vrot.slane %v6678_v29, 9  ;;  %p8011_p1 = scmp.ne.s32.totalorder %s11295_s26, %s8010_s19  ;;  %s8014_s4 = sshll.u32 %s8083_s16, 4  ;;  %s8015_s4 = int_to_ptr.vmem [resolvable:$false] %s8014_s4 }
 0x366   : > { %v6690_v59 = vsel %vm6688_vm5, 1, %v8082_v44  ;;  %vm6672_vm10 = vcmp.lt.s32.totalorder %v11875_v26, 16  ;;  %v6700_v5 = vmul.u32 16, %v7933_v57  ;;  %v6702_v12 = vrot.slane %v11875_v26, 7  ;;  %s8016_s5 = scalar_lea.vmem %s8015_s4, 128  ;;  %p8017_p4 = scmp.lt.s32.totalorder %s11295_s26, %s8015_s4 }
 0x367   : > { %vm6683_vm4 = vcmp.ne.s32.totalorder %v7162_v41, 0  ;;  %vm6695_vm7 = vcmp.ne.s32.totalorder %v7164_v53, 0  ;;  %v7166_v15 = vrot.slane %v6703_v58, 9  ;;  %v7165_v34 = vrot.slane %v6690_v59, 9  ;;  %vm6674_vm13 = vmand %vm6670_vm8, %vm6672_vm10  ;;  %v11879_v53 = vld [vmem:[#allocation78_spill] sm:$0xff]  ;;  %p8012_p2 = pnand %p8011_p1, %p8142_p5  ;;  %p8018_p7 = scmp.lt.s32.totalorder %s8016_s5, %s8010_s19 }
 0x368   : > { %vm6685_vm9 = vmand %vm6673_vm3, %vm6683_vm4  ;;  %vm6684_vm14 = vcmp.ne.s32.totalorder %v7163_v55, 0  ;;  %v6704_v10 = vadd.s32 %v6702_v12, %v6700_v5 }
 0x369   : > { %vm6697_vm11 = vmand %vm6685_vm9, %vm6695_vm7  ;;  %vm6696_vm0 = vcmp.ne.s32.totalorder %v7165_v34, 0  ;;  %p8013_p3 = pneg %p8012_p2  ;;  %p8019_p8 = por %p8018_p7, %p8017_p4 }
 0x36a   : > { %v6709_v63 = vsel %vm6697_vm11, %v7166_v15, 4294967295  ;;  %vm6686_vm15 = vmand %vm6674_vm13, %vm6684_vm14  ;;  %v7167_v52 = vrot.slane %v6704_v10, 9 }
 0x36b   : > { %v6714_v45 = vrot.slane %v6709_v63, %v6713_v3  ;;  %vm6698_vm1 = vmand %vm6686_vm15, %vm6696_vm0  ;;  %v6718_v38 = vrot.slane %v6709_v63, %v6717_v11  ;;  %p8020_p9 = pnand %p8019_p8, %p8013_p3 }
 0x36c   : > { %v6710_v18 = vsel %vm6698_vm1, %v7167_v52, 4294967295 }
 0x36d   : > { %v11147_v16 = vrot.slane %v6714_v45, %v6713_v3  ;;  %v11149_v37 = vrot.slane %v6718_v38, %v6713_v3  ;;  %v6722_v56 = vrot.slane %v6710_v18, %v6713_v3  ;;  %v6726_v2 = vrot.slane %v6710_v18, %v6717_v11  ;;  %v11880_v11 = vld [vmem:[#allocation84_spill] sm:$0xff] }
 0x36f   : > { %vm6743_vm2 = vcmp.eq.s32.totalorder %v11852_v48, %v11147_v16  ;;  %vm6744_vm6 = vcmp.eq.s32.totalorder %v11852_v48, %v11149_v37  ;;  %v11155_v6 = vrot.slane %v6722_v56, %v6713_v3  ;;  %v11157_v60 = vrot.slane %v6726_v2, %v6713_v3 }
 0x370   : > { %vm6747_vm3 = vcmp.eq.s32.totalorder %v11876_v13, %v11147_v16  ;;  %vm6748_vm4 = vcmp.eq.s32.totalorder %v11876_v13, %v11149_v37  ;;  %vm6751_vm7 = vcmp.eq.s32.totalorder %v11877_v31, %v11147_v16  ;;  %vm6752_vm8 = vcmp.eq.s32.totalorder %v11877_v31, %v11149_v37 }
 0x371   : > { %vm6745_vm5 = vcmp.eq.s32.totalorder %v11852_v48, %v11155_v6  ;;  %vm6746_vm9 = vcmp.eq.s32.totalorder %v11852_v48, %v11157_v60  ;;  %vm6749_vm10 = vcmp.eq.s32.totalorder %v11876_v13, %v11155_v6  ;;  %vm6750_vm11 = vcmp.eq.s32.totalorder %v11876_v13, %v11157_v60 }
 0x372   : > { %vm6755_vm13 = vcmp.eq.s32.totalorder %v11878_v25, %v11147_v16  ;;  %vm6756_vm14 = vcmp.eq.s32.totalorder %v11878_v25, %v11149_v37  ;;  %vm6753_vm15 = vcmp.eq.s32.totalorder %v11877_v31, %v11155_v6  ;;  %vm6754_vm0 = vcmp.eq.s32.totalorder %v11877_v31, %v11157_v60 }
 0x373   : > { %vm6759_vm1 = vcmp.eq.s32.totalorder %v11879_v53, %v11147_v16 }
 0x3e4   : > { %v5357_v7 = vpop.f32.mrb[32].mxu0 }
 0x3e5   : > { %v6807_v22 = vsel %vm6743_vm2, %v5357_v7, 0.0  ;;  %v5359_v49 = vpop.f32.mrb[33].mxu0  ;;  %vm6760_vm2 = vcmp.eq.s32.totalorder %v11879_v53, %v11149_v37 }
 0x3e6   : > { %v6808_v30 = vsel %vm6744_vm6, %v5359_v49, 0.0  ;;  %vm6757_vm6 = vcmp.eq.s32.totalorder %v11878_v25, %v11155_v6 }
 0x3e8   : > { %v5364_v47 = vpop.f32.mrb[34].mxu0 }
 0x3e9   : > { %v6811_v14 = vsel %vm6747_vm3, %v5364_v47, 0.0  ;;  %v5366_v0 = vpop.f32.mrb[35].mxu0  ;;  %vm6758_vm3 = vcmp.eq.s32.totalorder %v11878_v25, %v11157_v60 }
 0x3ea   : > { %v6559_v33 = vpop.f32.mrb[32].mxu1  ;;  %v6871_v1 = vadd.f32 %v6811_v14, %v6807_v22  ;;  %v6812_v40 = vsel %vm6748_vm4, %v5366_v0, 0.0  ;;  %vm6763_vm4 = vcmp.eq.s32.totalorder %v11880_v11, %v11147_v16  ;;  %v11881_v14 = vld [vmem:[#allocation86_spill] sm:$0xff] }
 0x3eb   : > { %v6809_v43 = vsel %vm6745_vm5, %v6559_v33, 0.0  ;;  %v6561_v9 = vpop.f32.mrb[33].mxu1  ;;  %v6892_v24 = vadd.f32 %v6812_v40, %v6808_v30  ;;  %vm6764_vm5 = vcmp.eq.s32.totalorder %v11880_v11, %v11149_v37 }
 0x3ec   : > { %v6810_v62 = vsel %vm6746_vm9, %v6561_v9, 0.0  ;;  %v5371_v46 = vpop.f32.mrb[36].mxu0  ;;  %vm6761_vm9 = vcmp.eq.s32.totalorder %v11879_v53, %v11155_v6 }
 0x3ed   : > { %v6815_v48 = vsel %vm6751_vm7, %v5371_v46, 0.0  ;;  %v5373_v39 = vpop.f32.mrb[37].mxu0  ;;  %vm6762_vm7 = vcmp.eq.s32.totalorder %v11879_v53, %v11157_v60 }
 0x3ee   : > { %v6566_v27 = vpop.f32.mrb[34].mxu1  ;;  %v6872_v23 = vadd.f32 %v6871_v1, %v6815_v48  ;;  %v6816_v28 = vsel %vm6752_vm8, %v5373_v39, 0.0  ;;  %vm6767_vm8 = vcmp.eq.s32.totalorder %v11881_v14, %v11147_v16 }
 0x3ef   : > { %v6813_v17 = vsel %vm6749_vm10, %v6566_v27, 0.0  ;;  %v6568_v8 = vpop.f32.mrb[35].mxu1  ;;  %v6893_v50 = vadd.f32 %v6892_v24, %v6816_v28  ;;  %vm6768_vm10 = vcmp.eq.s32.totalorder %v11881_v14, %v11149_v37  ;;  %v11882_v27 = vld [vmem:[#allocation87_spill] sm:$0xff] }
 0x3f0   : > { %v6913_v21 = vadd.f32 %v6813_v17, %v6809_v43  ;;  %v6814_v57 = vsel %vm6750_vm11, %v6568_v8, 0.0  ;;  %v5378_v44 = vpop.f32.mrb[38].mxu0  ;;  %vm6765_vm11 = vcmp.eq.s32.totalorder %v11880_v11, %v11155_v6 }
 0x3f1   : > { %v6934_v54 = vadd.f32 %v6814_v57, %v6810_v62  ;;  %v6819_v41 = vsel %vm6755_vm13, %v5378_v44, 0.0  ;;  %v5380_v19 = vpop.f32.mrb[39].mxu0  ;;  %vm6766_vm13 = vcmp.eq.s32.totalorder %v11880_v11, %v11157_v60 }
 0x3f2   : > { %v6573_v4 = vpop.f32.mrb[36].mxu1  ;;  %v6873_v51 = vadd.f32 %v6872_v23, %v6819_v41  ;;  %v6820_v36 = vsel %vm6756_vm14, %v5380_v19, 0.0  ;;  %vm6771_vm14 = vcmp.eq.s32.totalorder %v11882_v27, %v11147_v16 }
 0x3f3   : > { %v6817_v29 = vsel %vm6753_vm15, %v6573_v4, 0.0  ;;  %v6575_v58 = vpop.f32.mrb[37].mxu1  ;;  %v6894_v55 = vadd.f32 %v6893_v50, %v6820_v36  ;;  %vm6772_vm15 = vcmp.eq.s32.totalorder %v11882_v27, %v11149_v37  ;;  %v11883_v4 = vld [vmem:[#allocation99_spill] sm:$0xff] }
 0x3f4   : > { %v6914_v59 = vadd.f32 %v6913_v21, %v6817_v29  ;;  %v6818_v26 = vsel %vm6754_vm0, %v6575_v58, 0.0  ;;  %v5385_v5 = vpop.f32.mrb[40].mxu0  ;;  %vm6769_vm0 = vcmp.eq.s32.totalorder %v11881_v14, %v11155_v6 }
 0x3f5   : > { %v6935_v12 = vadd.f32 %v6934_v54, %v6818_v26  ;;  %v6823_v15 = vsel %vm6759_vm1, %v5385_v5, 0.0  ;;  %v5387_v34 = vpop.f32.mrb[41].mxu0  ;;  %vm6770_vm1 = vcmp.eq.s32.totalorder %v11881_v14, %v11157_v60 }
 0x3f6   : > { %v6580_v10 = vpop.f32.mrb[38].mxu1  ;;  %v6874_v3 = vadd.f32 %v6873_v51, %v6823_v15  ;;  %v6824_v63 = vsel %vm6760_vm2, %v5387_v34, 0.0  ;;  %vm6775_vm2 = vcmp.eq.s32.totalorder %v11883_v4, %v11147_v16 }
 0x3f7   : > { %v6821_v52 = vsel %vm6757_vm6, %v6580_v10, 0.0  ;;  %v6582_v45 = vpop.f32.mrb[39].mxu1  ;;  %v6895_v38 = vadd.f32 %v6894_v55, %v6824_v63  ;;  %vm6776_vm6 = vcmp.eq.s32.totalorder %v11883_v4, %v11149_v37  ;;  %v11884_v10 = vld [vmem:[#allocation101_spill] sm:$0xff] }
 0x3f8   : > { %v6915_v18 = vadd.f32 %v6914_v59, %v6821_v52  ;;  %v6822_v56 = vsel %vm6758_vm3, %v6582_v45, 0.0  ;;  %v5392_v2 = vpop.f32.mrb[42].mxu0  ;;  %vm6773_vm3 = vcmp.eq.s32.totalorder %v11882_v27, %v11155_v6 }
 0x3f9   : > { %v6936_v7 = vadd.f32 %v6935_v12, %v6822_v56  ;;  %v6827_v22 = vsel %vm6763_vm4, %v5392_v2, 0.0  ;;  %v5394_v49 = vpop.f32.mrb[43].mxu0  ;;  %vm6774_vm4 = vcmp.eq.s32.totalorder %v11882_v27, %v11157_v60 }
 0x3fa   : > { %v6587_v30 = vpop.f32.mrb[40].mxu1  ;;  %v6875_v13 = vadd.f32 %v6874_v3, %v6827_v22  ;;  %v6828_v47 = vsel %vm6764_vm5, %v5394_v49, 0.0  ;;  %vm6779_vm5 = vcmp.eq.s32.totalorder %v11884_v10, %v11147_v16 }
 0x3fb   : > { %v6825_v0 = vsel %vm6761_vm9, %v6587_v30, 0.0  ;;  %v6589_v33 = vpop.f32.mrb[41].mxu1  ;;  %v6896_v1 = vadd.f32 %v6895_v38, %v6828_v47  ;;  %vm6780_vm9 = vcmp.eq.s32.totalorder %v11884_v10, %v11149_v37  ;;  %v11885_v30 = vld [vmem:[#allocation102_spill] sm:$0xff] }
 0x3fc   : > { %v6916_v40 = vadd.f32 %v6915_v18, %v6825_v0  ;;  %v6826_v31 = vsel %vm6762_vm7, %v6589_v33, 0.0  ;;  %v5399_v43 = vpop.f32.mrb[44].mxu0  ;;  %vm6777_vm7 = vcmp.eq.s32.totalorder %v11883_v4, %v11155_v6 }
 0x3fd   : > { %v6937_v9 = vadd.f32 %v6936_v7, %v6826_v31  ;;  %v6831_v24 = vsel %vm6767_vm8, %v5399_v43, 0.0  ;;  %v5401_v62 = vpop.f32.mrb[45].mxu0  ;;  %vm6778_vm8 = vcmp.eq.s32.totalorder %v11883_v4, %v11157_v60 }
 0x3fe   : > { %v6594_v46 = vpop.f32.mrb[42].mxu1  ;;  %v6876_v48 = vadd.f32 %v6875_v13, %v6831_v24  ;;  %v6832_v39 = vsel %vm6768_vm10, %v5401_v62, 0.0  ;;  %vm6783_vm10 = vcmp.eq.s32.totalorder %v11885_v30, %v11147_v16 }
 0x3ff   : > { %v6829_v23 = vsel %vm6765_vm11, %v6594_v46, 0.0  ;;  %v6596_v28 = vpop.f32.mrb[43].mxu1  ;;  %v6897_v25 = vadd.f32 %v6896_v1, %v6832_v39  ;;  %vm6784_vm11 = vcmp.eq.s32.totalorder %v11885_v30, %v11149_v37  ;;  %v11886_v46 = vld [vmem:[#allocation103_spill] sm:$0xff] }
 0x400   : > { %v6917_v17 = vadd.f32 %v6916_v40, %v6829_v23  ;;  %v6830_v8 = vsel %vm6766_vm13, %v6596_v28, 0.0  ;;  %v5406_v50 = vpop.f32.mrb[46].mxu0  ;;  %vm6781_vm13 = vcmp.eq.s32.totalorder %v11884_v10, %v11155_v6 }
 0x401   : > { %v6938_v21 = vadd.f32 %v6937_v9, %v6830_v8  ;;  %v6835_v57 = vsel %vm6771_vm14, %v5406_v50, 0.0  ;;  %v5408_v44 = vpop.f32.mrb[47].mxu0  ;;  %vm6782_vm14 = vcmp.eq.s32.totalorder %v11884_v10, %v11157_v60 }
 0x402   : > { %v6601_v54 = vpop.f32.mrb[44].mxu1  ;;  %v6877_v41 = vadd.f32 %v6876_v48, %v6835_v57  ;;  %v6836_v19 = vsel %vm6772_vm15, %v5408_v44, 0.0  ;;  %vm6787_vm15 = vcmp.eq.s32.totalorder %v11886_v46, %v11147_v16 }
 0x403   : > { %v6833_v51 = vsel %vm6769_vm0, %v6601_v54, 0.0  ;;  %v6603_v36 = vpop.f32.mrb[45].mxu1  ;;  %v6898_v53 = vadd.f32 %v6897_v25, %v6836_v19  ;;  %vm6788_vm0 = vcmp.eq.s32.totalorder %v11886_v46, %v11149_v37  ;;  %v11887_v54 = vld [vmem:[#allocation106_spill] sm:$0xff] }
 0x404   : > { %v6918_v29 = vadd.f32 %v6917_v17, %v6833_v51  ;;  %v6834_v58 = vsel %vm6770_vm1, %v6603_v36, 0.0  ;;  %v5413_v55 = vpop.f32.mrb[48].mxu0  ;;  %vm6785_vm1 = vcmp.eq.s32.totalorder %v11885_v30, %v11155_v6 }
 0x405   : > { %v6939_v59 = vadd.f32 %v6938_v21, %v6834_v58  ;;  %v6839_v26 = vsel %vm6775_vm2, %v5413_v55, 0.0  ;;  %v5415_v5 = vpop.f32.mrb[49].mxu0  ;;  %vm6786_vm2 = vcmp.eq.s32.totalorder %v11885_v30, %v11157_v60 }
 0x406   : > { %v6608_v12 = vpop.f32.mrb[46].mxu1  ;;  %v6878_v15 = vadd.f32 %v6877_v41, %v6839_v26  ;;  %v6840_v34 = vsel %vm6776_vm6, %v5415_v5, 0.0  ;;  %vm6791_vm6 = vcmp.eq.s32.totalorder %v11887_v54, %v11147_v16 }
 0x407   : > { %v6837_v3 = vsel %vm6773_vm3, %v6608_v12, 0.0  ;;  %v6610_v63 = vpop.f32.mrb[47].mxu1  ;;  %v6899_v11 = vadd.f32 %v6898_v53, %v6840_v34  ;;  %vm6792_vm3 = vcmp.eq.s32.totalorder %v11887_v54, %v11149_v37 }
 0x408   : > { %v6919_v52 = vadd.f32 %v6918_v29, %v6837_v3  ;;  %v6838_v45 = vsel %vm6774_vm4, %v6610_v63, 0.0  ;;  %v5420_v38 = vpop.f32.mrb[50].mxu0  ;;  %vm6789_vm4 = vcmp.eq.s32.totalorder %v11886_v46, %v11155_v6 }
 0x409   : > { %v6940_v18 = vadd.f32 %v6939_v59, %v6838_v45  ;;  %v6843_v56 = vsel %vm6779_vm5, %v5420_v38, 0.0  ;;  %v5422_v2 = vpop.f32.mrb[51].mxu0  ;;  %vm6790_vm5 = vcmp.eq.s32.totalorder %v11886_v46, %v11157_v60 }
 0x40a   : > { %v6615_v7 = vpop.f32.mrb[48].mxu1  ;;  %v6879_v22 = vadd.f32 %v6878_v15, %v6843_v56  ;;  %v6844_v49 = vsel %vm6780_vm9, %v5422_v2, 0.0  ;;  %vm6795_vm9 = vcmp.eq.s32.totalorder %v10689_v20, %v11147_v16 }
 0x40b   : > { %v6841_v13 = vsel %vm6777_vm7, %v6615_v7, 0.0  ;;  %v6617_v47 = vpop.f32.mrb[49].mxu1  ;;  %v6900_v14 = vadd.f32 %v6899_v11, %v6844_v49  ;;  %vm6796_vm7 = vcmp.eq.s32.totalorder %v10689_v20, %v11149_v37 }
 0x40c   : > { %v6920_v0 = vadd.f32 %v6919_v52, %v6841_v13  ;;  %v6842_v33 = vsel %vm6778_vm8, %v6617_v47, 0.0  ;;  %v5427_v1 = vpop.f32.mrb[52].mxu0  ;;  %vm6793_vm8 = vcmp.eq.s32.totalorder %v11887_v54, %v11155_v6 }
 0x40d   : > { %v6941_v40 = vadd.f32 %v6940_v18, %v6842_v33  ;;  %v6847_v31 = vsel %vm6783_vm10, %v5427_v1, 0.0  ;;  %v5429_v43 = vpop.f32.mrb[53].mxu0  ;;  %vm6794_vm10 = vcmp.eq.s32.totalorder %v11887_v54, %v11157_v60 }
 0x40e   : > { %v6622_v9 = vpop.f32.mrb[50].mxu1  ;;  %v6880_v24 = vadd.f32 %v6879_v22, %v6847_v31  ;;  %v6848_v62 = vsel %vm6784_vm11, %v5429_v43, 0.0  ;;  %vm6799_vm11 = vcmp.eq.s32.totalorder %v10699_v61, %v11147_v16 }
 0x40f   : > { %v6845_v48 = vsel %vm6781_vm13, %v6622_v9, 0.0  ;;  %v6624_v39 = vpop.f32.mrb[51].mxu1  ;;  %v6901_v27 = vadd.f32 %v6900_v14, %v6848_v62  ;;  %vm6800_vm13 = vcmp.eq.s32.totalorder %v10699_v61, %v11149_v37 }
 0x410   : > { %v6921_v23 = vadd.f32 %v6920_v0, %v6845_v48  ;;  %v6846_v28 = vsel %vm6782_vm14, %v6624_v39, 0.0  ;;  %v5434_v25 = vpop.f32.mrb[54].mxu0  ;;  %vm6797_vm14 = vcmp.eq.s32.totalorder %v10689_v20, %v11155_v6 }
 0x411   : > { %v6942_v17 = vadd.f32 %v6941_v40, %v6846_v28  ;;  %v6851_v8 = vsel %vm6787_vm15, %v5434_v25, 0.0  ;;  %v5436_v50 = vpop.f32.mrb[55].mxu0  ;;  %vm6798_vm15 = vcmp.eq.s32.totalorder %v10689_v20, %v11157_v60 }
 0x412   : > { %v6629_v21 = vpop.f32.mrb[52].mxu1  ;;  %v6881_v57 = vadd.f32 %v6880_v24, %v6851_v8  ;;  %v6852_v44 = vsel %vm6788_vm0, %v5436_v50, 0.0  ;;  %vm6803_vm0 = vcmp.eq.s32.totalorder %v10711_v42, %v11147_v16 }
 0x413   : > { %v6849_v41 = vsel %vm6785_vm1, %v6629_v21, 0.0  ;;  %v6631_v19 = vpop.f32.mrb[53].mxu1  ;;  %v6902_v4 = vadd.f32 %v6901_v27, %v6852_v44  ;;  %vm6804_vm1 = vcmp.eq.s32.totalorder %v10711_v42, %v11149_v37 }
 0x414   : > { %v6922_v51 = vadd.f32 %v6921_v23, %v6849_v41  ;;  %v6850_v36 = vsel %vm6786_vm2, %v6631_v19, 0.0  ;;  %v5441_v53 = vpop.f32.mrb[56].mxu0  ;;  %vm6801_vm2 = vcmp.eq.s32.totalorder %v10699_v61, %v11155_v6 }
 0x415   : > { %v6943_v29 = vadd.f32 %v6942_v17, %v6850_v36  ;;  %v6855_v58 = vsel %vm6791_vm6, %v5441_v53, 0.0  ;;  %v5443_v55 = vpop.f32.mrb[57].mxu0  ;;  %vm6802_vm6 = vcmp.eq.s32.totalorder %v10699_v61, %v11157_v60 }
 0x416   : > { %v6636_v59 = vpop.f32.mrb[54].mxu1  ;;  %v6882_v26 = vadd.f32 %v6881_v57, %v6855_v58  ;;  %v6856_v5 = vsel %vm6792_vm3, %v5443_v55, 0.0  ;;  %vm6805_vm3 = vcmp.eq.s32.totalorder %v10711_v42, %v11155_v6 }
 0x417   : > { %v6853_v12 = vsel %vm6789_vm4, %v6636_v59, 0.0  ;;  %v6638_v15 = vpop.f32.mrb[55].mxu1  ;;  %v6903_v34 = vadd.f32 %v6902_v4, %v6856_v5  ;;  %vm6806_vm4 = vcmp.eq.s32.totalorder %v10711_v42, %v11157_v60 }
 0x418   : > { %v6923_v10 = vadd.f32 %v6922_v51, %v6853_v12  ;;  %v6854_v3 = vsel %vm6790_vm5, %v6638_v15, 0.0  ;;  %v5448_v63 = vpop.f32.mrb[58].mxu0 }
 0x419   : > { %v6944_v11 = vadd.f32 %v6943_v29, %v6854_v3  ;;  %v6859_v52 = vsel %vm6795_vm9, %v5448_v63, 0.0  ;;  %v5450_v45 = vpop.f32.mrb[59].mxu0 }
 0x41a   : > { %v6643_v38 = vpop.f32.mrb[56].mxu1  ;;  %v6883_v18 = vadd.f32 %v6882_v26, %v6859_v52  ;;  %v6860_v56 = vsel %vm6796_vm7, %v5450_v45, 0.0 }
 0x41b   : > { %v6857_v2 = vsel %vm6793_vm8, %v6643_v38, 0.0  ;;  %v6645_v7 = vpop.f32.mrb[57].mxu1  ;;  %v6904_v22 = vadd.f32 %v6903_v34, %v6860_v56 }
 0x41c   : > { %v6924_v49 = vadd.f32 %v6923_v10, %v6857_v2  ;;  %v6858_v30 = vsel %vm6794_vm10, %v6645_v7, 0.0  ;;  %v5455_v13 = vpop.f32.mrb[60].mxu0 }
 0x41d   : > { %v6945_v47 = vadd.f32 %v6944_v11, %v6858_v30  ;;  %v6863_v14 = vsel %vm6799_vm11, %v5455_v13, 0.0  ;;  %v5457_v0 = vpop.f32.mrb[61].mxu0 }
 0x41e   : > { %v6650_v33 = vpop.f32.mrb[58].mxu1  ;;  %v6884_v1 = vadd.f32 %v6883_v18, %v6863_v14  ;;  %v6864_v40 = vsel %vm6800_vm13, %v5457_v0, 0.0 }
 0x41f   : > { %v6861_v31 = vsel %vm6797_vm14, %v6650_v33, 0.0  ;;  %v6652_v43 = vpop.f32.mrb[59].mxu1  ;;  %v6905_v9 = vadd.f32 %v6904_v22, %v6864_v40 }
 0x420   : > { %v6925_v24 = vadd.f32 %v6924_v49, %v6861_v31  ;;  %v6862_v62 = vsel %vm6798_vm15, %v6652_v43, 0.0  ;;  %v5462_v20 = vpop.f32.mrb[62].mxu0 }
 0x421   : > { %v6946_v46 = vadd.f32 %v6945_v47, %v6862_v62  ;;  %v6867_v48 = vsel %vm6803_vm0, %v5462_v20, 0.0  ;;  %v5464_v39 = vpop.f32.mrb[63].mxu0 }
 0x422   : > { %v6657_v27 = vpop.f32.mrb[60].mxu1  ;;  %v6885_v16 = vadd.f32 %v6884_v1, %v6867_v48  ;;  %v6868_v23 = vsel %vm6804_vm1, %v5464_v39, 0.0 }
 0x423   : > { %v6865_v28 = vsel %vm6801_vm2, %v6657_v27, 0.0  ;;  %v6659_v25 = vpop.f32.mrb[61].mxu1  ;;  %v6906_v17 = vadd.f32 %v6905_v9, %v6868_v23 }
 0x424   : > { %v6926_v8 = vadd.f32 %v6925_v24, %v6865_v28  ;;  %v6866_v37 = vsel %vm6802_vm6, %v6659_v25, 0.0  ;;  %v6886_v50 = vrot.slane %v6885_v16, 4 }
 0x425   : > { %v6947_v21 = vadd.f32 %v6946_v46, %v6866_v37  ;;  %v6907_v57 = vrot.slane %v6906_v17, 4 }
 0x426   : > { %v6887_v61 = vadd.f32 %v6886_v50, %v6885_v16  ;;  %v6664_v44 = vpop.f32.mrb[62].mxu1 }
 0x427   : > { %v6869_v54 = vsel %vm6805_vm3, %v6664_v44, 0.0  ;;  %v6908_v41 = vadd.f32 %v6907_v57, %v6906_v17  ;;  %v6666_v19 = vpop.f32.mrb[63].mxu1 }
 0x428   : > { %v6888_v4 = vrot.slane %v6887_v61, 2  ;;  %v6927_v51 = vadd.f32 %v6926_v8, %v6869_v54  ;;  %v6870_v36 = vsel %vm6806_vm4, %v6666_v19, 0.0 }
 0x429   : > { %v6909_v53 = vrot.slane %v6908_v41, 2  ;;  %v6948_v29 = vadd.f32 %v6947_v21, %v6870_v36 }
 0x42a   : > { %v6889_v58 = vadd.f32 %v6888_v4, %v6887_v61  ;;  %v6928_v55 = vrot.slane %v6927_v51, 4 }
 0x42b   : > { %v6910_v59 = vadd.f32 %v6909_v53, %v6908_v41  ;;  %v6949_v26 = vrot.slane %v6948_v29, 4 }
 0x42c   : > { %v6890_v6 = vrot.slane %v6889_v58, 1  ;;  %v6929_v5 = vadd.f32 %v6928_v55, %v6927_v51 }
 0x42d   : > { %v6911_v12 = vrot.slane %v6910_v59, 1  ;;  %v6950_v15 = vadd.f32 %v6949_v26, %v6948_v29 }
 0x42e   : > { %v6891_v42 = vadd.f32 %v6890_v6, %v6889_v58  ;;  %v6930_v60 = vrot.slane %v6929_v5, 2 }
 0x42f   : > { %v6912_v34 = vadd.f32 %v6911_v12, %v6910_v59  ;;  %v6951_v10 = vrot.slane %v6950_v15, 2 }
 0x430   : > { %v6931_v3 = vadd.f32 %v6930_v60, %v6929_v5 }
 0x431   : > { %v6959_v63 = vcombine.low %v6891_v42, %v6912_v34  ;;  %v6952_v11 = vadd.f32 %v6951_v10, %v6950_v15 }
 0x432   : > { %v6932_v52 = vrot.slane %v6931_v3, 1 }
 0x433   : > { %v6953_v45 = vrot.slane %v6952_v11, 1  ;;  %v6967_v56 = vrot.slane %v6959_v63, %v10962_v32 }
 0x434   : > { %v6933_v38 = vadd.f32 %v6932_v52, %v6931_v3 }
 0x435   : > { %v6954_v18 = vadd.f32 %v6953_v45, %v6952_v11 }
 0x437   : > { %v6960_v2 = vcombine.low %v6933_v38, %v6954_v18 }
 0x439   : > { %v6974_v7 = vrot.slane %v6960_v2, %v10962_v32 }
 0x43b   : > { %v6975_v22 = vcombine.low %v6967_v56, %v6974_v7 }
 0x43d   : > { %v6982_v49 = vrot.slane %v6975_v22, %v10962_v32 }
 0x43f   : > { %6984 = vst.msk [vmem:[%s175_s25] sm:$0xf] %vm10983_vm12, %v6982_v49 }
 0x440   : > { %8023 = shalt.err (!%p8020_p9)
}
 0x441   : > { %s8024_s17 = scalar_lea.hbm %s11293_s29, 64  ;;  %s8028_s7 = scalar_lea.hbm %s11341_s3, 256 }
 0x442   : > { %p8025_p10 = scmp.ne.s32.totalorder %s11293_s29, %s8024_s17  ;;  %p8029_p13 = scmp.lt.u32.totalorder %s11293_s29, %s11341_s3 }
 0x443   : > { %p8030_p0 = scmp.lt.u32.totalorder %s8028_s7, %s8024_s17  ;;  %p8032_p2 = scmp.lt.u32.totalorder %s8024_s17, %s11293_s29 }
 0x444   : > { %p8026_p11 = pnand %p8025_p10, %p8142_p5 }
 0x445   : > { %p8031_p1 = por %p8030_p0, %p8029_p13 }
 0x446   : > { %p8027_p12 = pneg %p8026_p11 }
 0x447   : > { %p8033_p3 = por %p8032_p2, %p8031_p1 }
 0x449   : > { %p8034_p4 = pnand %p8033_p3, %p8027_p12 }
 0x44b   : > { %8037 = shalt.err (!%p8034_p4)
}
 0x44c   : > { %7935 = dma.vmem_to_hbm [thread:$0]  (%p8142_p5), %s11295_s26, 64, %s11293_s29, %s6991_s30  }
 0x44d PF: > { %p7945_p7 = scmp.ge.s32.totalorder %s8076_s15, 2  ;;  %s7031_s10 = sand.u32 1, %s8064_s12  }
 0x44e   : > { %s7032_s11 = scalar_lea.sflag [#allocation3], %s7031_s10 }
 0x44f   : > { %p7939_p8 = pnand %p7945_p7, %p8146_p6 }
 0x451   : > { %8055 = dma.done.wait (!%p7939_p8), %s7032_s11, 64  }
 0x452   : > { %8057 = vsyncadd (!%p7939_p8), %s7032_s11, 4294967232  ;;  %s7041_s20 = scalar_lea.sflag [#allocation5], %s7031_s10 }
 0x453   : > { %8059 = dma.done.wait (!%p7939_p8), %s7041_s20, 64  }
 0x454   : > { %8061 = vsyncadd (!%p7939_p8), %s7041_s20, 4294967232  ;;  %p17_p5 = scmp.ge.s32.totalorder %s8129_s18, 6   ;;  %s11888_s12 = smov %s8068_s13 }
 0x455   : > { %s11889_s13 = smov %s8072_s14  ;;  %s11890_s14 = smov %s8140_s21 }
 0x456   : > { %s11891_s15 = smov %s8129_s18  ;;  %19 = sbr.rel (!%p17_p5) target bundleno = 5 (0x5), region = 81 }
 0x45d   :  { %7046 = vsyncpa [#allocation3], 1 }
 0x45e   :  { %7048 = vsyncpa [#allocation3 + $0x1], 1 }
 0x45f   :  { %7049 = vsyncpa [#allocation5], 1 }
 0x460   :  { %7051 = vsyncpa [#allocation5 + $0x1], 1 }

</bundles_post_ra>
